<compile_context>
chip_gen: v7x
topology: tpu7x:2x2x1
jax: 0.10.0
libtpu: 0.0.40
codegen_flags: <defaults>
</compile_context>

<pallas_src>
import functools

import jax
import jax.numpy as jnp
import numpy as np
from jax.experimental import pallas as pl
from jax.experimental.pallas import tpu as pltpu


def _round_up(x, m):
    return (x + m - 1) // m * m


def _pick_vmem_limit():
    # Generation-aware VMEM budget: ~85% of physical VMEM, capped at 100 MiB
    # (v5e/v6e: 128 MiB, v7x: 64 MiB per TensorCore).
    try:
        cap = pltpu.get_tpu_info().vmem_capacity_bytes
        return int(min(cap * 0.85, 100 * 2 ** 20))
    except Exception:
        return 48 * 2 ** 20


_VMEM_LIMIT = _pick_vmem_limit()
_L_CHUNK = 256  # in-kernel L tile (bounds live-value / vreg pressure)


# ---------------------------------------------------------------------------
# Kernel 1: fused (1,K) conv + BatchNorm epilogue (+ optional ReLU)
#           + per-channel spatial sum (feeds the SE global average pool)
# ---------------------------------------------------------------------------

def _conv_bn_kernel(xr_ref, w_ref, s_ref, b_ref, o_ref, psum_ref, *,
                    Ke, group, relu, l_chunk):
    """One (batch image, Cout tile) grid step.

    xr_ref:   (1, Lr, Ce)     bf16  "effective" input (stride folded into Ce)
    w_ref:    (Ke*Ce, TC)     bf16  packed effective weights
    s_ref:    (1, TC)         f32   BN scale
    b_ref:    (1, TC)         f32   BN shift
    o_ref:    (1, Lout, TC)         conv+BN(+ReLU) activation
    psum_ref: (1, 1, TC)      f32   sum over Lout (SE average-pool numerator)
    """
    _, Lout, TC = o_ref.shape
    Ce = xr_ref.shape[-1]
    scale = s_ref[...]
    shift = b_ref[...]
    psum = jnp.zeros((1, TC), jnp.float32)
    for l0 in range(0, Lout, l_chunk):                    # static L chunking
        lc = min(l_chunk, Lout - l0)
        acc = jnp.zeros((lc, TC), jnp.float32)
        # Tap groups: `group` effective taps concatenated along channels so
        # each MXU pass has a ~256-deep contraction instead of Ke shallow dots.
        for g0 in range(0, Ke, group):
            glen = min(group, Ke - g0)
            taps = [xr_ref[0, pl.ds(l0 + g0 + g, lc), :] for g in range(glen)]
            xg = taps[0] if glen == 1 else jnp.concatenate(taps, axis=-1)
            acc = acc + jnp.dot(xg, w_ref[g0 * Ce:(g0 + glen) * Ce, :],
                                preferred_element_type=jnp.float32)
        acc = acc * scale + shift                         # BN in f32 epilogue
        if relu:
            acc = jnp.maximum(acc, 0.0)
        o_ref[0, pl.ds(l0, lc), :] = acc.astype(o_ref.dtype)
        psum = psum + jnp.sum(acc, axis=0, keepdims=True)
    psum_ref[0] = psum


def conv1d_bn(x, w, scale, shift, *, stride, pad, relu, out_dtype=jnp.bfloat16):
    """Conv2d(kernel=(1,K), stride=(1,stride), padding=(0,pad), bias=False)
    + BatchNorm2d (inference, f32 epilogue) + optional ReLU, channels-last.

    x: (N, L, Cin); w: (K, Cin, Cout) f32; scale/shift: (Cout,) f32.
    Returns (out, psum):
      out:  (N, Lout, Cout_pad) in `out_dtype` (channels zero-padded to 128x)
      psum: (N, 1, Cout_pad) f32 per-channel sum over Lout (SE pooling).
    """
    N, L, Cin = x.shape
    K, wcin, Cout = w.shape
    assert wcin == Cin
    Lout = (L + 2 * pad - K) // stride + 1
    Cout_pad = _round_up(Cout, 128)
    TC = 256 if Cout_pad % 256 == 0 else 128

    # "Effective" formulation: fold the stride into the channel axis so every
    # effective tap is a contiguous slice of the padded input (no polyphase
    # gather, no strided loads):  xr[n, l, r*Cin + c] = xpad[n, l*stride+r, c].
    Ke = -(-K // stride)                 # ceil(K / stride)
    Ce = stride * Cin
    Lr = Lout + Ke - 1
    total = stride * Lr
    xp = jnp.pad(x.astype(jnp.bfloat16),
                 ((0, 0), (pad, max(0, total - L - pad)), (0, 0)))[:, :total, :]
    xr = xp.reshape(N, Lr, Ce)

    # Packed effective weights: row q*Ce + r*Cin + c  <-  w[q*stride + r, c, :].
    w_eff = jnp.zeros((Ke * stride, Cin, Cout_pad), jnp.float32)
    w_eff = w_eff.at[:K, :, :Cout].set(w.astype(jnp.float32))
    w_eff = w_eff.reshape(Ke, Ce, Cout_pad).reshape(Ke * Ce, Cout_pad)
    w_eff = w_eff.astype(jnp.bfloat16)
    scale2 = jnp.pad(scale.astype(jnp.float32), (0, Cout_pad - Cout)).reshape(1, Cout_pad)
    shift2 = jnp.pad(shift.astype(jnp.float32), (0, Cout_pad - Cout)).reshape(1, Cout_pad)

    group = max(1, 256 // Ce)            # ~256-deep contraction per MXU pass
    grid = (N, Cout_pad // TC)           # both axes "parallel" (megacore / v7x)

    out, psum = pl.pallas_call(
        functools.partial(_conv_bn_kernel, Ke=Ke, group=group, relu=relu,
                          l_chunk=_L_CHUNK),
        out_shape=[jax.ShapeDtypeStruct((N, Lout, Cout_pad), out_dtype),
                   jax.ShapeDtypeStruct((N, 1, Cout_pad), jnp.float32)],
        grid=grid,
        in_specs=[
            pl.BlockSpec((1, Lr, Ce), lambda n, j: (n, 0, 0)),
            pl.BlockSpec((Ke * Ce, TC), lambda n, j: (0, j)),
            pl.BlockSpec((1, TC), lambda n, j: (0, j)),
            pl.BlockSpec((1, TC), lambda n, j: (0, j)),
        ],
        out_specs=[
            pl.BlockSpec((1, Lout, TC), lambda n, j: (n, 0, j)),
            pl.BlockSpec((1, 1, TC), lambda n, j: (n, 0, j)),
        ],
        compiler_params=pltpu.CompilerParams(
            dimension_semantics=("parallel", "parallel"),
            vmem_limit_bytes=_VMEM_LIMIT,
        ),
    )(xr, w_eff, scale2, shift2)
    return out, psum


# ---------------------------------------------------------------------------
# Kernel 2: SE squeeze path (avg-pool numerator -> fc1 -> ReLU -> fc2 -> sigmoid)
# ---------------------------------------------------------------------------

def _se_fc_kernel(s_ref, w1_ref, w2_ref, g_ref, *, inv_l):
    n, _, cp = s_ref.shape
    s = s_ref[...].reshape(n, cp) * inv_l                 # global average pool
    h = jnp.maximum(jnp.dot(s, w1_ref[...],
                            preferred_element_type=jnp.float32), 0.0)
    z = jnp.dot(h, w2_ref[...], preferred_element_type=jnp.float32)
    g_ref[...] = (1.0 / (1.0 + jnp.exp(-z))).reshape(g_ref.shape)


def se_fc_gate(psum, w1, w2, *, lout):
    """gate = sigmoid(relu(mean(y, L) @ w1) @ w2).  Tiny; one ungridded call."""
    N, _, Cp = psum.shape
    C, ch = w1.shape
    chp = _round_up(ch, 128)             # keep the tiny fcs lane-dense too
    w1p = jnp.pad(w1.astype(jnp.float32), ((0, Cp - C), (0, chp - ch)))
    w2p = jnp.pad(w2.astype(jnp.float32), ((0, chp - ch), (0, Cp - C)))
    return pl.pallas_call(
        functools.partial(_se_fc_kernel, inv_l=1.0 / float(lout)),
        out_shape=jax.ShapeDtypeStruct((N, 1, Cp), jnp.float32),
    )(psum, w1p, w2p)


# ---------------------------------------------------------------------------
# Kernel 3: SE gating + residual add + final ReLU  (gridded, bf16 inputs)
# ---------------------------------------------------------------------------

def _gate_res_relu_kernel(y_ref, g_ref, r_ref, o_ref, *, l_chunk):
    _, L, TC = o_ref.shape
    g = g_ref[0]                                          # (1, TC) f32
    for l0 in range(0, L, l_chunk):
        lc = min(l_chunk, L - l0)
        y = y_ref[0, pl.ds(l0, lc), :].astype(jnp.float32)
        r = r_ref[0, pl.ds(l0, lc), :].astype(jnp.float32)
        o_ref[0, pl.ds(l0, lc), :] = jnp.maximum(y * g + r, 0.0).astype(o_ref.dtype)


def gate_residual_relu(y, gate, res, out_dtype=jnp.float32):
    N, L, Cp = y.shape
    TC = 256 if Cp % 256 == 0 else 128
    grid = (N, Cp // TC)
    return pl.pallas_call(
        functools.partial(_gate_res_relu_kernel, l_chunk=_L_CHUNK),
        out_shape=jax.ShapeDtypeStruct((N, L, Cp), out_dtype),
        grid=grid,
        in_specs=[pl.BlockSpec((1, L, TC), lambda n, j: (n, 0, j)),
                  pl.BlockSpec((1, 1, TC), lambda n, j: (n, 0, j)),
                  pl.BlockSpec((1, L, TC), lambda n, j: (n, 0, j))],
        out_specs=pl.BlockSpec((1, L, TC), lambda n, j: (n, 0, j)),
        compiler_params=pltpu.CompilerParams(
            dimension_semantics=("parallel", "parallel"),
            vmem_limit_bytes=_VMEM_LIMIT),
    )(y, gate, res)


# ---------------------------------------------------------------------------
# Block forward (NCHW interface matching the PyTorch module, H == 1)
# ---------------------------------------------------------------------------

def basic_block_forward(params, x_nchw, *, stride, has_downsample):
    # NCHW (N, C, 1, L) -> channels-last (N, L, C).
    # TODO(synk): when stacking blocks, keep (N, L, C) between blocks and only
    #             transpose at the network boundary.
    x = jnp.transpose(x_nchw[:, :, 0, :], (0, 2, 1))
    planes = params["w1"].shape[-1]
    cpad = _round_up(planes, 128)

    h, _ = conv1d_bn(x, params["w1"], params["s1"], params["b1"],
                     stride=stride, pad=7, relu=True)     # (N, L1, cpad) bf16
    # TODO(synk): nn.Dropout(p=0.25) is identity in eval mode and is omitted.

    # conv2 consumes the channel-padded activation directly (padded channels
    # are exact zeros); pad its Cin weights to match -- no inter-kernel slice.
    w2p = jnp.pad(params["w2"], ((0, 0), (0, cpad - planes), (0, 0)))
    y, ysum = conv1d_bn(h, w2p, params["s2"], params["b2"],
                        stride=1, pad=7, relu=False)      # (N, L1, cpad) bf16

    gate = se_fc_gate(ysum, params["se_w1"], params["se_w2"], lout=y.shape[1])

    if has_downsample:
        res, _ = conv1d_bn(x, params["wd"], params["sd"], params["bd"],
                           stride=stride, pad=0, relu=False)   # bf16, cpad ch
    else:
        res = jnp.pad(x, ((0, 0), (0, 0), (0, cpad - x.shape[-1])))
        res = res.astype(jnp.bfloat16)

    out = gate_residual_relu(y, gate, res)                # (N, L1, cpad) f32
    out = out[:, :, :planes]                              # drop pad channels
    return jnp.transpose(out, (0, 2, 1))[:, :, None, :]   # back to NCHW


# ---------------------------------------------------------------------------
# Parameters (deterministic synthetic init, BN folded to scale/shift)
# ---------------------------------------------------------------------------

def init_block_params(key, inplanes, planes, *, has_downsample, reduction=16):
    ks = jax.random.split(key, 8)

    def conv_w(k, kw, cin, cout):
        return jax.random.normal(k, (kw, cin, cout), jnp.float32) / np.sqrt(kw * cin)

    def bn(k, c):
        k1, k2, k3 = jax.random.split(k, 3)
        gamma = 1.0 + 0.1 * jax.random.normal(k1, (c,), jnp.float32)
        beta = 0.1 * jax.random.normal(k2, (c,), jnp.float32)
        mean = 0.1 * jax.random.normal(k3, (c,), jnp.float32)
        var = jnp.ones((c,), jnp.float32)
        scale = gamma / jnp.sqrt(var + 1e-5)
        return scale, beta - mean * scale

    p = {"w1": conv_w(ks[0], 15, inplanes, planes),
         "w2": conv_w(ks[1], 15, planes, planes)}
    p["s1"], p["b1"] = bn(ks[2], planes)
    p["s2"], p["b2"] = bn(ks[3], planes)
    ch = planes // reduction
    p["se_w1"] = jax.random.normal(ks[4], (planes, ch), jnp.float32) / np.sqrt(planes)
    p["se_w2"] = jax.random.normal(ks[5], (ch, planes), jnp.float32) / np.sqrt(ch)
    if has_downsample:
        p["wd"] = conv_w(ks[6], 1, inplanes, planes)
        p["sd"], p["bd"] = bn(ks[7], planes)
    return p


# ---------------------------------------------------------------------------
# Pure-JAX reference (f32) for a numerical sanity check
# ---------------------------------------------------------------------------

def _conv_ref(x, w, scale, shift, *, stride, pad, relu):
    N, L, Cin = x.shape
    K, _, Cout = w.shape
    xp = jnp.pad(x, ((0, 0), (pad, pad), (0, 0)))
    Lout = (L + 2 * pad - K) // stride + 1
    idx = jnp.arange(Lout)[:, None] * stride + jnp.arange(K)[None, :]
    patches = xp[:, idx, :]                                # (N, Lout, K, Cin)
    y = jnp.einsum("nokc,kcd->nod", patches, w,
                   precision=jax.lax.Precision.HIGHEST)
    y = y * scale + shift
    return jnp.maximum(y, 0.0) if relu else y


def block_reference(params, x_nchw, *, stride, has_downsample):
    x = jnp.transpose(x_nchw[:, :, 0, :], (0, 2, 1)).astype(jnp.float32)
    h = _conv_ref(x, params["w1"], params["s1"], params["b1"],
                  stride=stride, pad=7, relu=True)
    y = _conv_ref(h, params["w2"], params["s2"], params["b2"],
                  stride=1, pad=7, relu=False)
    if has_downsample:
        res = _conv_ref(x, params["wd"], params["sd"], params["bd"],
                        stride=stride, pad=0, relu=False)
    else:
        res = x
    s = jnp.mean(y, axis=1)
    g = jax.nn.sigmoid(jnp.maximum(s @ params["se_w1"], 0.0) @ params["se_w2"])
    out = jnp.maximum(y * g[:, None, :] + res, 0.0)
    return jnp.transpose(out, (0, 2, 1))[:, :, None, :]


# ---------------------------------------------------------------------------
# Demo
# ---------------------------------------------------------------------------

if __name__ == "__main__":
    root = jax.random.PRNGKey(0)
    kp1, kp2, kx1, kx2 = jax.random.split(root, 4)

    N, C_IN, L = 2, 64, 64

    # Config A: module defaults -- stride=(1,1), downsample=None, 64 -> 64 ch.
    params_a = init_block_params(kp1, C_IN, 64, has_downsample=False)
    x_a = jax.random.normal(kx1, (N, C_IN, 1, L), jnp.float32)
    fwd_a = jax.jit(functools.partial(basic_block_forward,
                                      stride=1, has_downsample=False))
    out_a = fwd_a(params_a, x_a)
    jax.block_until_ready(out_a)
    assert out_a.shape == (N, 64, 1, L)

    # Config B: strided block with 1x1-conv+BN downsample, 64 -> 128 ch.
    params_b = init_block_params(kp2, C_IN, 128, has_downsample=True)
    x_b = jax.random.normal(kx2, (N, C_IN, 1, L), jnp.float32)
    fwd_b = jax.jit(functools.partial(basic_block_forward,
                                      stride=2, has_downsample=True))
    out_b = fwd_b(params_b, x_b)
    jax.block_until_ready(out_b)
    assert out_b.shape == (N, 128, 1, (L - 1) // 2 + 1)

    # Numerical sanity check vs the f32 reference (kernel matmuls use bf16).
    ref_a = block_reference(params_a, x_a, stride=1, has_downsample=False)
    ref_b = block_reference(params_b, x_b, stride=2, has_downsample=True)
    assert jnp.allclose(out_a, ref_a, atol=0.1, rtol=0.1), \
        float(jnp.max(jnp.abs(out_a - ref_a)))
    assert jnp.allclose(out_b, ref_b, atol=0.1, rtol=0.1), \
        float(jnp.max(jnp.abs(out_b - ref_b)))

    print("KERNEL_OK")
</pallas_src>

<mosaic_0001>
module attributes {stable_mosaic.version = 11 : i64} {
  func.func @_conv_bn_kernel(%arg0: i32, %arg1: i32, %arg2: memref<1x78x64xbf16, #tpu.memory_space<vmem>>, %arg3: memref<960x128xbf16, #tpu.memory_space<vmem>>, %arg4: memref<1x128xf32, #tpu.memory_space<vmem>>, %arg5: memref<1x128xf32, #tpu.memory_space<vmem>>, %arg6: memref<1x64x128xbf16, #tpu.memory_space<vmem>>, %arg7: memref<1x1x128xf32, #tpu.memory_space<vmem>>) attributes {dimension_semantics = [#tpu.dimension_semantics<parallel>, #tpu.dimension_semantics<parallel>], iteration_bounds = array<i64: 2, 1>, scalar_prefetch = 0 : i64, scratch_operands = 0 : i64, tpu.core_type = #tpu.core_type<tc>, window_params = [{transform_indices = @transform_0, window_bounds = array<i64: 1, 78, 64>}, {transform_indices = @transform_1, window_bounds = array<i64: 960, 128>}, {transform_indices = @transform_2, window_bounds = array<i64: 1, 128>}, {transform_indices = @transform_3, window_bounds = array<i64: 1, 128>}, {transform_indices = @transform_4, window_bounds = array<i64: 1, 64, 128>}, {transform_indices = @transform_5, window_bounds = array<i64: 1, 1, 128>}]} {
    %c0 = arith.constant 0 : index
    %c0_0 = arith.constant 0 : index
    %0 = vector.load %arg4[%c0, %c0_0] : memref<1x128xf32, #tpu.memory_space<vmem>>, vector<1x128xf32>
    %c0_1 = arith.constant 0 : index
    %c0_2 = arith.constant 0 : index
    %1 = vector.load %arg5[%c0_1, %c0_2] : memref<1x128xf32, #tpu.memory_space<vmem>>, vector<1x128xf32>
    %cst = arith.constant 0.000000e+00 : f32
    %2 = vector.broadcast %cst : f32 to vector<1x128xf32>
    %cst_3 = arith.constant 0.000000e+00 : f32
    %3 = vector.broadcast %cst_3 : f32 to vector<64x128xf32>
    %c0_4 = arith.constant 0 : index
    %c0_5 = arith.constant 0 : index
    %c0_6 = arith.constant 0 : index
    %4 = vector.load %arg2[%c0_4, %c0_5, %c0_6] : memref<1x78x64xbf16, #tpu.memory_space<vmem>>, vector<1x64x64xbf16>
    %5 = vector.shape_cast %4 : vector<1x64x64xbf16> to vector<64x64xbf16>
    %c0_7 = arith.constant 0 : index
    %c1 = arith.constant 1 : index
    %c0_8 = arith.constant 0 : index
    %6 = vector.load %arg2[%c0_7, %c1, %c0_8] : memref<1x78x64xbf16, #tpu.memory_space<vmem>>, vector<1x64x64xbf16>
    %7 = vector.shape_cast %6 : vector<1x64x64xbf16> to vector<64x64xbf16>
    %c0_9 = arith.constant 0 : index
    %c2 = arith.constant 2 : index
    %c0_10 = arith.constant 0 : index
    %8 = vector.load %arg2[%c0_9, %c2, %c0_10] : memref<1x78x64xbf16, #tpu.memory_space<vmem>>, vector<1x64x64xbf16>
    %9 = vector.shape_cast %8 : vector<1x64x64xbf16> to vector<64x64xbf16>
    %c0_11 = arith.constant 0 : index
    %c3 = arith.constant 3 : index
    %c0_12 = arith.constant 0 : index
    %10 = vector.load %arg2[%c0_11, %c3, %c0_12] : memref<1x78x64xbf16, #tpu.memory_space<vmem>>, vector<1x64x64xbf16>
    %11 = vector.shape_cast %10 : vector<1x64x64xbf16> to vector<64x64xbf16>
    %12 = tpu.concatenate %5, %7, %9, %11 in 1 : vector<64x64xbf16>, vector<64x64xbf16>, vector<64x64xbf16>, vector<64x64xbf16> -> vector<64x256xbf16>
    %c0_13 = arith.constant 0 : index
    %c0_14 = arith.constant 0 : index
    %13 = vector.load %arg3[%c0_13, %c0_14] : memref<960x128xbf16, #tpu.memory_space<vmem>>, vector<256x128xbf16>
    %cst_15 = arith.constant dense<0.000000e+00> : vector<64x128xf32>
    %14 = tpu.matmul %12, %13, %cst_15 {dimension_numbers = #tpu.dot_dimension_numbers<[1], [0], [0], [1], [0, 0, 1, 1], [], []>} : vector<64x256xbf16>, vector<256x128xbf16>, vector<64x128xf32> -> vector<64x128xf32>
    %15 = arith.addf %3, %14 : vector<64x128xf32>
    %c0_16 = arith.constant 0 : index
    %c4 = arith.constant 4 : index
    %c0_17 = arith.constant 0 : index
    %16 = vector.load %arg2[%c0_16, %c4, %c0_17] : memref<1x78x64xbf16, #tpu.memory_space<vmem>>, vector<1x64x64xbf16>
    %17 = vector.shape_cast %16 : vector<1x64x64xbf16> to vector<64x64xbf16>
    %c0_18 = arith.constant 0 : index
    %c5 = arith.constant 5 : index
    %c0_19 = arith.constant 0 : index
    %18 = vector.load %arg2[%c0_18, %c5, %c0_19] : memref<1x78x64xbf16, #tpu.memory_space<vmem>>, vector<1x64x64xbf16>
    %19 = vector.shape_cast %18 : vector<1x64x64xbf16> to vector<64x64xbf16>
    %c0_20 = arith.constant 0 : index
    %c6 = arith.constant 6 : index
    %c0_21 = arith.constant 0 : index
    %20 = vector.load %arg2[%c0_20, %c6, %c0_21] : memref<1x78x64xbf16, #tpu.memory_space<vmem>>, vector<1x64x64xbf16>
    %21 = vector.shape_cast %20 : vector<1x64x64xbf16> to vector<64x64xbf16>
    %c0_22 = arith.constant 0 : index
    %c7 = arith.constant 7 : index
    %c0_23 = arith.constant 0 : index
    %22 = vector.load %arg2[%c0_22, %c7, %c0_23] : memref<1x78x64xbf16, #tpu.memory_space<vmem>>, vector<1x64x64xbf16>
    %23 = vector.shape_cast %22 : vector<1x64x64xbf16> to vector<64x64xbf16>
    %24 = tpu.concatenate %17, %19, %21, %23 in 1 : vector<64x64xbf16>, vector<64x64xbf16>, vector<64x64xbf16>, vector<64x64xbf16> -> vector<64x256xbf16>
    %c256 = arith.constant 256 : index
    %c0_24 = arith.constant 0 : index
    %25 = vector.load %arg3[%c256, %c0_24] : memref<960x128xbf16, #tpu.memory_space<vmem>>, vector<256x128xbf16>
    %cst_25 = arith.constant dense<0.000000e+00> : vector<64x128xf32>
    %26 = tpu.matmul %24, %25, %cst_25 {dimension_numbers = #tpu.dot_dimension_numbers<[1], [0], [0], [1], [0, 0, 1, 1], [], []>} : vector<64x256xbf16>, vector<256x128xbf16>, vector<64x128xf32> -> vector<64x128xf32>
    %27 = arith.addf %15, %26 : vector<64x128xf32>
    %c0_26 = arith.constant 0 : index
    %c8 = arith.constant 8 : index
    %c0_27 = arith.constant 0 : index
    %28 = vector.load %arg2[%c0_26, %c8, %c0_27] : memref<1x78x64xbf16, #tpu.memory_space<vmem>>, vector<1x64x64xbf16>
    %29 = vector.shape_cast %28 : vector<1x64x64xbf16> to vector<64x64xbf16>
    %c0_28 = arith.constant 0 : index
    %c9 = arith.constant 9 : index
    %c0_29 = arith.constant 0 : index
    %30 = vector.load %arg2[%c0_28, %c9, %c0_29] : memref<1x78x64xbf16, #tpu.memory_space<vmem>>, vector<1x64x64xbf16>
    %31 = vector.shape_cast %30 : vector<1x64x64xbf16> to vector<64x64xbf16>
    %c0_30 = arith.constant 0 : index
    %c10 = arith.constant 10 : index
    %c0_31 = arith.constant 0 : index
    %32 = vector.load %arg2[%c0_30, %c10, %c0_31] : memref<1x78x64xbf16, #tpu.memory_space<vmem>>, vector<1x64x64xbf16>
    %33 = vector.shape_cast %32 : vector<1x64x64xbf16> to vector<64x64xbf16>
    %c0_32 = arith.constant 0 : index
    %c11 = arith.constant 11 : index
    %c0_33 = arith.constant 0 : index
    %34 = vector.load %arg2[%c0_32, %c11, %c0_33] : memref<1x78x64xbf16, #tpu.memory_space<vmem>>, vector<1x64x64xbf16>
    %35 = vector.shape_cast %34 : vector<1x64x64xbf16> to vector<64x64xbf16>
    %36 = tpu.concatenate %29, %31, %33, %35 in 1 : vector<64x64xbf16>, vector<64x64xbf16>, vector<64x64xbf16>, vector<64x64xbf16> -> vector<64x256xbf16>
    %c512 = arith.constant 512 : index
    %c0_34 = arith.constant 0 : index
    %37 = vector.load %arg3[%c512, %c0_34] : memref<960x128xbf16, #tpu.memory_space<vmem>>, vector<256x128xbf16>
    %cst_35 = arith.constant dense<0.000000e+00> : vector<64x128xf32>
    %38 = tpu.matmul %36, %37, %cst_35 {dimension_numbers = #tpu.dot_dimension_numbers<[1], [0], [0], [1], [0, 0, 1, 1], [], []>} : vector<64x256xbf16>, vector<256x128xbf16>, vector<64x128xf32> -> vector<64x128xf32>
    %39 = arith.addf %27, %38 : vector<64x128xf32>
    %c0_36 = arith.constant 0 : index
    %c12 = arith.constant 12 : index
    %c0_37 = arith.constant 0 : index
    %40 = vector.load %arg2[%c0_36, %c12, %c0_37] : memref<1x78x64xbf16, #tpu.memory_space<vmem>>, vector<1x64x64xbf16>
    %41 = vector.shape_cast %40 : vector<1x64x64xbf16> to vector<64x64xbf16>
    %c0_38 = arith.constant 0 : index
    %c13 = arith.constant 13 : index
    %c0_39 = arith.constant 0 : index
    %42 = vector.load %arg2[%c0_38, %c13, %c0_39] : memref<1x78x64xbf16, #tpu.memory_space<vmem>>, vector<1x64x64xbf16>
    %43 = vector.shape_cast %42 : vector<1x64x64xbf16> to vector<64x64xbf16>
    %c0_40 = arith.constant 0 : index
    %c14 = arith.constant 14 : index
    %c0_41 = arith.constant 0 : index
    %44 = vector.load %arg2[%c0_40, %c14, %c0_41] : memref<1x78x64xbf16, #tpu.memory_space<vmem>>, vector<1x64x64xbf16>
    %45 = vector.shape_cast %44 : vector<1x64x64xbf16> to vector<64x64xbf16>
    %46 = tpu.concatenate %41, %43, %45 in 1 : vector<64x64xbf16>, vector<64x64xbf16>, vector<64x64xbf16> -> vector<64x192xbf16>
    %c768 = arith.constant 768 : index
    %c0_42 = arith.constant 0 : index
    %47 = vector.load %arg3[%c768, %c0_42] : memref<960x128xbf16, #tpu.memory_space<vmem>>, vector<192x128xbf16>
    %cst_43 = arith.constant dense<0.000000e+00> : vector<64x128xf32>
    %48 = tpu.matmul %46, %47, %cst_43 {dimension_numbers = #tpu.dot_dimension_numbers<[1], [0], [0], [1], [0, 0, 1, 1], [], []>} : vector<64x192xbf16>, vector<192x128xbf16>, vector<64x128xf32> -> vector<64x128xf32>
    %49 = arith.addf %39, %48 : vector<64x128xf32>
    %50 = vector.broadcast %0 : vector<1x128xf32> to vector<64x128xf32>
    %51 = arith.mulf %49, %50 : vector<64x128xf32>
    %52 = vector.broadcast %1 : vector<1x128xf32> to vector<64x128xf32>
    %53 = arith.addf %51, %52 : vector<64x128xf32>
    %cst_44 = arith.constant 0.000000e+00 : f32
    %54 = vector.broadcast %cst_44 : f32 to vector<64x128xf32>
    %55 = arith.maximumf %53, %54 : vector<64x128xf32>
    %56 = arith.truncf %55 : vector<64x128xf32> to vector<64x128xbf16>
    %c0_45 = arith.constant 0 : index
    %c0_46 = arith.constant 0 : index
    %c0_47 = arith.constant 0 : index
    %57 = vector.load %arg6[%c0_45, %c0_46, %c0_47] : memref<1x64x128xbf16, #tpu.memory_space<vmem>>, vector<1x64x128xbf16>
    %58 = vector.shape_cast %57 : vector<1x64x128xbf16> to vector<64x128xbf16>
    %59 = vector.shape_cast %56 : vector<64x128xbf16> to vector<1x64x128xbf16>
    tpu.vector_store %arg6[%c0_45, %c0_46, %c0_47], %59 {strides = array<i32>} : memref<1x64x128xbf16, #tpu.memory_space<vmem>>, vector<1x64x128xbf16>,
    %cst_48 = arith.constant dense<0.000000e+00> : vector<128xf32>
    %60 = vector.multi_reduction <add>, %55, %cst_48 [0] : vector<64x128xf32> to vector<128xf32>
    %61 = vector.shape_cast %60 : vector<128xf32> to vector<1x128xf32>
    %62 = arith.addf %2, %61 : vector<1x128xf32>
    %c0_49 = arith.constant 0 : index
    %c0_50 = arith.constant 0 : index
    %c0_51 = arith.constant 0 : index
    %63 = vector.load %arg7[%c0_49, %c0_50, %c0_51] : memref<1x1x128xf32, #tpu.memory_space<vmem>>, vector<1x1x128xf32>
    %64 = vector.shape_cast %63 : vector<1x1x128xf32> to vector<1x128xf32>
    %65 = vector.shape_cast %62 : vector<1x128xf32> to vector<1x1x128xf32>
    tpu.vector_store %arg7[%c0_49, %c0_50, %c0_51], %65 {strides = array<i32>} : memref<1x1x128xf32, #tpu.memory_space<vmem>>, vector<1x1x128xf32>,
    return
  }
  func.func @transform_0(%arg0: i32, %arg1: i32) -> (i32, i32, i32) {
    %c0_i32 = arith.constant 0 : i32
    %c0_i32_0 = arith.constant 0 : i32
    %c0_i32_1 = arith.constant 0 : i32
    return %arg0, %c0_i32, %c0_i32_0 : i32, i32, i32
  }
  func.func @transform_1(%arg0: i32, %arg1: i32) -> (i32, i32) {
    %c0_i32 = arith.constant 0 : i32
    %c0_i32_0 = arith.constant 0 : i32
    return %c0_i32, %arg1 : i32, i32
  }
  func.func @transform_2(%arg0: i32, %arg1: i32) -> (i32, i32) {
    %c0_i32 = arith.constant 0 : i32
    %c0_i32_0 = arith.constant 0 : i32
    return %c0_i32, %arg1 : i32, i32
  }
  func.func @transform_3(%arg0: i32, %arg1: i32) -> (i32, i32) {
    %c0_i32 = arith.constant 0 : i32
    %c0_i32_0 = arith.constant 0 : i32
    return %c0_i32, %arg1 : i32, i32
  }
  func.func @transform_4(%arg0: i32, %arg1: i32) -> (i32, i32, i32) {
    %c0_i32 = arith.constant 0 : i32
    %c0_i32_0 = arith.constant 0 : i32
    return %arg0, %c0_i32, %arg1 : i32, i32, i32
  }
  func.func @transform_5(%arg0: i32, %arg1: i32) -> (i32, i32, i32) {
    %c0_i32 = arith.constant 0 : i32
    %c0_i32_0 = arith.constant 0 : i32
    return %arg0, %c0_i32, %arg1 : i32, i32, i32
  }
}

module attributes {stable_mosaic.version = 11 : i64} {
  func.func @_conv_bn_kernel(%arg0: i32, %arg1: i32, %arg2: memref<1x78x128xbf16, #tpu.memory_space<vmem>>, %arg3: memref<1920x128xbf16, #tpu.memory_space<vmem>>, %arg4: memref<1x128xf32, #tpu.memory_space<vmem>>, %arg5: memref<1x128xf32, #tpu.memory_space<vmem>>, %arg6: memref<1x64x128xbf16, #tpu.memory_space<vmem>>, %arg7: memref<1x1x128xf32, #tpu.memory_space<vmem>>) attributes {dimension_semantics = [#tpu.dimension_semantics<parallel>, #tpu.dimension_semantics<parallel>], iteration_bounds = array<i64: 2, 1>, scalar_prefetch = 0 : i64, scratch_operands = 0 : i64, tpu.core_type = #tpu.core_type<tc>, window_params = [{transform_indices = @transform_0, window_bounds = array<i64: 1, 78, 128>}, {transform_indices = @transform_1, window_bounds = array<i64: 1920, 128>}, {transform_indices = @transform_2, window_bounds = array<i64: 1, 128>}, {transform_indices = @transform_3, window_bounds = array<i64: 1, 128>}, {transform_indices = @transform_4, window_bounds = array<i64: 1, 64, 128>}, {transform_indices = @transform_5, window_bounds = array<i64: 1, 1, 128>}]} {
    %c0 = arith.constant 0 : index
    %c0_0 = arith.constant 0 : index
    %0 = vector.load %arg4[%c0, %c0_0] : memref<1x128xf32, #tpu.memory_space<vmem>>, vector<1x128xf32>
    %c0_1 = arith.constant 0 : index
    %c0_2 = arith.constant 0 : index
    %1 = vector.load %arg5[%c0_1, %c0_2] : memref<1x128xf32, #tpu.memory_space<vmem>>, vector<1x128xf32>
    %cst = arith.constant 0.000000e+00 : f32
    %2 = vector.broadcast %cst : f32 to vector<1x128xf32>
    %cst_3 = arith.constant 0.000000e+00 : f32
    %3 = vector.broadcast %cst_3 : f32 to vector<64x128xf32>
    %c0_4 = arith.constant 0 : index
    %c0_5 = arith.constant 0 : index
    %c0_6 = arith.constant 0 : index
    %4 = vector.load %arg2[%c0_4, %c0_5, %c0_6] : memref<1x78x128xbf16, #tpu.memory_space<vmem>>, vector<1x64x128xbf16>
    %5 = vector.shape_cast %4 : vector<1x64x128xbf16> to vector<64x128xbf16>
    %c0_7 = arith.constant 0 : index
    %c1 = arith.constant 1 : index
    %c0_8 = arith.constant 0 : index
    %6 = vector.load %arg2[%c0_7, %c1, %c0_8] : memref<1x78x128xbf16, #tpu.memory_space<vmem>>, vector<1x64x128xbf16>
    %7 = vector.shape_cast %6 : vector<1x64x128xbf16> to vector<64x128xbf16>
    %8 = tpu.concatenate %5, %7 in 1 : vector<64x128xbf16>, vector<64x128xbf16> -> vector<64x256xbf16>
    %c0_9 = arith.constant 0 : index
    %c0_10 = arith.constant 0 : index
    %9 = vector.load %arg3[%c0_9, %c0_10] : memref<1920x128xbf16, #tpu.memory_space<vmem>>, vector<256x128xbf16>
    %cst_11 = arith.constant dense<0.000000e+00> : vector<64x128xf32>
    %10 = tpu.matmul %8, %9, %cst_11 {dimension_numbers = #tpu.dot_dimension_numbers<[1], [0], [0], [1], [0, 0, 1, 1], [], []>} : vector<64x256xbf16>, vector<256x128xbf16>, vector<64x128xf32> -> vector<64x128xf32>
    %11 = arith.addf %3, %10 : vector<64x128xf32>
    %c0_12 = arith.constant 0 : index
    %c2 = arith.constant 2 : index
    %c0_13 = arith.constant 0 : index
    %12 = vector.load %arg2[%c0_12, %c2, %c0_13] : memref<1x78x128xbf16, #tpu.memory_space<vmem>>, vector<1x64x128xbf16>
    %13 = vector.shape_cast %12 : vector<1x64x128xbf16> to vector<64x128xbf16>
    %c0_14 = arith.constant 0 : index
    %c3 = arith.constant 3 : index
    %c0_15 = arith.constant 0 : index
    %14 = vector.load %arg2[%c0_14, %c3, %c0_15] : memref<1x78x128xbf16, #tpu.memory_space<vmem>>, vector<1x64x128xbf16>
    %15 = vector.shape_cast %14 : vector<1x64x128xbf16> to vector<64x128xbf16>
    %16 = tpu.concatenate %13, %15 in 1 : vector<64x128xbf16>, vector<64x128xbf16> -> vector<64x256xbf16>
    %c256 = arith.constant 256 : index
    %c0_16 = arith.constant 0 : index
    %17 = vector.load %arg3[%c256, %c0_16] : memref<1920x128xbf16, #tpu.memory_space<vmem>>, vector<256x128xbf16>
    %cst_17 = arith.constant dense<0.000000e+00> : vector<64x128xf32>
    %18 = tpu.matmul %16, %17, %cst_17 {dimension_numbers = #tpu.dot_dimension_numbers<[1], [0], [0], [1], [0, 0, 1, 1], [], []>} : vector<64x256xbf16>, vector<256x128xbf16>, vector<64x128xf32> -> vector<64x128xf32>
    %19 = arith.addf %11, %18 : vector<64x128xf32>
    %c0_18 = arith.constant 0 : index
    %c4 = arith.constant 4 : index
    %c0_19 = arith.constant 0 : index
    %20 = vector.load %arg2[%c0_18, %c4, %c0_19] : memref<1x78x128xbf16, #tpu.memory_space<vmem>>, vector<1x64x128xbf16>
    %21 = vector.shape_cast %20 : vector<1x64x128xbf16> to vector<64x128xbf16>
    %c0_20 = arith.constant 0 : index
    %c5 = arith.constant 5 : index
    %c0_21 = arith.constant 0 : index
    %22 = vector.load %arg2[%c0_20, %c5, %c0_21] : memref<1x78x128xbf16, #tpu.memory_space<vmem>>, vector<1x64x128xbf16>
    %23 = vector.shape_cast %22 : vector<1x64x128xbf16> to vector<64x128xbf16>
    %24 = tpu.concatenate %21, %23 in 1 : vector<64x128xbf16>, vector<64x128xbf16> -> vector<64x256xbf16>
    %c512 = arith.constant 512 : index
    %c0_22 = arith.constant 0 : index
    %25 = vector.load %arg3[%c512, %c0_22] : memref<1920x128xbf16, #tpu.memory_space<vmem>>, vector<256x128xbf16>
    %cst_23 = arith.constant dense<0.000000e+00> : vector<64x128xf32>
    %26 = tpu.matmul %24, %25, %cst_23 {dimension_numbers = #tpu.dot_dimension_numbers<[1], [0], [0], [1], [0, 0, 1, 1], [], []>} : vector<64x256xbf16>, vector<256x128xbf16>, vector<64x128xf32> -> vector<64x128xf32>
    %27 = arith.addf %19, %26 : vector<64x128xf32>
    %c0_24 = arith.constant 0 : index
    %c6 = arith.constant 6 : index
    %c0_25 = arith.constant 0 : index
    %28 = vector.load %arg2[%c0_24, %c6, %c0_25] : memref<1x78x128xbf16, #tpu.memory_space<vmem>>, vector<1x64x128xbf16>
    %29 = vector.shape_cast %28 : vector<1x64x128xbf16> to vector<64x128xbf16>
    %c0_26 = arith.constant 0 : index
    %c7 = arith.constant 7 : index
    %c0_27 = arith.constant 0 : index
    %30 = vector.load %arg2[%c0_26, %c7, %c0_27] : memref<1x78x128xbf16, #tpu.memory_space<vmem>>, vector<1x64x128xbf16>
    %31 = vector.shape_cast %30 : vector<1x64x128xbf16> to vector<64x128xbf16>
    %32 = tpu.concatenate %29, %31 in 1 : vector<64x128xbf16>, vector<64x128xbf16> -> vector<64x256xbf16>
    %c768 = arith.constant 768 : index
    %c0_28 = arith.constant 0 : index
    %33 = vector.load %arg3[%c768, %c0_28] : memref<1920x128xbf16, #tpu.memory_space<vmem>>, vector<256x128xbf16>
    %cst_29 = arith.constant dense<0.000000e+00> : vector<64x128xf32>
    %34 = tpu.matmul %32, %33, %cst_29 {dimension_numbers = #tpu.dot_dimension_numbers<[1], [0], [0], [1], [0, 0, 1, 1], [], []>} : vector<64x256xbf16>, vector<256x128xbf16>, vector<64x128xf32> -> vector<64x128xf32>
    %35 = arith.addf %27, %34 : vector<64x128xf32>
    %c0_30 = arith.constant 0 : index
    %c8 = arith.constant 8 : index
    %c0_31 = arith.constant 0 : index
    %36 = vector.load %arg2[%c0_30, %c8, %c0_31] : memref<1x78x128xbf16, #tpu.memory_space<vmem>>, vector<1x64x128xbf16>
    %37 = vector.shape_cast %36 : vector<1x64x128xbf16> to vector<64x128xbf16>
    %c0_32 = arith.constant 0 : index
    %c9 = arith.constant 9 : index
    %c0_33 = arith.constant 0 : index
    %38 = vector.load %arg2[%c0_32, %c9, %c0_33] : memref<1x78x128xbf16, #tpu.memory_space<vmem>>, vector<1x64x128xbf16>
    %39 = vector.shape_cast %38 : vector<1x64x128xbf16> to vector<64x128xbf16>
    %40 = tpu.concatenate %37, %39 in 1 : vector<64x128xbf16>, vector<64x128xbf16> -> vector<64x256xbf16>
    %c1024 = arith.constant 1024 : index
    %c0_34 = arith.constant 0 : index
    %41 = vector.load %arg3[%c1024, %c0_34] : memref<1920x128xbf16, #tpu.memory_space<vmem>>, vector<256x128xbf16>
    %cst_35 = arith.constant dense<0.000000e+00> : vector<64x128xf32>
    %42 = tpu.matmul %40, %41, %cst_35 {dimension_numbers = #tpu.dot_dimension_numbers<[1], [0], [0], [1], [0, 0, 1, 1], [], []>} : vector<64x256xbf16>, vector<256x128xbf16>, vector<64x128xf32> -> vector<64x128xf32>
    %43 = arith.addf %35, %42 : vector<64x128xf32>
    %c0_36 = arith.constant 0 : index
    %c10 = arith.constant 10 : index
    %c0_37 = arith.constant 0 : index
    %44 = vector.load %arg2[%c0_36, %c10, %c0_37] : memref<1x78x128xbf16, #tpu.memory_space<vmem>>, vector<1x64x128xbf16>
    %45 = vector.shape_cast %44 : vector<1x64x128xbf16> to vector<64x128xbf16>
    %c0_38 = arith.constant 0 : index
    %c11 = arith.constant 11 : index
    %c0_39 = arith.constant 0 : index
    %46 = vector.load %arg2[%c0_38, %c11, %c0_39] : memref<1x78x128xbf16, #tpu.memory_space<vmem>>, vector<1x64x128xbf16>
    %47 = vector.shape_cast %46 : vector<1x64x128xbf16> to vector<64x128xbf16>
    %48 = tpu.concatenate %45, %47 in 1 : vector<64x128xbf16>, vector<64x128xbf16> -> vector<64x256xbf16>
    %c1280 = arith.constant 1280 : index
    %c0_40 = arith.constant 0 : index
    %49 = vector.load %arg3[%c1280, %c0_40] : memref<1920x128xbf16, #tpu.memory_space<vmem>>, vector<256x128xbf16>
    %cst_41 = arith.constant dense<0.000000e+00> : vector<64x128xf32>
    %50 = tpu.matmul %48, %49, %cst_41 {dimension_numbers = #tpu.dot_dimension_numbers<[1], [0], [0], [1], [0, 0, 1, 1], [], []>} : vector<64x256xbf16>, vector<256x128xbf16>, vector<64x128xf32> -> vector<64x128xf32>
    %51 = arith.addf %43, %50 : vector<64x128xf32>
    %c0_42 = arith.constant 0 : index
    %c12 = arith.constant 12 : index
    %c0_43 = arith.constant 0 : index
    %52 = vector.load %arg2[%c0_42, %c12, %c0_43] : memref<1x78x128xbf16, #tpu.memory_space<vmem>>, vector<1x64x128xbf16>
    %53 = vector.shape_cast %52 : vector<1x64x128xbf16> to vector<64x128xbf16>
    %c0_44 = arith.constant 0 : index
    %c13 = arith.constant 13 : index
    %c0_45 = arith.constant 0 : index
    %54 = vector.load %arg2[%c0_44, %c13, %c0_45] : memref<1x78x128xbf16, #tpu.memory_space<vmem>>, vector<1x64x128xbf16>
    %55 = vector.shape_cast %54 : vector<1x64x128xbf16> to vector<64x128xbf16>
    %56 = tpu.concatenate %53, %55 in 1 : vector<64x128xbf16>, vector<64x128xbf16> -> vector<64x256xbf16>
    %c1536 = arith.constant 1536 : index
    %c0_46 = arith.constant 0 : index
    %57 = vector.load %arg3[%c1536, %c0_46] : memref<1920x128xbf16, #tpu.memory_space<vmem>>, vector<256x128xbf16>
    %cst_47 = arith.constant dense<0.000000e+00> : vector<64x128xf32>
    %58 = tpu.matmul %56, %57, %cst_47 {dimension_numbers = #tpu.dot_dimension_numbers<[1], [0], [0], [1], [0, 0, 1, 1], [], []>} : vector<64x256xbf16>, vector<256x128xbf16>, vector<64x128xf32> -> vector<64x128xf32>
    %59 = arith.addf %51, %58 : vector<64x128xf32>
    %c0_48 = arith.constant 0 : index
    %c14 = arith.constant 14 : index
    %c0_49 = arith.constant 0 : index
    %60 = vector.load %arg2[%c0_48, %c14, %c0_49] : memref<1x78x128xbf16, #tpu.memory_space<vmem>>, vector<1x64x128xbf16>
    %61 = vector.shape_cast %60 : vector<1x64x128xbf16> to vector<64x128xbf16>
    %c1792 = arith.constant 1792 : index
    %c0_50 = arith.constant 0 : index
    %62 = vector.load %arg3[%c1792, %c0_50] : memref<1920x128xbf16, #tpu.memory_space<vmem>>, vector<128x128xbf16>
    %cst_51 = arith.constant dense<0.000000e+00> : vector<64x128xf32>
    %63 = tpu.matmul %61, %62, %cst_51 {dimension_numbers = #tpu.dot_dimension_numbers<[1], [0], [0], [1], [0, 0, 1, 1], [], []>} : vector<64x128xbf16>, vector<128x128xbf16>, vector<64x128xf32> -> vector<64x128xf32>
    %64 = arith.addf %59, %63 : vector<64x128xf32>
    %65 = vector.broadcast %0 : vector<1x128xf32> to vector<64x128xf32>
    %66 = arith.mulf %64, %65 : vector<64x128xf32>
    %67 = vector.broadcast %1 : vector<1x128xf32> to vector<64x128xf32>
    %68 = arith.addf %66, %67 : vector<64x128xf32>
    %69 = arith.truncf %68 : vector<64x128xf32> to vector<64x128xbf16>
    %c0_52 = arith.constant 0 : index
    %c0_53 = arith.constant 0 : index
    %c0_54 = arith.constant 0 : index
    %70 = vector.load %arg6[%c0_52, %c0_53, %c0_54] : memref<1x64x128xbf16, #tpu.memory_space<vmem>>, vector<1x64x128xbf16>
    %71 = vector.shape_cast %70 : vector<1x64x128xbf16> to vector<64x128xbf16>
    %72 = vector.shape_cast %69 : vector<64x128xbf16> to vector<1x64x128xbf16>
    tpu.vector_store %arg6[%c0_52, %c0_53, %c0_54], %72 {strides = array<i32>} : memref<1x64x128xbf16, #tpu.memory_space<vmem>>, vector<1x64x128xbf16>,
    %cst_55 = arith.constant dense<0.000000e+00> : vector<128xf32>
    %73 = vector.multi_reduction <add>, %68, %cst_55 [0] : vector<64x128xf32> to vector<128xf32>
    %74 = vector.shape_cast %73 : vector<128xf32> to vector<1x128xf32>
    %75 = arith.addf %2, %74 : vector<1x128xf32>
    %c0_56 = arith.constant 0 : index
    %c0_57 = arith.constant 0 : index
    %c0_58 = arith.constant 0 : index
    %76 = vector.load %arg7[%c0_56, %c0_57, %c0_58] : memref<1x1x128xf32, #tpu.memory_space<vmem>>, vector<1x1x128xf32>
    %77 = vector.shape_cast %76 : vector<1x1x128xf32> to vector<1x128xf32>
    %78 = vector.shape_cast %75 : vector<1x128xf32> to vector<1x1x128xf32>
    tpu.vector_store %arg7[%c0_56, %c0_57, %c0_58], %78 {strides = array<i32>} : memref<1x1x128xf32, #tpu.memory_space<vmem>>, vector<1x1x128xf32>,
    return
  }
  func.func @transform_0(%arg0: i32, %arg1: i32) -> (i32, i32, i32) {
    %c0_i32 = arith.constant 0 : i32
    %c0_i32_0 = arith.constant 0 : i32
    %c0_i32_1 = arith.constant 0 : i32
    return %arg0, %c0_i32, %c0_i32_0 : i32, i32, i32
  }
  func.func @transform_1(%arg0: i32, %arg1: i32) -> (i32, i32) {
    %c0_i32 = arith.constant 0 : i32
    %c0_i32_0 = arith.constant 0 : i32
    return %c0_i32, %arg1 : i32, i32
  }
  func.func @transform_2(%arg0: i32, %arg1: i32) -> (i32, i32) {
    %c0_i32 = arith.constant 0 : i32
    %c0_i32_0 = arith.constant 0 : i32
    return %c0_i32, %arg1 : i32, i32
  }
  func.func @transform_3(%arg0: i32, %arg1: i32) -> (i32, i32) {
    %c0_i32 = arith.constant 0 : i32
    %c0_i32_0 = arith.constant 0 : i32
    return %c0_i32, %arg1 : i32, i32
  }
  func.func @transform_4(%arg0: i32, %arg1: i32) -> (i32, i32, i32) {
    %c0_i32 = arith.constant 0 : i32
    %c0_i32_0 = arith.constant 0 : i32
    return %arg0, %c0_i32, %arg1 : i32, i32, i32
  }
  func.func @transform_5(%arg0: i32, %arg1: i32) -> (i32, i32, i32) {
    %c0_i32 = arith.constant 0 : i32
    %c0_i32_0 = arith.constant 0 : i32
    return %arg0, %c0_i32, %arg1 : i32, i32, i32
  }
}

module attributes {stable_mosaic.version = 11 : i64} {
  func.func @_se_fc_kernel(%arg0: memref<2x1x128xf32, #tpu.memory_space<vmem>>, %arg1: memref<128x128xf32, #tpu.memory_space<vmem>>, %arg2: memref<128x128xf32, #tpu.memory_space<vmem>>, %arg3: memref<2x1x128xf32, #tpu.memory_space<vmem>>) attributes {dimension_semantics = [], scalar_prefetch = 0 : i64, scratch_operands = 0 : i64, tpu.core_type = #tpu.core_type<tc>} {
    %c0 = arith.constant 0 : index
    %c0_0 = arith.constant 0 : index
    %c0_1 = arith.constant 0 : index
    %0 = vector.load %arg0[%c0, %c0_0, %c0_1] : memref<2x1x128xf32, #tpu.memory_space<vmem>>, vector<2x1x128xf32>
    %1 = vector.shape_cast %0 : vector<2x1x128xf32> to vector<2x128xf32>
    %cst = arith.constant 1.562500e-02 : f32
    %2 = vector.broadcast %cst : f32 to vector<2x128xf32>
    %3 = arith.mulf %1, %2 : vector<2x128xf32>
    %c0_2 = arith.constant 0 : index
    %c0_3 = arith.constant 0 : index
    %4 = vector.load %arg1[%c0_2, %c0_3] : memref<128x128xf32, #tpu.memory_space<vmem>>, vector<128x128xf32>
    %cst_4 = arith.constant dense<0.000000e+00> : vector<2x128xf32>
    %5 = tpu.matmul %3, %4, %cst_4 {dimension_numbers = #tpu.dot_dimension_numbers<[1], [0], [0], [1], [0, 0, 1, 1], [], []>} : vector<2x128xf32>, vector<128x128xf32>, vector<2x128xf32> -> vector<2x128xf32>
    %cst_5 = arith.constant 0.000000e+00 : f32
    %6 = vector.broadcast %cst_5 : f32 to vector<2x128xf32>
    %7 = arith.maximumf %5, %6 : vector<2x128xf32>
    %c0_6 = arith.constant 0 : index
    %c0_7 = arith.constant 0 : index
    %8 = vector.load %arg2[%c0_6, %c0_7] : memref<128x128xf32, #tpu.memory_space<vmem>>, vector<128x128xf32>
    %cst_8 = arith.constant dense<0.000000e+00> : vector<2x128xf32>
    %9 = tpu.matmul %7, %8, %cst_8 {dimension_numbers = #tpu.dot_dimension_numbers<[1], [0], [0], [1], [0, 0, 1, 1], [], []>} : vector<2x128xf32>, vector<128x128xf32>, vector<2x128xf32> -> vector<2x128xf32>
    %cst_9 = arith.constant 0.000000e+00 : f32
    %10 = vector.broadcast %cst_9 : f32 to vector<2x128xf32>
    %11 = arith.subf %10, %9 : vector<2x128xf32>
    %12 = math.exp %11 : vector<2x128xf32>
    %cst_10 = arith.constant 1.000000e+00 : f32
    %13 = vector.broadcast %cst_10 : f32 to vector<2x128xf32>
    %14 = arith.addf %13, %12 : vector<2x128xf32>
    %cst_11 = arith.constant 1.000000e+00 : f32
    %15 = vector.broadcast %cst_11 : f32 to vector<2x128xf32>
    %16 = arith.divf %15, %14 : vector<2x128xf32>
    %17 = vector.shape_cast %16 : vector<2x128xf32> to vector<2x1x128xf32>
    %c0_12 = arith.constant 0 : index
    %c0_13 = arith.constant 0 : index
    %c0_14 = arith.constant 0 : index
    %18 = vector.load %arg3[%c0_12, %c0_13, %c0_14] : memref<2x1x128xf32, #tpu.memory_space<vmem>>, vector<2x1x128xf32>
    tpu.vector_store %arg3[%c0_12, %c0_13, %c0_14], %17 {strides = array<i32>} : memref<2x1x128xf32, #tpu.memory_space<vmem>>, vector<2x1x128xf32>,
    return
  }
}

module attributes {stable_mosaic.version = 11 : i64} {
  func.func @_gate_res_relu_kernel(%arg0: i32, %arg1: i32, %arg2: memref<1x64x128xbf16, #tpu.memory_space<vmem>>, %arg3: memref<1x1x128xf32, #tpu.memory_space<vmem>>, %arg4: memref<1x64x128xbf16, #tpu.memory_space<vmem>>, %arg5: memref<1x64x128xf32, #tpu.memory_space<vmem>>) attributes {dimension_semantics = [#tpu.dimension_semantics<parallel>, #tpu.dimension_semantics<parallel>], iteration_bounds = array<i64: 2, 1>, scalar_prefetch = 0 : i64, scratch_operands = 0 : i64, tpu.core_type = #tpu.core_type<tc>, window_params = [{transform_indices = @transform_0, window_bounds = array<i64: 1, 64, 128>}, {transform_indices = @transform_1, window_bounds = array<i64: 1, 1, 128>}, {transform_indices = @transform_2, window_bounds = array<i64: 1, 64, 128>}, {transform_indices = @transform_3, window_bounds = array<i64: 1, 64, 128>}]} {
    %c0 = arith.constant 0 : index
    %c0_0 = arith.constant 0 : index
    %c0_1 = arith.constant 0 : index
    %0 = vector.load %arg3[%c0, %c0_0, %c0_1] : memref<1x1x128xf32, #tpu.memory_space<vmem>>, vector<1x1x128xf32>
    %1 = vector.shape_cast %0 : vector<1x1x128xf32> to vector<1x128xf32>
    %c0_2 = arith.constant 0 : index
    %c0_3 = arith.constant 0 : index
    %c0_4 = arith.constant 0 : index
    %2 = vector.load %arg2[%c0_2, %c0_3, %c0_4] : memref<1x64x128xbf16, #tpu.memory_space<vmem>>, vector<1x64x128xbf16>
    %3 = vector.shape_cast %2 : vector<1x64x128xbf16> to vector<64x128xbf16>
    %4 = arith.extf %3 : vector<64x128xbf16> to vector<64x128xf32>
    %c0_5 = arith.constant 0 : index
    %c0_6 = arith.constant 0 : index
    %c0_7 = arith.constant 0 : index
    %5 = vector.load %arg4[%c0_5, %c0_6, %c0_7] : memref<1x64x128xbf16, #tpu.memory_space<vmem>>, vector<1x64x128xbf16>
    %6 = vector.shape_cast %5 : vector<1x64x128xbf16> to vector<64x128xbf16>
    %7 = arith.extf %6 : vector<64x128xbf16> to vector<64x128xf32>
    %8 = vector.broadcast %1 : vector<1x128xf32> to vector<64x128xf32>
    %9 = arith.mulf %4, %8 : vector<64x128xf32>
    %10 = arith.addf %9, %7 : vector<64x128xf32>
    %cst = arith.constant 0.000000e+00 : f32
    %11 = vector.broadcast %cst : f32 to vector<64x128xf32>
    %12 = arith.maximumf %10, %11 : vector<64x128xf32>
    %c0_8 = arith.constant 0 : index
    %c0_9 = arith.constant 0 : index
    %c0_10 = arith.constant 0 : index
    %13 = vector.load %arg5[%c0_8, %c0_9, %c0_10] : memref<1x64x128xf32, #tpu.memory_space<vmem>>, vector<1x64x128xf32>
    %14 = vector.shape_cast %13 : vector<1x64x128xf32> to vector<64x128xf32>
    %15 = vector.shape_cast %12 : vector<64x128xf32> to vector<1x64x128xf32>
    tpu.vector_store %arg5[%c0_8, %c0_9, %c0_10], %15 {strides = array<i32>} : memref<1x64x128xf32, #tpu.memory_space<vmem>>, vector<1x64x128xf32>,
    return
  }
  func.func @transform_0(%arg0: i32, %arg1: i32) -> (i32, i32, i32) {
    %c0_i32 = arith.constant 0 : i32
    %c0_i32_0 = arith.constant 0 : i32
    return %arg0, %c0_i32, %arg1 : i32, i32, i32
  }
  func.func @transform_1(%arg0: i32, %arg1: i32) -> (i32, i32, i32) {
    %c0_i32 = arith.constant 0 : i32
    %c0_i32_0 = arith.constant 0 : i32
    return %arg0, %c0_i32, %arg1 : i32, i32, i32
  }
  func.func @transform_2(%arg0: i32, %arg1: i32) -> (i32, i32, i32) {
    %c0_i32 = arith.constant 0 : i32
    %c0_i32_0 = arith.constant 0 : i32
    return %arg0, %c0_i32, %arg1 : i32, i32, i32
  }
  func.func @transform_3(%arg0: i32, %arg1: i32) -> (i32, i32, i32) {
    %c0_i32 = arith.constant 0 : i32
    %c0_i32_0 = arith.constant 0 : i32
    return %arg0, %c0_i32, %arg1 : i32, i32, i32
  }
}

</mosaic_0001>

<bundles_post_ra>
// kernel: basic_block_forward.6
= control target key start
LH: loop header
LB: loop body
LE: loop exit
PB: predicated region body
PF: predicated region fallthrough
CT: control target
= control target key end

     0   :  { %v408_v0 = vmov 0.0|0.0   ;;  %vm409_vm0 = vmmov 0   ;;  %v410_v4 = vmov 0.0   ;;  %v411_v25 = vmov 1966171168   ;;  %s556_s1 = inlined_call_operand.vmem [shape: f32[128,128], index: 1, kind: input, shape index: {}]   ;;  %s557_s2 = inlined_call_operand.vmem [shape: f32[128,128], index: 2, kind: input, shape index: {}]   ;;  %s558_s0 = inlined_call_operand.vmem [shape: f32[2,1,128], index: 0, kind: input, shape index: {}]   ;;  %s559_s3 = inlined_call_operand.vmem [shape: f32[2,1,128], index: 3, kind: output, shape index: {}]  }
   0x1   :  { %352 = vmatprep.subr.bf16.mxu0 %v408_v0  ;;  %v18_v1 = vld [vmem:[%s556_s1] sm:$0xff]  ;;  %v19_v2 = vld [vmem:[%s556_s1 + $0x8] sm:$0xff]  ;;  %v20_v3 = vld [vmem:[%s556_s1 + $0x10] sm:$0xff]  ;;  %314 = vmatprep.mubr.msk.f32.mxu0 %vm409_vm0, %v410_v4  ;;  %v38_v26 = vunpack.c.l.s4 %v411_v25  ;;  %v40_v27 = vlaneseq }
   0x2   :  { %v353_v5 = vpack.c.bf16 %v19_v2, %v18_v1  ;;  %v21_v6 = vld [vmem:[%s556_s1 + $0x18] sm:$0xff]  ;;  %376 = vmatprep.subr.bf16.mxu1 %v408_v0  ;;  %349 = vmatprep.mubr.msk.f32.mxu1 %vm409_vm0, %v410_v4  ;;  %v22_v8 = vld [vmem:[%s556_s1 + $0x20] sm:$0xff]  ;;  %v23_v9 = vld [vmem:[%s556_s1 + $0x28] sm:$0xff] }
   0x3   :  { %v356_v7 = vpack.c.bf16 %v21_v6, %v20_v3  ;;  %v123_v10 = vld [vmem:[%s557_s2] sm:$0xff]  ;;  %v124_v11 = vld [vmem:[%s557_s2 + $0x8] sm:$0xff]  ;;  %v125_v12 = vld [vmem:[%s557_s2 + $0x10] sm:$0xff]  ;;  %v359_v13 = vpack.c.bf16 %v23_v9, %v22_v8  ;;  %v39_v38 = vunpack.c.0.s8 %v38_v26  ;;  %v41_v39 = vshrl.u32 %v40_v27, 7 }
   0x4   :  { %354 = vmatpush3.bf16.msra.mxu0 %v353_v5  ;;  %v377_v14 = vpack.c.bf16 %v124_v11, %v123_v10  ;;  %v126_v15 = vld [vmem:[%s557_s2 + $0x18] sm:$0xff]  ;;  %v24_v16 = vld [vmem:[%s556_s1 + $0x30] sm:$0xff]  ;;  %v127_v19 = vld [vmem:[%s557_s2 + $0x20] sm:$0xff] }
   0x5   :  { %355 = vmatprep.subr.bf16.mxu0 %v408_v0  ;;  %v25_v17 = vld [vmem:[%s556_s1 + $0x38] sm:$0xff]  ;;  %v380_v18 = vpack.c.bf16 %v126_v15, %v125_v12  ;;  %v128_v20 = vld [vmem:[%s557_s2 + $0x28] sm:$0xff]  ;;  %v26_v22 = vld [vmem:[%s556_s1 + $0x40] sm:$0xff]  ;;  %v42_v47 = vsub.s32 %v39_v38, %v41_v39 }
   0x6   :  { %378 = vmatpush3.bf16.msra.mxu1 %v377_v14  ;;  %v362_v21 = vpack.c.bf16 %v25_v17, %v24_v16  ;;  %v27_v23 = vld [vmem:[%s556_s1 + $0x48] sm:$0xff]  ;;  %v383_v24 = vpack.c.bf16 %v128_v20, %v127_v19  ;;  %v129_v28 = vld [vmem:[%s557_s2 + $0x30] sm:$0xff]  ;;  %v130_v29 = vld [vmem:[%s557_s2 + $0x38] sm:$0xff] }
   0x7   :  { %379 = vmatprep.subr.bf16.mxu1 %v408_v0  ;;  %v365_v30 = vpack.c.bf16 %v27_v23, %v26_v22  ;;  %v14_v31 = vld [vmem:[%s558_s0] sm:$0x1]  ;;  %v15_v32 = vld [vmem:[%s558_s0 + $0x1] sm:$0x1]  ;;  %v28_v33 = vld [vmem:[%s556_s1 + $0x50] sm:$0xff]  ;;  %v386_v35 = vpack.c.bf16 %v130_v29, %v129_v28 }
   0x8   :  { %357 = vmatpush3.bf16.msra.mxu0 %v356_v7  ;;  %v29_v34 = vld [vmem:[%s556_s1 + $0x58] sm:$0xff]  ;;  %v16_v36 = vmul.f32 0.015625, %v14_v31  ;;  %v17_v37 = vmul.f32 0.015625, %v15_v32  ;;  %v131_v40 = vld [vmem:[%s557_s2 + $0x40] sm:$0xff]  ;;  %v132_v41 = vld [vmem:[%s557_s2 + $0x48] sm:$0xff] }
   0x9   :  { %358 = vmatprep.subr.bf16.mxu0 %v408_v0  ;;  %v368_v42 = vpack.c.bf16 %v29_v34, %v28_v33  ;;  %v30_v43 = vld [vmem:[%s556_s1 + $0x60] sm:$0xff]  ;;  %v31_v44 = vld [vmem:[%s556_s1 + $0x68] sm:$0xff]  ;;  %v389_v45 = vpack.c.bf16 %v132_v41, %v131_v40  ;;  %v133_v48 = vld [vmem:[%s557_s2 + $0x50] sm:$0xff] }
   0xa   :  { %381 = vmatpush3.bf16.msra.mxu1 %v380_v18  ;;  %v36_v46 = vcombine.low %v16_v36, %v17_v37  ;;  %v134_v49 = vld [vmem:[%s557_s2 + $0x58] sm:$0xff]  ;;  %v371_v50 = vpack.c.bf16 %v31_v44, %v30_v43  ;;  %v32_v51 = vld [vmem:[%s556_s1 + $0x70] sm:$0xff]  ;;  %v135_v55 = vld [vmem:[%s557_s2 + $0x60] sm:$0xff] }
   0xb   :  { %382 = vmatprep.subr.bf16.mxu1 %v408_v0  ;;  %v33_v52 = vld [vmem:[%s556_s1 + $0x78] sm:$0xff]  ;;  %v392_v53 = vpack.c.bf16 %v134_v49, %v133_v48  ;;  %v136_v56 = vld [vmem:[%s557_s2 + $0x68] sm:$0xff]  ;;  %v137_v60 = vld [vmem:[%s557_s2 + $0x70] sm:$0xff] }
   0xc   :  { %360 = vmatpush3.bf16.msra.mxu0 %v359_v13  ;;  %v43_v54 = vrot.slane %v36_v46, %v42_v47  ;;  %v374_v57 = vpack.c.bf16 %v33_v52, %v32_v51  ;;  %v395_v58 = vpack.c.bf16 %v136_v56, %v135_v55  ;;  %v138_v61 = vld [vmem:[%s557_s2 + $0x78] sm:$0xff] }
   0xd   :  { %361 = vmatprep.subr.bf16.mxu0 %v408_v0  ;;  %v398_v62 = vpack.c.bf16 %v138_v61, %v137_v60 }
   0xe   :  { %384 = vmatpush3.bf16.msra.mxu1 %v383_v24  ;;  %v50_v59 = vrot.slane %v43_v54, %v42_v47 }
   0xf   :  { %385 = vmatprep.subr.bf16.mxu1 %v408_v0 }
  0x10   :  { %363 = vmatpush3.bf16.msra.mxu0 %v362_v21 }
  0x11   :  { %364 = vmatprep.subr.bf16.mxu0 %v408_v0 }
  0x12   :  { %387 = vmatpush3.bf16.msra.mxu1 %v386_v35 }
  0x13   :  { %388 = vmatprep.subr.bf16.mxu1 %v408_v0 }
  0x14   :  { %366 = vmatpush3.bf16.msra.mxu0 %v365_v30 }
  0x15   :  { %367 = vmatprep.subr.bf16.mxu0 %v408_v0 }
  0x16   :  { %390 = vmatpush3.bf16.msra.mxu1 %v389_v45 }
  0x17   :  { %391 = vmatprep.subr.bf16.mxu1 %v408_v0 }
  0x18   :  { %369 = vmatpush3.bf16.msra.mxu0 %v368_v42 }
  0x19   :  { %370 = vmatprep.subr.bf16.mxu0 %v408_v0 }
  0x1a   :  { %393 = vmatpush3.bf16.msra.mxu1 %v392_v53 }
  0x1b   :  { %394 = vmatprep.subr.bf16.mxu1 %v408_v0 }
  0x1c   :  { %372 = vmatpush3.bf16.msra.mxu0 %v371_v50 }
  0x1d   :  { %373 = vmatprep.subr.bf16.mxu0 %v408_v0 }
  0x1e   :  { %396 = vmatpush3.bf16.msra.mxu1 %v395_v58 }
  0x1f   :  { %397 = vmatprep.subr.bf16.mxu1 %v408_v0 }
  0x20   :  { %375 = vmatpush3.bf16.msra.mxu0 %v374_v57 }
  0x22   :  { %399 = vmatpush3.bf16.msra.mxu1 %v398_v62 }
  0x23   :  { %315 = vmatmul.mubr.f32.vlgmr.msra.gmra.mrb[0].mxu0 %v50_v59 }
  0xf6   :  { %v118_v63 = vpop.f32.mrb[0].mxu0 }
  0xf7   :  { %v122_v1 = vmax.f32 %v118_v63, 0.0  ;;  %v316_v2 = vpop.f32.mrb[1].mxu0 }
  0xf9   :  { %350 = vmatmul.mubr.f32.vlgmr.msra.gmra.mrb[0].mxu1 %v122_v1 }
 0x1cc   :  { %v205_v3 = vpop.f32.mrb[0].mxu1 }
 0x1cd   :  { %v209_v4 = vsub.f32 0.0, %v205_v3  ;;  %v351_v5 = vpop.f32.mrb[1].mxu1 }
 0x1cf   :  { %v210_v6 = vmul.f32 1.442695, %v209_v4 }
 0x1d1   :  { %404 = vpow2.f32 %v210_v6 }
 0x1db   :  { %v405_v0 = vpop.eup %404 }
 0x1dc   :  { %v212_v7 = vadd.f32 1.0, %v405_v0 }
 0x1de   :  { %406 = vrcp.f32 %v212_v7 }
 0x1e8   :  { %v407_v8 = vpop.eup %406 }
 0x1e9   :  { %v222_v9 = vrot.slane %v407_v8, %v42_v47 }
 0x1eb   :  { %v223_v10 = vcombine.high %v222_v9, %v222_v9  ;;  %246 = vst.sshfl [vmem:[%s559_s3] sm:$0x1 pattern:$0x73625140] %v222_v9 }
 0x1ed   :  { %247 = vst.sshfl [vmem:[%s559_s3 + $0x1] sm:$0x1 pattern:$0x73625140] %v223_v10 }

// kernel: basic_block_forward.7
= control target key start
LH: loop header
LB: loop body
LE: loop exit
PB: predicated region body
PF: predicated region fallthrough
CT: control target
= control target key end

     0   :  { %s565_s12 = smov 0   ;;  %s567_s13 = smov 0   ;;  %s609_s0 = inlined_call_operand.vmem [shape: bf16[2,64,128], index: 0, kind: input, shape index: {}]   ;;  %s610_s1 = inlined_call_operand.vmem [shape: f32[2,1,128], index: 1, kind: input, shape index: {}]   ;;  %s611_s2 = inlined_call_operand.vmem [shape: bf16[2,64,128], index: 2, kind: input, shape index: {}]   ;;  %s612_s3 = inlined_call_operand.vmem [shape: f32[2,64,128], index: 3, kind: output, shape index: {}]  }
   0x1   :  { %s569_s14 = smov 0  }
   0x2 LB: > { %s25_s15 = sadd.s32 1, %s539_s13  ;;  %p446_p0 = scmp.ge.s32.totalorder %s543_s14, 1  ;;  %s543_s14 = sphi %s569_s14, %s13_s14   ;;  %s539_s13 = sphi %s567_s13, %s614_s13   ;;  %s535_s12 = sphi %s565_s12, %s613_s12  }
   0x3   : > { %p27_p1 = scmp.ge.s32.totalorder %s25_s15, 2  ;;  %p184_p2 = scmp.lt.s32.totalorder %s543_s14, 3 }
   0x5   : > { %s616_s15 = smov (%p27_p1, %s25_s15), 0  ;;  %p185_p3 = pnand %p446_p0, %p184_p2 }
   0x6   : > { %p228_p4 = scmp.lt.s32.totalorder (!%p185_p3), %s535_s12, 1 }
   0x7   : > { %188 = sbr.rel (%p185_p3) target bundleno = 34 (0x22), region = 32 }
   0xe   : > { %s618_s12 = smov (!%p228_p4, %s535_s12), 1 }
   0xf   : > { %s456_s16 = sshll.u32 %s618_s12, 5  ;;  %s241_s19 = scalar_lea.vmem %s610_s1, %s618_s12 }
  0x10   : > { %s235_s22 = scalar_lea.vmem %s609_s0, %s456_s16  ;;  %s249_s25 = scalar_lea.vmem %s611_s2, %s456_s16  ;;  %v453_v0 = vld [vmem:[%s241_s19] ss:$0 sm:$0xff] }
  0x11   : > { %v460_v1 = vld [vmem:[%s235_s22] sm:$0xff]   ;;  %v491_v3 = vld [vmem:[%s235_s22 + $0x8] sm:$0xff]   ;;  %v492_v9 = vld [vmem:[%s235_s22 + $0x10] sm:$0xff]   ;;  %s458_s26 = sshll.u32 %s618_s12, 6 }
  0x12   : > { %v476_v2 = vld [vmem:[%s249_s25] sm:$0xff]   ;;  %v461_v4 = vunpack.c.l.bf16 %v460_v1  ;;  %v462_v6 = vunpack.c.h.bf16 %v460_v1  ;;  %v494_v8 = vld [vmem:[%s249_s25 + $0x8] sm:$0xff]   ;;  %v495_v10 = vld [vmem:[%s249_s25 + $0x10] sm:$0xff]   ;;  %v465_v11 = vunpack.c.l.bf16 %v491_v3  ;;  %v466_v13 = vunpack.c.h.bf16 %v491_v3  ;;  %s257_s29 = scalar_lea.vmem %s612_s3, %s458_s26 }
  0x13   : > { %v477_v5 = vunpack.c.l.bf16 %v476_v2  ;;  %v478_v7 = vunpack.c.h.bf16 %v476_v2  ;;  %v481_v12 = vunpack.c.l.bf16 %v494_v8  ;;  %v482_v14 = vunpack.c.h.bf16 %v494_v8  ;;  %v493_v15 = vld [vmem:[%s235_s22 + $0x18] sm:$0xff]  }
  0x14   : > { %v297_v16 = vmul.f32 %v461_v4, %v453_v0  ;;  %v298_v17 = vmul.f32 %v462_v6, %v453_v0  ;;  %v469_v18 = vunpack.c.l.bf16 %v492_v9  ;;  %v485_v19 = vunpack.c.l.bf16 %v495_v10  ;;  %v496_v20 = vld [vmem:[%s249_s25 + $0x18] sm:$0xff]  }
  0x15   : > { %v299_v21 = vmul.f32 %v465_v11, %v453_v0  ;;  %v300_v22 = vmul.f32 %v466_v13, %v453_v0  ;;  %v470_v23 = vunpack.c.h.bf16 %v492_v9  ;;  %v486_v24 = vunpack.c.h.bf16 %v495_v10 }
  0x16   : > { %v305_v25 = vadd.f32 %v477_v5, %v297_v16  ;;  %v306_v26 = vadd.f32 %v478_v7, %v298_v17  ;;  %v301_v27 = vmul.f32 %v469_v18, %v453_v0  ;;  %v473_v28 = vunpack.c.l.bf16 %v493_v15 }
  0x17   : > { %v307_v29 = vadd.f32 %v481_v12, %v299_v21  ;;  %v308_v30 = vadd.f32 %v482_v14, %v300_v22  ;;  %v302_v31 = vmul.f32 %v470_v23, %v453_v0  ;;  %v489_v32 = vunpack.c.l.bf16 %v496_v20 }
  0x18   : > { %v313_v33 = vmax.f32 %v305_v25, 0.0  ;;  %v314_v34 = vmax.f32 %v306_v26, 0.0  ;;  %v309_v35 = vadd.f32 %v485_v19, %v301_v27  ;;  %v303_v36 = vmul.f32 %v473_v28, %v453_v0 }
  0x19   : > { %v315_v37 = vmax.f32 %v307_v29, 0.0  ;;  %v316_v38 = vmax.f32 %v308_v30, 0.0  ;;  %v310_v39 = vadd.f32 %v486_v24, %v302_v31  ;;  %v474_v40 = vunpack.c.h.bf16 %v493_v15 }
  0x1a   : > { %321 = vst [vmem:[%s257_s29] sm:$0xff] %v313_v33  ;;  %322 = vst [vmem:[%s257_s29 + $0x8] sm:$0xff] %v314_v34  ;;  %v317_v41 = vmax.f32 %v309_v35, 0.0  ;;  %v311_v42 = vadd.f32 %v489_v32, %v303_v36  ;;  %v490_v43 = vunpack.c.h.bf16 %v496_v20 }
  0x1b   : > { %323 = vst [vmem:[%s257_s29 + $0x10] sm:$0xff] %v315_v37  ;;  %324 = vst [vmem:[%s257_s29 + $0x18] sm:$0xff] %v316_v38  ;;  %v318_v44 = vmax.f32 %v310_v39, 0.0  ;;  %v304_v45 = vmul.f32 %v474_v40, %v453_v0 }
  0x1c   : > { %325 = vst [vmem:[%s257_s29 + $0x20] sm:$0xff] %v317_v41  ;;  %v319_v46 = vmax.f32 %v311_v42, 0.0 }
  0x1d   : > { %326 = vst [vmem:[%s257_s29 + $0x28] sm:$0xff] %v318_v44  ;;  %v312_v47 = vadd.f32 %v490_v43, %v304_v45 }
  0x1e   : > { %327 = vst [vmem:[%s257_s29 + $0x30] sm:$0xff] %v319_v46 }
  0x1f   : > { %v320_v48 = vmax.f32 %v312_v47, 0.0 }
  0x21   : > { %328 = vst [vmem:[%s257_s29 + $0x38] sm:$0xff] %v320_v48 }
  0x22 PF: > { %s13_s14 = sadd.s32 1, %s543_s14   ;;  %s613_s12 = smov %s539_s13 }
  0x23   : > { %p10_p5 = scmp.ge.s32.totalorder %s13_s14, 4   ;;  %s614_s13 = smov %s616_s15 }
  0x25   :  { %12 = sbr.rel (!%p10_p5) target bundleno = 2 (0x2), region = 68 }

// kernel: basic_block_forward.4
= control target key start
LH: loop header
LB: loop body
LE: loop exit
PB: predicated region body
PF: predicated region fallthrough
CT: control target
= control target key end

     0   :  { %11 = vsyncpa [#allocation3], 0  ;;  %s3041_s0 = inlined_call_operand.vmem [shape: bf16[2,78,64], index: 0, kind: input, shape index: {}]   ;;  %s3042_s1 = inlined_call_operand.vmem [shape: bf16[960,128], index: 1, kind: input, shape index: {}]   ;;  %s3043_s2 = inlined_call_operand.vmem [shape: f32[1,128], index: 2, kind: input, shape index: {}]   ;;  %s3044_s3 = inlined_call_operand.vmem [shape: f32[1,128], index: 3, kind: input, shape index: {}]   ;;  %s3045_s4 = inlined_call_operand.vmem [shape: bf16[2,64,128], index: 4, kind: output, shape index: {0}]   ;;  %s3046_s5 = inlined_call_operand.hbm [shape: f32[2,1,128], index: 5, kind: output, shape index: {1}]  }
   0x1   :  { %13 = vsyncpa [#allocation3 + $0x1], 0  ;;  %s2368_s18 = smov 0   ;;  %s2370_s19 = smov 0  }
   0x2   :  { %s2372_s20 = smov 0   ;;  %s2374_s21 = smov 0  }
   0x3   :  { %s2376_s22 = smov 0   ;;  %s2378_s23 = smov 0  }
   0x4 LB: > { %s1847_s24 = sadd.s32 4294967295, %s2333_s23   ;;  %s1848_s25 = sadd.s32 4294967294, %s2333_s23   ;;  %s2333_s23 = sphi %s2378_s23, %s19_s23   ;;  %s2329_s22 = sphi %s2376_s22, %s3053_s22   ;;  %s2325_s21 = sphi %s2374_s21, %s3052_s21   ;;  %s2321_s20 = sphi %s2372_s20, %s3051_s20   ;;  %s2317_s19 = sphi %s2370_s19, %s3050_s19   ;;  %s2313_s18 = sphi %s2368_s18, %s3049_s18  }
   0x5   : > { %s31_s26 = sadd.s32 1, %s2329_s22  ;;  %s172_s27 = sadd.s32 1, %s2321_s20 }
   0x6   : > { %p33_p0 = scmp.ge.s32.totalorder %s31_s26, 2  ;;  %p182_p1 = scmp.ne.s32.totalorder %s2321_s20, %s2317_s19 }
   0x7   : > { %p183_p2 = scmp.eq.s32.totalorder %s1847_s24, 1  ;;  %p188_p3 = scmp.ne.s32.totalorder %s2317_s19, %s2313_s18 }
   0x8   : > { %s3055_s26 = smov (%p33_p0, %s31_s26), 0  ;;  %p189_p5 = scmp.eq.s32.totalorder %s1848_s25, 1 }
   0x9   : > { %p2408_p4 = por %p183_p2, %p182_p1  ;;  %s167_s29 = ssub.s32 %s2329_s22, %s3055_s26 }
   0xa   : > { %p1854_p6 = scmp.ge.s32.totalorder %s2333_s23, 1  ;;  %p170_p7 = scmp.eq.s32.totalorder %s167_s29, 0 }
   0xb   : > { %p2415_p8 = por %p189_p5, %p188_p3  ;;  %p234_p9 = scmp.lt.s32.totalorder %s2333_s23, 3 }
   0xc   : > { %s2421_s6 = scalar_select %p170_p7, %s2321_s20, %s172_s27  }
   0xd   : > { %p235_p10 = pnand %p1854_p6, %p234_p9 }
   0xe   : > { %p279_p11 = scmp.lt.s32.totalorder (!%p235_p10), %s2325_s21, 1  ;;  %v2190_v0 = vld [vmem:[%s3042_s1 + $0x40] sm:$0xff] (!%p235_p10)   ;;  %v2192_v2 = vld [vmem:[%s3042_s1 + $0x48] sm:$0xff] (!%p235_p10)   ;;  %v2195_v5 = vld [vmem:[%s3042_s1 + $0x50] sm:$0xff] (!%p235_p10)   ;;  %vm400_vm0 = vsmask.f32 (!%p235_p10), 6400 }
   0xf   : > { %238 = sbr.rel (%p235_p10) target bundleno = 481 (0x1e1), region = 36  ;;  %v2191_v1 = vld [vmem:[%s3042_s1] sm:$0xff] (!%p235_p10)   ;;  %2032 = vmatprep.subr.bf16.mxu1 (!%p235_p10), %v2190_v0  ;;  %v2193_v3 = vld [vmem:[%s3042_s1 + $0x8] sm:$0xff] (!%p235_p10)   ;;  %vm339_vm1 = vsmask.f32 (!%p235_p10), 7424  ;;  %s2335_s10 = smov (!%p235_p10), 64  }
  0x10   : > { %2033 = vmatpush3.bf16.msra.mxu1 (!%p235_p10), %v2191_v1  ;;  %v2194_v4 = vld [vmem:[%s3042_s1 + $0xc0] sm:$0xff] (!%p235_p10)   ;;  %vm387_vm2 = vcmask (!%p235_p10), 1046528   ;;  %vm438_vm3 = vcmask (!%p235_p10), 523264   ;;  %vm622_vm4 = vcmask (!%p235_p10), 1045504   ;;  %s1957_s8 = sshll.u32 (!%p235_p10), %s2325_s21, 4 }
  0x11   : > { %2034 = vmatprep.subr.bf16.mxu1 (!%p235_p10), %v2192_v2  ;;  %1992 = vmatprep.subr.bf16.mxu0 (!%p235_p10), %v2194_v4  ;;  %s2994_s15 = scalar_lea.hbm (!%p235_p10), %s3046_s5, %s1957_s8 }
  0x14   : > { %2035 = vmatpush3.bf16.msra.mxu1 (!%p235_p10), %v2193_v3 }
  0x15   : > { %2036 = vmatprep.subr.bf16.mxu1 (!%p235_p10), %v2195_v5 }
  0x16   : > { %s2428_s9 = scalar_select %p279_p11, %s2325_s21, 1 }
  0x17   : > { %s2337_s21 = smov [#allocation2]  }
  0x18   : > { %s2112_s14 = smul.u32 40, %s2428_s9  ;;  %s1960_s24 = sshll.u32 %s2428_s9, 5 }
  0x19   : > { %s2968_s7 = scalar_lea.vmem %s3045_s4, %s1960_s24  ;;  %s277_s9 = sand.u32 1, %s2317_s19  }
  0x1a   : > { %s2446_s29 = scalar_lea.vmem %s3041_s0, %s2112_s14  ;;  %s278_s11 = scalar_lea.vmem [#allocation2], %s277_s9 }
  0x1b   : > { %v2452_v6 = vld [vmem:[%s2446_s29 + $0x8] sm:$0xf]  ;;  %v2455_v7 = vld [vmem:[%s2446_s29 + $0xc] sm:$0xf]  ;;  %v2458_v8 = vld [vmem:[%s2446_s29 + $0x10] sm:$0xf] }
  0x1c   : > { %v2461_v9 = vld [vmem:[%s2446_s29 + $0x14] sm:$0xf]  ;;  %v2465_v10 = vcombine.low %v2452_v6, %v2455_v7  ;;  %v2468_v11 = vld [vmem:[%s2446_s29 + $0x4] sm:$0xf]  ;;  %v314_v12 = vld [vmem:[%s2446_s29] sm:$0xe] }
  0x1d   : > { %v2473_v13 = vcombine.low %v2458_v8, %v2461_v9  ;;  %v2476_v14 = vcombine.low %v314_v12, %v2468_v11  ;;  %v501_v15 = vld [vmem:[%s2446_s29] sm:$0x8]  ;;  %v2494_v26 = vld [vmem:[%s2446_s29 + $0x18] sm:$0xf]  ;;  %v2497_v27 = vld [vmem:[%s2446_s29 + $0x1c] sm:$0xf] }
  0x1e   : > { %v305_v16 = vld [vmem:[%s2446_s29] sm:$0xf]  ;;  %v348_v17 = vshll.u32 %v2465_v10, 16  ;;  %v352_v18 = vshrl.u32 %v2465_v10, 16  ;;  %v2483_v19 = vcombine.low %v501_v15, %v2468_v11  ;;  %v2510_v46 = vcombine.low %v2494_v26, %v2497_v27  ;;  %v971_v4 = vld [vmem:[%s2446_s29 + $0x4] sm:$0xf] }
  0x1f   : > { %v2486_v20 = vcombine.low %v305_v16, %v2468_v11  ;;  %v356_v21 = vshll.u32 %v2473_v13, 16  ;;  %v360_v22 = vshrl.u32 %v2473_v13, 16  ;;  %v402_v23 = vshrl.u32 %v2476_v14, 16  ;;  %v499_v25 = vld [vmem:[%s2446_s29] sm:$0xc]  ;;  %s1708_s12 = sshll.u32 %s278_s11, 4  ;;  %s2996_s12 = int_to_ptr.vmem [resolvable:$true] %s1708_s12 }
  0x20   : > { %v405_v24 = vshll.u32 %v2476_v14, 16  ;;  %v409_v28 = vrot.slane %v352_v18, 1  ;;  %v410_v29 = vrot.slane %v348_v17, 2  ;;  %v542_v30 = vshrl.u32 %v2483_v19, 16  ;;  %v2513_v47 = vld [vmem:[%s2446_s29 + $0x20] sm:$0xf] }
  0x21   : > { %v545_v31 = vshll.u32 %v2483_v19, 16  ;;  %v413_v32 = vrot.slane %v360_v22, 1  ;;  %v414_v33 = vrot.slane %v356_v21, 2  ;;  %v404_v34 = vrot.slane %v402_v23, 1  ;;  %v2537_v5 = vld [vmem:[%s2446_s29 + $0x8] sm:$0xf] }
  0x22   : > { %v407_v35 = vrot.slane %v405_v24, 2  ;;  %v411_v36 = vor.u32 %v410_v29, %v409_v28  ;;  %v544_v37 = vrot.slane %v542_v30, 1  ;;  %v341_v41 = vshrl.u32 %v2486_v20, 16  ;;  %v2519_v52 = vld [vmem:[%s2446_s29 + $0x20] ss:$0 sps:$4 sm:$0x77]  }
  0x23   : > { %v547_v38 = vrot.slane %v545_v31, 2  ;;  %v2501_v39 = vor.u32 %v414_v33, %v413_v32  ;;  %v343_v42 = vshll.u32 %v2486_v20, 16  ;;  %v350_v44 = vrot.slane %v348_v17, 1  ;;  %v2531_v63 = vld [vmem:[%s2446_s29 + $0x20] ss:$0 sps:$4 sm:$0x33]  }
  0x24   : > { %v408_v40 = vor.u32 %v407_v35, %v404_v34  ;;  %v2506_v45 = vcombine.low %v499_v25, %v2468_v11  ;;  %v358_v51 = vrot.slane %v356_v21, 1  ;;  %v364_v58 = vshll.u32 %v2510_v46, 16  ;;  %v2196_v12 = vld [vmem:[%s3042_s1 + $0x80] sm:$0xff]   ;;  %v2198_v25 = vld [vmem:[%s3042_s1 + $0xc8] sm:$0xff]   ;;  %v2199_v32 = vld [vmem:[%s3042_s1 + $0x58] sm:$0xff]   ;;  %s2255_s16 = scalar_lea.vmem %s2996_s12, 16 }
  0x25   : > { %v548_v43 = vor.u32 %v547_v38, %v544_v37  ;;  %v416_v48 = vsel %vm400_vm0, %v411_v36, %v2501_v39  ;;  %v345_v50 = vrot.slane %v343_v42, 1  ;;  %v354_v55 = vor.u32 %v352_v18, %v350_v44  ;;  %v2545_v21 = vld [vmem:[%s2446_s29 + $0x20] ss:$0 sps:$4 sm:$0x11]   ;;  %1993 = vmatpush3.bf16.msra.mxu0 %v2196_v12  ;;  %v980_v31 = vld [vmem:[%s2446_s29 + $0x4] sm:$0xe]  ;;  %p2256_p12 = scmp.ne.s32.totalorder %s2996_s12, %s2255_s16 }
  0x26   : > { %v412_v49 = vsel %vm400_vm0, %v408_v40, %v411_v36  ;;  %432 = vrot.lane.b32.xlu1 %v416_v48, %s2335_s10  ;;  %v510_v53 = vshrl.u32 %v2506_v45, 16  ;;  %v512_v54 = vshll.u32 %v2506_v45, 16  ;;  %v368_v59 = vshrl.u32 %v2510_v46, 16  ;;  %v2563_v34 = vld [vmem:[%s2446_s29 + $0xc] sm:$0xff]   ;;  %1994 = vmatprep.subr.bf16.mxu0 %v2198_v25  ;;  %v1338_v40 = vld [vmem:[%s2446_s29 + $0x4] sm:$0xc] }
  0x27   : > { %430 = vrot.lane.b32.xlu0 %v412_v49, %s2335_s10  ;;  %v549_v56 = vsel %vm400_vm0, %v548_v43, %v411_v36  ;;  %v346_v57 = vor.u32 %v345_v50, %v341_v41  ;;  %v362_v61 = vor.u32 %v360_v22, %v358_v51  ;;  %v1868_v62 = vcombine.low %v2513_v47, %v2513_v47  ;;  %v2197_v22 = vld [vmem:[%s3042_s1 + $0x10] sm:$0xff]   ;;  %v2200_v41 = vld [vmem:[%s3042_s1 + $0x88] sm:$0xff]   ;;  %v2201_v49 = vld [vmem:[%s3042_s1 + $0x18] sm:$0xff]   ;;  %p2257_p13 = pnand %p2256_p12, %p2408_p4 }
  0x28   : > { %v514_v60 = vrot.slane %v512_v54, 1  ;;  %v417_v1 = vrot.slane %v368_v59, 1  ;;  %v418_v2 = vrot.slane %v364_v58, 2  ;;  %v518_v3 = vshll.u32 %v2519_v52, 16  ;;  %2037 = vmatpush3.bf16.msra.mxu1 %v2197_v22  ;;  %v2207_v25 = vld [vmem:[%s3042_s1 + $0x68] sm:$0xff]  }
  0x29   : > { %v351_v0 = vsel %vm339_vm1, %v346_v57, %v350_v44  ;;  %v366_v16 = vrot.slane %v364_v58, 1  ;;  %v551_v17 = vshrl.u32 %v1868_v62, 16  ;;  %v554_v18 = vshll.u32 %v1868_v62, 16  ;;  %2038 = vmatprep.subr.bf16.mxu1 %v2199_v32  ;;  %1995 = vmatpush3.bf16.msra.mxu0 %v2200_v41  ;;  %v2203_v57 = vld [vmem:[%s3042_s1 + $0x60] sm:$0xff]   ;;  %v2208_v32 = vld [vmem:[%s3042_s1 + $0x98] sm:$0xff]   ;;  %p2258_p0 = pneg %p2257_p13 }
  0x2a   : > { %559 = vrot.lane.b32.xlu1 %v549_v56, %s2335_s10  ;;  %v515_v15 = vor.u32 %v514_v60, %v510_v53  ;;  %v359_v23 = vsel %vm339_vm1, %v354_v55, %v358_v51  ;;  %v2551_v24 = vor.u32 %v418_v2, %v417_v1  ;;  %v422_v33 = vshrl.u32 %v2531_v63, 16  ;;  %v2202_v51 = vld [vmem:[%s3042_s1 + $0xd0] sm:$0xff]  }
  0x2b   : > { %376 = vrot.lane.b32.xlu0 %v351_v0, %s2335_s10  ;;  %v553_v29 = vrot.slane %v551_v17, 1  ;;  %v556_v30 = vrot.slane %v554_v18, 2  ;;  %v367_v35 = vsel %vm339_vm1, %v362_v61, %v366_v16  ;;  %v520_v36 = vrot.slane %v518_v3, 1  ;;  %v2597_v56 = vld [vmem:[%s2446_s29 + $0x14] sm:$0xff]   ;;  %v2616_v3 = vld [vmem:[%s2446_s29 + $0x1c] sm:$0xff]   ;;  %1996 = vmatprep.subr.bf16.mxu0 %v2202_v51 }
  0x2c   : > { %v516_v28 = vsel %vm339_vm1, %v515_v15, %v350_v44  ;;  %v425_v37 = vshll.u32 %v2531_v63, 16  ;;  %v2570_v38 = vcombine.low %v971_v4, %v2537_v5  ;;  %v420_v42 = vsel %vm400_vm0, %v2501_v39, %v2551_v24  ;;  %2039 = vmatpush3.bf16.msra.mxu1 %v2201_v49  ;;  %v2204_v61 = vld [vmem:[%s3042_s1 + $0x90] sm:$0xff]   ;;  %v2205_v4 = vld [vmem:[%s3042_s1 + $0x20] sm:$0xff]  }
  0x2d   : > { %v557_v43 = vor.u32 %v556_v30, %v553_v29  ;;  %v2579_v44 = vor.u32 %v368_v59, %v366_v16  ;;  %v2582_v48 = vcombine.low %v980_v31, %v2537_v5  ;;  %v372_v50 = vshll.u32 %v2545_v21, 16  ;;  %2040 = vmatprep.subr.bf16.mxu1 %v2203_v57  ;;  %v2622_v15 = vld [vmem:[%s2446_s29 + $0x24] ss:$0 sps:$4 sm:$0x77]   ;;  %1997 = vmatpush3.bf16.msra.mxu0 %v2204_v61  ;;  %v2206_v16 = vld [vmem:[%s3042_s1 + $0xd8] sm:$0xff]  }
  0x2e   : > { %525 = vrot.lane.b32.xlu1 %v516_v28, %s2335_s10  ;;  %v522_v39 = vshrl.u32 %v2519_v52, 16  ;;  %v424_v53 = vrot.slane %v422_v33, 1  ;;  %v1017_v54 = vshll.u32 %v2563_v34, 16  ;;  %v2594_v55 = vcombine.low %v1338_v40, %v2537_v5  ;;  %1998 = vmatprep.subr.bf16.mxu0 %v2206_v16 }
  0x2f   : > { %378 = vrot.lane.b32.xlu0 %v359_v23, %s2335_s10  ;;  %v427_v58 = vrot.slane %v425_v37, 2  ;;  %v1012_v59 = vshll.u32 %v2570_v38, 16  ;;  %v1021_v60 = vshrl.u32 %v2563_v34, 16  ;;  %v558_v62 = vsel %vm400_vm0, %v2551_v24, %v557_v43  ;;  %v2209_v37 = vld [vmem:[%s3042_s1 + $0x28] sm:$0xff]  }
  0x30   : > { %v521_v0 = vsel %vm339_vm1, %v2579_v44, %v520_v36  ;;  %v1069_v1 = vshrl.u32 %v2582_v48, 16  ;;  %v1072_v2 = vshll.u32 %v2582_v48, 16  ;;  %v374_v12 = vrot.slane %v372_v50, 1  ;;  %2041 = vmatpush3.bf16.msra.mxu1 %v2205_v4  ;;  %v2211_v50 = vld [vmem:[%s3042_s1 + $0x70] sm:$0xff]  }
  0x31   : > { %v524_v17 = vor.u32 %v522_v39, %v520_v36  ;;  %v1010_v18 = vshrl.u32 %v2570_v38, 16  ;;  %v1019_v22 = vrot.slane %v1017_v54, 1  ;;  %v1350_v23 = vshll.u32 %v2594_v55, 16  ;;  %2042 = vmatprep.subr.bf16.mxu1 %v2207_v25  ;;  %1999 = vmatpush3.bf16.msra.mxu0 %v2208_v32  ;;  %v2674_v25 = vld [vmem:[%s2446_s29 + $0x24] ss:$0 sps:$4 sm:$0x11]  }
  0x32   : > { %380 = vrot.lane.b32.xlu1 %v367_v35, %s2335_s10  ;;  %v428_v28 = vor.u32 %v427_v58, %v424_v53  ;;  %v1014_v29 = vrot.slane %v1012_v59, 1  ;;  %v1076_v30 = vrot.slane %v1021_v60, 1  ;;  %v1077_v31 = vrot.slane %v1017_v54, 2 }
  0x33   : > { %434 = vrot.lane.b32.xlu0 %v420_v42, %s2335_s10  ;;  %v1071_v33 = vrot.slane %v1069_v1, 1  ;;  %v1074_v35 = vrot.slane %v1072_v2, 2  ;;  %v1025_v36 = vshll.u32 %v2597_v56, 16  ;;  %v1348_v38 = vshrl.u32 %v2594_v55, 16  ;;  %v2210_v42 = vld [vmem:[%s3042_s1 + $0xe0] sm:$0xff]  }
  0x34   : > { %v1029_v40 = vshrl.u32 %v2597_v56, 16  ;;  %v1033_v41 = vshll.u32 %v2616_v3, 16  ;;  %v1352_v49 = vrot.slane %v1350_v23, 1  ;;  %2043 = vmatpush3.bf16.msra.mxu1 %v2209_v37  ;;  %v429_v51 = vsel %vm400_vm0, %v2551_v24, %v428_v28  ;;  %2000 = vmatprep.subr.bf16.mxu0 %v2210_v42  ;;  %v2662_v1 = vld [vmem:[%s2446_s29 + $0x24] ss:$0 sps:$4 sm:$0x33]  }
  0x35   : > { %v375_v39 = vsel %vm339_vm1, %v2579_v44, %v374_v12  ;;  %v1037_v53 = vshrl.u32 %v2616_v3, 16  ;;  %v1356_v54 = vshll.u32 %v2622_v15, 16  ;;  %v1015_v57 = vor.u32 %v1014_v29, %v1010_v18  ;;  %2044 = vmatprep.subr.bf16.mxu1 %v2211_v50  ;;  %v2213_v44 = vld [vmem:[%s3042_s1 + $0x30] sm:$0xff]   ;;  %v2216_v50 = vld [vmem:[%s3042_s1 + $0xa8] sm:$0xff]  }
  0x36   : > { %527 = vrot.lane.b32.xlu1 %v521_v0, %s2335_s10  ;;  %v1075_v58 = vor.u32 %v1074_v35, %v1071_v33  ;;  %v1078_v59 = vor.u32 %v1077_v31, %v1076_v30  ;;  %v1027_v61 = vrot.slane %v1025_v36, 1  ;;  %v1080_v24 = vrot.slane %v1029_v40, 1  ;;  %v2214_v33 = vld [vmem:[%s3042_s1 + $0xe8] sm:$0xff]  }
  0x37   : > { %561 = vrot.lane.b32.xlu0 %v558_v62, %s2335_s10  ;;  %v1035_v62 = vrot.slane %v1033_v41, 1  ;;  %v1081_v0 = vrot.slane %v1025_v36, 2  ;;  %v1023_v2 = vor.u32 %v1021_v60, %v1019_v22  ;;  %v1084_v4 = vrot.slane %v1037_v53, 1  ;;  %v2215_v36 = vld [vmem:[%s3042_s1 + $0x78] sm:$0xff]  }
  0x38   : > { %v1085_v12 = vrot.slane %v1033_v41, 2  ;;  %v1020_v16 = vsel %vm339_vm1, %v1015_v57, %v1019_v22  ;;  %v1353_v18 = vor.u32 %v1352_v49, %v1348_v38  ;;  %2045 = vmatpush3.bf16.msra.mxu1 %v2213_v44  ;;  %v1901_v23 = vcombine.low %v2468_v11, %v2452_v6 }
  0x39   : > { %v1089_v28 = vshrl.u32 %v2662_v1, 16  ;;  %v1092_v60 = vshll.u32 %v2662_v1, 16  ;;  %v1028_v30 = vsel %vm339_vm1, %v1023_v2, %v1027_v61  ;;  %v1031_v31 = vor.u32 %v1029_v40, %v1027_v61  ;;  %2046 = vmatprep.subr.bf16.mxu1 %v2215_v36 }
  0x3a   : > { %529 = vrot.lane.b32.xlu1 %v524_v17, %s2335_s10  ;;  %v1079_v17 = vsel %vm400_vm0, %v1075_v58, %v1078_v59  ;;  %v1354_v29 = vsel %vm339_vm1, %v1353_v18, %v1019_v22  ;;  %v1082_v32 = vor.u32 %v1081_v0, %v1080_v24  ;;  %v1358_v35 = vrot.slane %v1356_v54, 1  ;;  %v2219_v54 = vld [vmem:[%s3042_s1 + $0xb0] sm:$0xff]   ;;  %v2222_v24 = vld [vmem:[%s3042_s1 + $0xb8] sm:$0xff]  }
  0x3b   : > { %563 = vrot.lane.b32.xlu0 %v557_v43, %s2335_s10  ;;  %v2212_v43 = vld [vmem:[%s3042_s1 + $0xa0] sm:$0xff]   ;;  %v1039_v37 = vor.u32 %v1037_v53, %v1035_v62  ;;  %v1091_v38 = vrot.slane %v1089_v28, 1  ;;  %v1094_v22 = vrot.slane %v1092_v60, 2  ;;  %v1036_v41 = vsel %vm339_vm1, %v1031_v31, %v1035_v62  ;;  %v2218_v53 = vld [vmem:[%s3042_s1 + $0xf0] sm:$0xff]   ;;  %v2221_v62 = vld [vmem:[%s3042_s1 + $0xf8] sm:$0xff]  }
  0x3c   : > { %2001 = vmatpush3.bf16.msra.mxu0 %v2212_v43  ;;  %v1083_v40 = vsel %vm400_vm0, %v1078_v59, %v1082_v32  ;;  %v1086_v42 = vor.u32 %v1085_v12, %v1084_v4  ;;  %v1041_v49 = vshll.u32 %v2674_v25, 16  ;;  %v2336_v43 = vmov 0   ;;  %v2224_v4 = vld [vmem:[%s3042_s1 + $0x140] sm:$0xff]  }
  0x3d   : > { %2002 = vmatprep.subr.bf16.mxu0 %v2214_v33  ;;  %v1359_v57 = vsel %vm339_vm1, %v1039_v37, %v1358_v35  ;;  %v1095_v59 = vor.u32 %v1094_v22, %v1091_v38  ;;  %v1360_v0 = vshrl.u32 %v2622_v15, 16  ;;  %v1903_v12 = vcombine.low %v2461_v9, %v2494_v26 }
  0x3e   : > { %382 = vrot.lane.b32.xlu1 %v375_v39, %s2335_s10  ;;  %v1902_v39 = vcombine.low %v2455_v7, %v2458_v8  ;;  %v1087_v58 = vsel %vm400_vm0, %v1082_v32, %v1086_v42  ;;  %v1043_v61 = vrot.slane %v1041_v49, 1  ;;  %v388_v18 = vrot.slane %v2476_v14, 1 }
  0x3f   : > { %436 = vrot.lane.b32.xlu0 %v429_v51, %s2335_s10  ;;  %v2217_v51 = vld [vmem:[%s3042_s1 + $0x38] sm:$0xff]   ;;  %v1096_v44 = vsel %vm400_vm0, %v1086_v42, %v1095_v59  ;;  %v389_v28 = vrot.slane %v2465_v10, 1  ;;  %v391_v60 = vrot.slane %v2473_v13, 1  ;;  %v2749_v49 = vrot.slane %v2510_v46, 1 }
  0x40   : > { %2003 = vmatpush3.bf16.msra.mxu0 %v2216_v50  ;;  %2047 = vmatpush3.bf16.msra.mxu1 %v2217_v51  ;;  %v1044_v2 = vsel %vm339_vm1, %v1039_v37, %v1043_v61  ;;  %v2220_v37 = vld [vmem:[%s3042_s1 + $0x180] sm:$0xff]   ;;  %v2223_v50 = vld [vmem:[%s3042_s1 + $0x188] sm:$0xff]  }
  0x41   : > { %2004 = vmatprep.subr.bf16.mxu0 %v2218_v53  ;;  %1519 = vmatprep.subr.bf16.mxu1 %v2336_v43  ;;  %v392_v31 = vsel %vm387_vm2, %v389_v28, %v391_v60  ;;  %v394_v61 = vsel %vm387_vm2, %v391_v60, %v2749_v49 }
  0x42   : > { %1045 = vrot.lane.b32.xlu1 %v1020_v16, %s2335_s10  ;;  %v1362_v16 = vor.u32 %v1360_v0, %v1358_v35 }
  0x43   : > { %1097 = vrot.lane.b32.xlu0 %v1079_v17, %s2335_s10  ;;  %v1904_v17 = vcombine.low %v2497_v27, %v2513_v47 }
  0x44   : > { %2005 = vmatpush3.bf16.msra.mxu0 %v2219_v54 }
  0x45   : > { %2006 = vmatprep.subr.bf16.mxu0 %v2221_v62  ;;  %v2225_v62 = vld [vmem:[%s3042_s1 + $0x100] sm:$0xff]  }
  0x46   : > { %1363 = vrot.lane.b32.xlu1 %v1354_v29, %s2335_s10  ;;  %v390_v29 = vsel %vm387_vm2, %v388_v18, %v389_v28 }
  0x47   : > { %1047 = vrot.lane.b32.xlu0 %v1028_v30, %s2335_s10  ;;  %v534_v30 = vrot.slane %v2483_v19, 1 }
  0x48   : > { %2007 = vmatpush3.bf16.msra.mxu0 %v2222_v24  ;;  %v536_v24 = vrot.slane %v2519_v52, 1 }
  0x49   : > { %2072 = vmatprep.subr.bf16.mxu0 %v2224_v4  ;;  %v535_v14 = vsel %vm387_vm2, %v534_v30, %v389_v28  ;;  %v1340_v4 = vld [vmem:[%s2446_s29 + $0x4] sm:$0x8]  ;;  %v2228_v28 = vld [vmem:[%s3042_s1 + $0x108] sm:$0xff]   ;;  %s1692_s29 = scalar_lea.sflag [#allocation3], %s277_s9 }
  0x4a   : > { %1049 = vrot.lane.b32.xlu1 %v1036_v41, %s2335_s10  ;;  %v537_v60 = vsel %vm387_vm2, %v2749_v49, %v536_v24  ;;  %v1930_v30 = vcombine.low %v1340_v4, %v2537_v5  ;;  %v395_v5 = vrot.slane %v2545_v21, 1 }
  0x4b   : > { %1099 = vrot.lane.b32.xlu0 %v1083_v40, %s2335_s10 }
  0x4e   : > { %1365 = vrot.lane.b32.xlu1 %v1359_v57, %s2335_s10 }
  0x4f   : > { %1101 = vrot.lane.b32.xlu0 %v1087_v58, %s2335_s10 }
  0x52   : > { %1051 = vrot.lane.b32.xlu1 %v1044_v2, %s2335_s10 }
  0x53   : > { %1103 = vrot.lane.b32.xlu0 %v1096_v44, %s2335_s10 }
  0x57   : > { %1367 = vrot.lane.b32.xlu0 %v1362_v16, %s2335_s10  ;;  %s2259_s10 = sshll.u32 %s2337_s21, 4  ;;  %s2260_s10 = int_to_ptr.vmem [resolvable:$false] %s2259_s10 }
  0x58   : > { %s2261_s17 = scalar_lea.vmem %s2260_s10, 32  ;;  %p2262_p1 = scmp.lt.s32.totalorder %s2996_s12, %s2260_s10 }
  0x59   : > { %p2263_p2 = scmp.lt.s32.totalorder %s2261_s17, %s2255_s16 }
  0x5b   : > { %p2264_p3 = por %p2263_p2, %p2262_p1 }
  0x5d   : > { %p2265_p5 = pnand %p2264_p3, %p2258_p0 }
  0x98   : > { %v433_v32 = vpop.permute.xlu1 %432 }
  0x99   : > { %v431_v33 = vpop.permute.xlu0 %430  ;;  %v457_v36 = vsel %vm438_vm3, %v392_v31, %v433_v32 }
  0x9a   : > { %v453_v35 = vsel %vm438_vm3, %v390_v29, %v431_v33  ;;  %v627_v41 = vrot.slane %v457_v36, 2  ;;  %v2230_v29 = vld [vmem:[%s3042_s1 + $0x150] sm:$0xff]  }
  0x9b   : > { %938 = vmatprep.mubr.bf16.mxu1 %v453_v35 }
  0x9c   : > { %v560_v38 = vpop.permute.xlu1 %559 }
  0x9d   : > { %v377_v22 = vpop.permute.xlu0 %376  ;;  %v573_v19 = vsel %vm438_vm3, %v535_v14, %v560_v38  ;;  %v2232_v38 = vld [vmem:[%s3042_s1 + $0x1a0] sm:$0xff]  }
  0x9e   : > { %v440_v40 = vsel %vm438_vm3, %v2486_v20, %v377_v22  ;;  %v626_v42 = vrot.slane %v573_v19, 2  ;;  %v1059_v22 = vrot.slane %v2597_v56, 1 }
  0x9f   : > { %939 = vmatmul.mubr.bf16.vlgmr.msra.gmra.mrb[0].mxu1 %v440_v40 }
  0xa0   : > { %1520 = vmatpush1.bf16.msra.mxu1 %v2220_v37  ;;  %946 = vmatprep.mubr.bf16.mxu1 %v457_v36  ;;  %v526_v51 = vpop.permute.xlu1 %525  ;;  %v628_v54 = vsel %vm622_vm4, %v626_v42, %v627_v41  ;;  %v2231_v37 = vld [vmem:[%s3042_s1 + $0x110] sm:$0xff]   ;;  %v2233_v42 = vld [vmem:[%s3042_s1 + $0x158] sm:$0xff]  }
  0xa1   : > { %v379_v53 = vpop.permute.xlu0 %378  ;;  %1521 = vmatprep.subr.bf16.mxu1 %v2336_v43  ;;  %v566_v20 = vsel %vm438_vm3, %v2506_v45, %v526_v51  ;;  %777 = vmatprep.mubr.bf16.mxu0 %v628_v54  ;;  %v2226_v45 = vld [vmem:[%s3042_s1 + $0x190] sm:$0xff]   ;;  %v2234_v54 = vld [vmem:[%s3042_s1 + $0x118] sm:$0xff]  }
  0xa2   : > { %v443_v57 = vsel %vm438_vm3, %v2465_v10, %v379_v53  ;;  %v623_v58 = vrot.slane %v566_v20, 2  ;;  %v2227_v10 = vld [vmem:[%s3042_s1 + $0x148] sm:$0xff]   ;;  %v1057_v53 = vrot.slane %v2563_v34, 1 }
  0xa3   : > { %v624_v59 = vrot.slane %v443_v57, 2 }
  0xa4   : > { %1522 = vmatpush1.bf16.msra.mxu1 %v2223_v50  ;;  %v381_v0 = vpop.permute.xlu1 %380 }
  0xa5   : > { %v435_v44 = vpop.permute.xlu0 %434  ;;  %v625_v2 = vsel %vm622_vm4, %v623_v58, %v624_v59  ;;  %1523 = vmatprep.subr.bf16.mxu1 %v2336_v43  ;;  %v2777_v16 = vsel %vm438_vm3, %v2473_v13, %v381_v0  ;;  %v2229_v13 = vld [vmem:[%s3042_s1 + $0x198] sm:$0xff]   ;;  %v2235_v58 = vld [vmem:[%s3042_s1 + $0x1a8] sm:$0xff]   ;;  %v2237_v0 = vld [vmem:[%s3042_s1 + $0x120] sm:$0xff]  }
  0xa6   : > { %v461_v52 = vsel %vm438_vm3, %v394_v61, %v435_v44  ;;  %778 = vmatmul.mubr.bf16.vlgmr.msra.gmra.mrb[0].mxu0 %v625_v2  ;;  %v629_v31 = vrot.slane %v2777_v16, 2  ;;  %v2236_v61 = vld [vmem:[%s3042_s1 + $0x160] sm:$0xff]  }
  0xa7   : > { %v631_v18 = vrot.slane %v461_v52, 2  ;;  %947 = vmatmul.mubr.bf16.gmra.mrb[4].mxu1 %v443_v57  ;;  %2073 = vmatpush3.bf16.msra.mxu0 %v2225_v62  ;;  %v396_v57 = vsel %vm387_vm2, %v2749_v49, %v395_v5  ;;  %v2829_v62 = vsel %vm387_vm2, %v1057_v53, %v1059_v22 }
  0xa8   : > { %1524 = vmatpush1.bf16.msra.mxu1 %v2226_v45  ;;  %2074 = vmatprep.subr.bf16.mxu0 %v2227_v10  ;;  %v528_v14 = vpop.permute.xlu1 %527  ;;  %v630_v19 = vsel %vm622_vm4, %v624_v59, %v629_v31  ;;  %v1417_v2 = vrot.slane %v2829_v62, 2 }
  0xa9   : > { %v632_v32 = vsel %vm622_vm4, %v627_v41, %v631_v18  ;;  %1525 = vmatprep.subr.bf16.mxu1 %v2336_v43  ;;  %v562_v33 = vpop.permute.xlu0 %561  ;;  %954 = vmatprep.mubr.bf16.mxu1 %v461_v52  ;;  %v1372_v41 = vrot.slane %v1930_v30, 1  ;;  %v568_v50 = vsel %vm438_vm3, %v2510_v46, %v528_v14  ;;  %v2244_v14 = vld [vmem:[%s3042_s1 + $0x1c0] sm:$0xff]  }
  0xaa   : > { %785 = vmatprep.mubr.bf16.mxu0 %v632_v32  ;;  %v576_v35 = vsel %vm438_vm3, %v537_v60, %v562_v33  ;;  %v633_v45 = vrot.slane %v568_v50, 2  ;;  %v2240_v32 = vld [vmem:[%s3042_s1 + $0x128] sm:$0xff]  }
  0xab   : > { %2075 = vmatpush3.bf16.msra.mxu0 %v2228_v28  ;;  %v635_v36 = vrot.slane %v576_v35, 2  ;;  %v2243_v35 = vld [vmem:[%s3042_s1 + $0x130] sm:$0xff]  }
  0xac   : > { %1526 = vmatpush1.bf16.msra.mxu1 %v2229_v13  ;;  %2076 = vmatprep.subr.bf16.mxu0 %v2230_v29  ;;  %v530_v20 = vpop.permute.xlu1 %529  ;;  %v634_v28 = vsel %vm622_vm4, %v629_v31, %v633_v45  ;;  %v1056_v13 = vrot.slane %v2582_v48, 1 }
  0xad   : > { %1527 = vmatprep.subr.bf16.mxu1 %v2336_v43  ;;  %v636_v40 = vsel %vm622_vm4, %v631_v18, %v635_v36  ;;  %v564_v21 = vpop.permute.xlu0 %563  ;;  %v2239_v18 = vld [vmem:[%s3042_s1 + $0x168] sm:$0xff]   ;;  %v570_v29 = vsel %vm438_vm3, %v2531_v63, %v530_v20  ;;  %v2241_v63 = vld [vmem:[%s3042_s1 + $0x1b8] sm:$0xff]  }
  0xae   : > { %786 = vmatmul.mubr.bf16.gmra.mrb[4].mxu0 %v630_v19  ;;  %v579_v51 = vsel %vm438_vm3, %v536_v24, %v564_v21  ;;  %v1373_v24 = vsel %vm387_vm2, %v1372_v41, %v1057_v53  ;;  %v637_v48 = vrot.slane %v570_v29, 2  ;;  %v1058_v33 = vsel %vm387_vm2, %v1056_v13, %v1057_v53  ;;  %v2247_v19 = vld [vmem:[%s3042_s1 + $0x138] sm:$0xff]   ;;  %v2249_v53 = vld [vmem:[%s3042_s1 + $0x1d0] sm:$0xff]  }
  0xaf   : > { %955 = vmatmul.mubr.bf16.gmra.mrb[8].mxu1 %v2777_v16  ;;  %2077 = vmatpush3.bf16.msra.mxu0 %v2231_v37  ;;  %v639_v59 = vrot.slane %v579_v51, 2  ;;  %v1416_v4 = vrot.slane %v1373_v24, 2  ;;  %v2238_v16 = vld [vmem:[%s3042_s1 + $0x1b0] sm:$0xff]   ;;  %v2246_v37 = vld [vmem:[%s3042_s1 + $0x178] sm:$0xff]   ;;  %v1061_v21 = vrot.slane %v2616_v3, 1 }
  0xb0   : > { %1528 = vmatpush1.bf16.msra.mxu1 %v2232_v38  ;;  %793 = vmatprep.mubr.bf16.mxu0 %v636_v40  ;;  %v383_v44 = vpop.permute.xlu1 %382  ;;  %v638_v38 = vsel %vm622_vm4, %v633_v45, %v637_v48  ;;  %v2248_v40 = vld [vmem:[%s3042_s1 + $0x1c8] sm:$0xff]  }
  0xb1   : > { %2078 = vmatprep.subr.bf16.mxu0 %v2233_v42  ;;  %1529 = vmatprep.subr.bf16.mxu1 %v2336_v43  ;;  %v437_v49 = vpop.permute.xlu0 %436  ;;  %v640_v52 = vsel %vm622_vm4, %v635_v36, %v639_v59  ;;  %v449_v30 = vsel %vm438_vm3, %v2510_v46, %v383_v44  ;;  %v1418_v31 = vsel %vm622_vm4, %v1416_v4, %v1417_v2  ;;  %v2242_v46 = vld [vmem:[%s3042_s1 + $0x170] sm:$0xff]   ;;  %v1374_v59 = vrot.slane %v2622_v15, 1 }
  0xb2   : > { %v465_v10 = vsel %vm438_vm3, %v396_v57, %v437_v49  ;;  %v1062_v11 = vsel %vm387_vm2, %v1059_v22, %v1061_v21 }
  0xb3   : > { %2079 = vmatpush3.bf16.msra.mxu0 %v2234_v54  ;;  %962 = vmatprep.mubr.bf16.mxu1 %v465_v10  ;;  %v1375_v15 = vsel %vm387_vm2, %v1061_v21, %v1374_v59 }
  0xb4   : > { %1530 = vmatpush1.bf16.msra.mxu1 %v2235_v58  ;;  %2080 = vmatprep.subr.bf16.mxu0 %v2236_v61  ;;  %v1046_v41 = vpop.permute.xlu1 %1045  ;;  %v2250_v58 = vld [vmem:[%s3042_s1 + $0x1d8] sm:$0xff]   ;;  %v1425_v8 = vrot.slane %v1375_v15, 2 }
  0xb5   : > { %1531 = vmatprep.subr.bf16.mxu1 %v2336_v43  ;;  %v1098_v60 = vpop.permute.xlu0 %1097  ;;  %v1107_v50 = vsel %vm438_vm3, %v1901_v23, %v1046_v41 }
  0xb6   : > { %794 = vmatmul.mubr.bf16.gmra.mrb[8].mxu0 %v634_v28  ;;  %v1123_v5 = vsel %vm438_vm3, %v1058_v33, %v1098_v60 }
  0xb7   : > { %2081 = vmatpush3.bf16.msra.mxu0 %v2237_v0  ;;  %801 = vmatprep.mubr.bf16.mxu0 %v640_v52  ;;  %v1429_v52 = vrot.slane %v1374_v59, 2 }
  0xb8   : > { %1532 = vmatpush1.bf16.msra.mxu1 %v2238_v16  ;;  %2082 = vmatprep.subr.bf16.mxu0 %v2239_v18  ;;  %v1364_v51 = vpop.permute.xlu1 %1363 }
  0xb9   : > { %1533 = vmatprep.subr.bf16.mxu1 %v2336_v43  ;;  %963 = vmatmul.mubr.bf16.gmra.mrb[12].mxu1 %v449_v30  ;;  %v1048_v36 = vpop.permute.xlu0 %1047  ;;  %v1377_v20 = vsel %vm438_vm3, %v2594_v55, %v1364_v51  ;;  %v1421_v55 = vrot.slane %v1062_v11, 2 }
  0xba   : > { %1943 = vmatprep.mubr.msk.bf16.mxu1 %vm438_vm3, %v1418_v31  ;;  %v1378_v6 = vsel %vm438_vm3, %v2563_v34, %v1048_v36  ;;  %v1413_v23 = vrot.slane %v1377_v20, 2  ;;  %v1111_v45 = vsel %vm438_vm3, %v1902_v39, %v1048_v36 }
  0xbb   : > { %2083 = vmatpush3.bf16.msra.mxu0 %v2240_v32  ;;  %v1414_v57 = vrot.slane %v1378_v6, 2  ;;  %v1422_v49 = vsel %vm622_vm4, %v1417_v2, %v1421_v55  ;;  %v1426_v2 = vsel %vm622_vm4, %v1421_v55, %v1425_v8 }
  0xbc   : > { %1534 = vmatpush1.bf16.msra.mxu1 %v2241_v63  ;;  %2084 = vmatprep.subr.bf16.mxu0 %v2242_v46  ;;  %v1050_v34 = vpop.permute.xlu1 %1049 }
  0xbd   : > { %1535 = vmatprep.subr.bf16.mxu1 %v2336_v43  ;;  %v1100_v42 = vpop.permute.xlu0 %1099  ;;  %v1415_v24 = vsel %vm622_vm4, %v1413_v23, %v1414_v57  ;;  %v1379_v10 = vsel %vm438_vm3, %v2597_v56, %v1050_v34 }
  0xbe   : > { %802 = vmatmul.mubr.bf16.gmra.mrb[12].mxu0 %v638_v38  ;;  %v1127_v54 = vsel %vm438_vm3, %v2829_v62, %v1100_v42  ;;  %v1419_v39 = vrot.slane %v1379_v10, 2 }
  0xbf   : > { %2085 = vmatpush3.bf16.msra.mxu0 %v2243_v35  ;;  %1297 = vmatprep.mubr.bf16.mxu0 %v1123_v5 }
  0xc0   : > { %1536 = vmatpush1.bf16.msra.mxu1 %v2244_v14  ;;  %2086 = vmatprep.subr.bf16.mxu0 %v2246_v37  ;;  %v1366_v62 = vpop.permute.xlu1 %1365  ;;  %v1420_v56 = vsel %vm622_vm4, %v1414_v57, %v1419_v39 }
  0xc1   : > { %1537 = vmatprep.subr.bf16.mxu1 %v2336_v43  ;;  %v1102_v61 = vpop.permute.xlu0 %1101  ;;  %v1381_v4 = vsel %vm438_vm3, %v2616_v3, %v1366_v62 }
  0xc2   : > { %v1131_v22 = vsel %vm438_vm3, %v1062_v11, %v1102_v61  ;;  %v1423_v18 = vrot.slane %v1381_v4, 2 }
  0xc3   : > { %2087 = vmatpush3.bf16.msra.mxu0 %v2247_v19 }
  0xc4   : > { %1538 = vmatpush1.bf16.msra.mxu1 %v2248_v40  ;;  %v1052_v16 = vpop.permute.xlu1 %1051  ;;  %v1424_v28 = vsel %vm622_vm4, %v1419_v39, %v1423_v18 }
  0xc5   : > { %1539 = vmatprep.subr.bf16.mxu1 %v2336_v43  ;;  %v1104_v0 = vpop.permute.xlu0 %1103  ;;  %v1119_v9 = vsel %vm438_vm3, %v1904_v17, %v1052_v16 }
  0xc6   : > { %1298 = vmatmul.mubr.bf16.vlgmr.msra.gmra.mrb[16].mxu0 %v1107_v50 }
  0xc7   : > { %1305 = vmatprep.mubr.bf16.mxu0 %v1127_v54 }
  0xc8   : > { %1540 = vmatpush1.bf16.msra.mxu1 %v2249_v53 }
  0xc9   : > { %1541 = vmatprep.subr.bf16.mxu1 %v2336_v43  ;;  %v1063_v43 = vrot.slane %v2674_v25, 1  ;;  %v1115_v25 = vsel %vm438_vm3, %v1903_v12, %v1050_v34  ;;  %v1368_v26 = vpop.permute.xlu0 %1367  ;;  %v1430_v12 = vsel %vm622_vm4, %v1425_v8, %v1429_v52 }
  0xca   : > { %v1383_v3 = vsel %vm438_vm3, %v2662_v1, %v1368_v26 }
  0xcb   : > { %v1064_v7 = vsel %vm387_vm2, %v1061_v21, %v1063_v43  ;;  %v1427_v60 = vrot.slane %v1383_v3, 2 }
  0xcc   : > { %1542 = vmatpush1.bf16.msra.mxu1 %v2250_v58  ;;  %v1135_v44 = vsel %vm438_vm3, %v1064_v7, %v1104_v0 }
  0xcd   : > { %v1428_v13 = vsel %vm622_vm4, %v1423_v18, %v1427_v60 }
  0xce   : > { %1306 = vmatmul.mubr.bf16.gmra.mrb[20].mxu0 %v1111_v45 }
  0xcf   : > { %1552 = vmatmul.mubr.bf16.vlgmr.msra.gmra.mrb[16].mxu1 %v1415_v24  ;;  %1313 = vmatprep.mubr.bf16.mxu0 %v1131_v22 }
  0xd0   : > { %1944 = vmatprep.mubr.msk.bf16.mxu1 %vm438_vm3, %v1422_v49 }
  0xd6   : > { %1314 = vmatmul.mubr.bf16.gmra.mrb[24].mxu0 %v1115_v25 }
  0xd7   : > { %1560 = vmatmul.mubr.bf16.gmra.mrb[20].mxu1 %v1420_v56  ;;  %1321 = vmatprep.mubr.bf16.mxu0 %v1135_v44 }
  0xd8   : > { %1945 = vmatprep.mubr.msk.bf16.mxu1 %vm438_vm3, %v1426_v2 }
  0xde   : > { %1322 = vmatmul.mubr.bf16.gmra.mrb[28].mxu0 %v1119_v9 }
  0xdf   : > { %1568 = vmatmul.mubr.bf16.gmra.mrb[24].mxu1 %v1424_v28 }
  0xe0   : > { %1946 = vmatprep.mubr.msk.bf16.mxu1 %vm438_vm3, %v1430_v12 }
  0xe7   : > { %1576 = vmatmul.mubr.bf16.gmra.mrb[28].mxu1 %v1428_v13 }
 0x172   : > { %v2048_v29 = vpop.f32.mrb[0].mxu1 }
 0x173   : > { %v2049_v27 = vpop.f32.mrb[1].mxu1 }
 0x174   : > { %v2050_v47 = vadd.f32 %v2049_v27, %v2048_v29  ;;  %v2051_v17 = vpop.f32.mrb[2].mxu1  ;;  %v2953_v27 = vld [vmem:[%s3043_s2] ss:$0 sm:$0xff] }
 0x175   : > { %v2052_v30 = vpop.f32.mrb[3].mxu1 }
 0x176   : > { %v2053_v32 = vadd.f32 %v2052_v30, %v2051_v17 }
 0x179   : > { %v2008_v31 = vpop.f32.mrb[0].mxu0 }
 0x17a   : > { %v2009_v63 = vpop.f32.mrb[1].mxu0  ;;  %v2054_v46 = vpop.f32.mrb[4].mxu1 }
 0x17b   : > { %v2010_v48 = vadd.f32 %v2009_v63, %v2008_v31  ;;  %v2011_v33 = vpop.f32.mrb[2].mxu0  ;;  %v2055_v35 = vpop.f32.mrb[5].mxu1 }
 0x17c   : > { %v2056_v1 = vadd.f32 %v2055_v35, %v2054_v46  ;;  %v2012_v36 = vpop.f32.mrb[3].mxu0  ;;  %v2057_v14 = vpop.f32.mrb[6].mxu1  ;;  %v2958_v46 = vld [vmem:[%s3044_s3] ss:$0 sm:$0xff] }
 0x17d   : > { %v941_v37 = vadd.f32 %v2050_v47, %v2010_v48  ;;  %v2013_v5 = vadd.f32 %v2012_v36, %v2011_v33  ;;  %v2058_v38 = vpop.f32.mrb[7].mxu1 }
 0x17e   : > { %v2059_v41 = vadd.f32 %v2058_v38, %v2057_v14 }
 0x17f   : > { %v944_v19 = vadd.f32 %v2053_v32, %v2013_v5 }
 0x181   : > { %v2014_v40 = vpop.f32.mrb[4].mxu0 }
 0x182   : > { %v2015_v42 = vpop.f32.mrb[5].mxu0  ;;  %v2060_v21 = vpop.f32.mrb[8].mxu1 }
 0x183   : > { %v2016_v50 = vadd.f32 %v2015_v42, %v2014_v40  ;;  %v2017_v51 = vpop.f32.mrb[6].mxu0  ;;  %v2061_v53 = vpop.f32.mrb[9].mxu1 }
 0x184   : > { %v2062_v54 = vadd.f32 %v2061_v53, %v2060_v21  ;;  %v2018_v20 = vpop.f32.mrb[7].mxu0  ;;  %v2063_v6 = vpop.f32.mrb[10].mxu1 }
 0x185   : > { %v949_v11 = vadd.f32 %v2056_v1, %v2016_v50  ;;  %v2019_v23 = vadd.f32 %v2018_v20, %v2017_v51  ;;  %v2064_v57 = vpop.f32.mrb[11].mxu1 }
 0x186   : > { %v2065_v58 = vadd.f32 %v2064_v57, %v2063_v6 }
 0x187   : > { %v952_v55 = vadd.f32 %v2059_v41, %v2019_v23 }
 0x189   : > { %v2020_v59 = vpop.f32.mrb[8].mxu0 }
 0x18a   : > { %v2021_v61 = vpop.f32.mrb[9].mxu0 }
 0x18b   : > { %v2022_v34 = vadd.f32 %v2021_v61, %v2020_v59  ;;  %v2023_v24 = vpop.f32.mrb[10].mxu0 }
 0x18c   : > { %v2024_v22 = vpop.f32.mrb[11].mxu0  ;;  %v2066_v45 = vpop.f32.mrb[12].mxu1 }
 0x18d   : > { %v2944_v49 = vadd.f32 %v2062_v54, %v2022_v34  ;;  %v2025_v43 = vadd.f32 %v2024_v22, %v2023_v24  ;;  %v2067_v15 = vpop.f32.mrb[13].mxu1 }
 0x18e   : > { %v2068_v10 = vadd.f32 %v2067_v15, %v2066_v45  ;;  %v2069_v7 = vpop.f32.mrb[14].mxu1 }
 0x18f   : > { %v960_v8 = vadd.f32 %v2065_v58, %v2025_v43  ;;  %v2070_v39 = vpop.f32.mrb[15].mxu1 }
 0x190   : > { %v2071_v0 = vadd.f32 %v2070_v39, %v2069_v7 }
 0x191   : > { %v2026_v62 = vpop.f32.mrb[12].mxu0 }
 0x192   : > { %v2027_v44 = vpop.f32.mrb[13].mxu0 }
 0x193   : > { %v2028_v25 = vadd.f32 %v2027_v44, %v2026_v62  ;;  %v2029_v2 = vpop.f32.mrb[14].mxu0 }
 0x194   : > { %v2030_v56 = vpop.f32.mrb[15].mxu0 }
 0x195   : > { %v2946_v4 = vadd.f32 %v2068_v10, %v2028_v25  ;;  %v2031_v16 = vadd.f32 %v2030_v56, %v2029_v2 }
 0x197   : > { %v2948_v52 = vadd.f32 %v2071_v0, %v2031_v16 }
 0x199   : > { %v2088_v18 = vpop.f32.mrb[16].mxu0 }
 0x19a   : > { %v2089_v9 = vpop.f32.mrb[17].mxu0 }
 0x19b   : > { %v2090_v26 = vadd.f32 %v2089_v9, %v2088_v18  ;;  %v2091_v12 = vpop.f32.mrb[18].mxu0 }
 0x19c   : > { %v2092_v28 = vpop.f32.mrb[19].mxu0 }
 0x19d   : > { %v2093_v3 = vadd.f32 %v2092_v28, %v2091_v12  ;;  %v1330_v60 = vadd.f32 %v2090_v26, %v941_v37 }
 0x19f   : > { %v1331_v13 = vadd.f32 %v2093_v3, %v944_v19 }
 0x1a1   : > { %v2094_v29 = vpop.f32.mrb[20].mxu0 }
 0x1a2   : > { %v1553_v47 = vpop.f32.mrb[16].mxu1  ;;  %v2095_v17 = vpop.f32.mrb[21].mxu0 }
 0x1a3   : > { %v1584_v30 = vadd.f32 %v1553_v47, %v1330_v60  ;;  %v2096_v32 = vadd.f32 %v2095_v17, %v2094_v29  ;;  %v1555_v31 = vpop.f32.mrb[17].mxu1  ;;  %v2097_v63 = vpop.f32.mrb[22].mxu0 }
 0x1a4   : > { %v1556_v48 = vpop.f32.mrb[18].mxu1  ;;  %v2098_v33 = vpop.f32.mrb[23].mxu0 }
 0x1a5   : > { %v1598_v35 = vmul.f32 %v2953_v27, %v1584_v30  ;;  %v1585_v1 = vadd.f32 %v1556_v48, %v1331_v13  ;;  %v2099_v36 = vadd.f32 %v2098_v33, %v2097_v63  ;;  %v1558_v14 = vpop.f32.mrb[19].mxu1  ;;  %v1332_v37 = vadd.f32 %v2096_v32, %v949_v11 }
 0x1a7   : > { %v1612_v5 = vadd.f32 %v2958_v46, %v1598_v35  ;;  %v1599_v38 = vmul.f32 %v2953_v27, %v1585_v1  ;;  %v1333_v41 = vadd.f32 %v2099_v36, %v952_v55 }
 0x1a9   : > { %v1613_v19 = vadd.f32 %v2958_v46, %v1599_v38  ;;  %v2100_v40 = vpop.f32.mrb[24].mxu0  ;;  %v1620_v50 = vmax.f32 %v1612_v5, 0.0 }
 0x1aa   : > { %v1561_v42 = vpop.f32.mrb[20].mxu1  ;;  %v2101_v21 = vpop.f32.mrb[25].mxu0 }
 0x1ab   : > { %v1621_v51 = vmax.f32 %v1613_v19, 0.0  ;;  %v1586_v53 = vadd.f32 %v1561_v42, %v1332_v37  ;;  %v2102_v54 = vadd.f32 %v2101_v21, %v2100_v40  ;;  %v1563_v20 = vpop.f32.mrb[21].mxu1  ;;  %v2103_v6 = vpop.f32.mrb[26].mxu0 }
 0x1ac   : > { %v1564_v11 = vpop.f32.mrb[22].mxu1  ;;  %v2104_v23 = vpop.f32.mrb[27].mxu0 }
 0x1ad   : > { %v1972_v57 = vpack.c.bf16 %v1621_v51, %v1620_v50  ;;  %v1668_v58 = vadd.f32 %v1621_v51, %v1620_v50  ;;  %v1600_v55 = vmul.f32 %v2953_v27, %v1586_v53  ;;  %v1587_v59 = vadd.f32 %v1564_v11, %v1333_v41  ;;  %v1566_v61 = vpop.f32.mrb[23].mxu1 }
 0x1ae   : > { %v2105_v34 = vadd.f32 %v2104_v23, %v2103_v6  ;;  %v1334_v24 = vadd.f32 %v2102_v54, %v2944_v49 }
 0x1af   : > { %1973 = vst [vmem:[%s2968_s7] sm:$0xff] %v1972_v57   ;;  %v1614_v22 = vadd.f32 %v2958_v46, %v1600_v55  ;;  %v1601_v45 = vmul.f32 %v2953_v27, %v1587_v59 }
 0x1b0   : > { %v1335_v43 = vadd.f32 %v2105_v34, %v960_v8 }
 0x1b1   : > { %v1622_v15 = vmax.f32 %v1614_v22, 0.0  ;;  %v1615_v10 = vadd.f32 %v2958_v46, %v1601_v45  ;;  %v2106_v7 = vpop.f32.mrb[28].mxu0 }
 0x1b2   : > { %v1569_v39 = vpop.f32.mrb[24].mxu1  ;;  %v2107_v0 = vpop.f32.mrb[29].mxu0 }
 0x1b3   : > { %v1669_v62 = vadd.f32 %v1668_v58, %v1622_v15  ;;  %v1623_v44 = vmax.f32 %v1615_v10, 0.0  ;;  %v1588_v25 = vadd.f32 %v1569_v39, %v1334_v24  ;;  %v2108_v2 = vadd.f32 %v2107_v0, %v2106_v7  ;;  %v1571_v56 = vpop.f32.mrb[25].mxu1  ;;  %v2109_v16 = vpop.f32.mrb[30].mxu0 }
 0x1b4   : > { %v1572_v49 = vpop.f32.mrb[26].mxu1  ;;  %v2110_v18 = vpop.f32.mrb[31].mxu0 }
 0x1b5   : > { %v1977_v9 = vpack.c.bf16 %v1623_v44, %v1622_v15  ;;  %v1670_v26 = vadd.f32 %v1669_v62, %v1623_v44  ;;  %v1602_v12 = vmul.f32 %v2953_v27, %v1588_v25  ;;  %v1589_v8 = vadd.f32 %v1572_v49, %v1335_v43  ;;  %v1574_v28 = vpop.f32.mrb[27].mxu1 }
 0x1b6   : > { %v2111_v3 = vadd.f32 %v2110_v18, %v2109_v16  ;;  %v1336_v60 = vadd.f32 %v2108_v2, %v2946_v4 }
 0x1b7   : > { %1989 = vst [vmem:[%s2968_s7 + $0x8] sm:$0xff] %v1977_v9   ;;  %v1616_v13 = vadd.f32 %v2958_v46, %v1602_v12  ;;  %v1603_v29 = vmul.f32 %v2953_v27, %v1589_v8 }
 0x1b8   : > { %v1337_v47 = vadd.f32 %v2111_v3, %v2948_v52 }
 0x1b9   : > { %v1624_v17 = vmax.f32 %v1616_v13, 0.0  ;;  %v1617_v30 = vadd.f32 %v2958_v46, %v1603_v29 }
 0x1ba   : > { %v1577_v32 = vpop.f32.mrb[28].mxu1 }
 0x1bb   : > { %v1671_v31 = vadd.f32 %v1670_v26, %v1624_v17  ;;  %v1625_v63 = vmax.f32 %v1617_v30, 0.0  ;;  %v1590_v48 = vadd.f32 %v1577_v32, %v1336_v60  ;;  %v1579_v33 = vpop.f32.mrb[29].mxu1 }
 0x1bc   : > { %v1580_v35 = vpop.f32.mrb[30].mxu1 }
 0x1bd   : > { %v1982_v1 = vpack.c.bf16 %v1625_v63, %v1624_v17  ;;  %v1672_v4 = vadd.f32 %v1671_v31, %v1625_v63  ;;  %v1604_v36 = vmul.f32 %v2953_v27, %v1590_v48  ;;  %v1591_v14 = vadd.f32 %v1580_v35, %v1337_v47  ;;  %v1582_v37 = vpop.f32.mrb[31].mxu1 }
 0x1bf   : > { %1990 = vst [vmem:[%s2968_s7 + $0x10] sm:$0xff] %v1982_v1   ;;  %v1618_v52 = vadd.f32 %v2958_v46, %v1604_v36  ;;  %v1605_v5 = vmul.f32 %v2953_v27, %v1591_v14 }
 0x1c1   : > { %v1626_v38 = vmax.f32 %v1618_v52, 0.0  ;;  %v1619_v41 = vadd.f32 %v2958_v46, %v1605_v5 }
 0x1c3   : > { %v1673_v19 = vadd.f32 %v1672_v4, %v1626_v38  ;;  %v1627_v40 = vmax.f32 %v1619_v41, 0.0 }
 0x1c5   : > { %v1987_v42 = vpack.c.bf16 %v1627_v40, %v1626_v38  ;;  %v1674_v21 = vadd.f32 %v1673_v19, %v1627_v40 }
 0x1c7   : > { %1991 = vst [vmem:[%s2968_s7 + $0x18] sm:$0xff] %v1987_v42   ;;  %v1675_v50 = vrot.slane %v1674_v21, 4 }
 0x1c9   : > { %v1676_v51 = vadd.f32 %v1675_v50, %v1674_v21 }
 0x1cb   : > { %v1677_v53 = vrot.slane %v1676_v51, 2 }
 0x1cd   : > { %v1678_v54 = vadd.f32 %v1677_v53, %v1676_v51 }
 0x1cf   : > { %v1679_v20 = vrot.slane %v1678_v54, 1 }
 0x1d1   : > { %v1680_v6 = vadd.f32 %v1679_v20, %v1678_v54 }
 0x1d3   : > { %1682 = vst [vmem:[%s278_s11] sm:$0x1] %v1680_v6 }
 0x1d4   : > { %2268 = shalt.err (!%p2265_p5)
}
 0x1d5   : > { %s2269_s24 = scalar_lea.hbm %s2994_s15, 16  ;;  %s2273_s7 = scalar_lea.hbm %s3046_s5, 32 }
 0x1d6   : > { %p2270_p6 = scmp.ne.s32.totalorder %s2994_s15, %s2269_s24  ;;  %p2274_p10 = scmp.lt.u32.totalorder %s2994_s15, %s3046_s5 }
 0x1d7   : > { %p2275_p11 = scmp.lt.u32.totalorder %s2273_s7, %s2269_s24  ;;  %p2277_p13 = scmp.lt.u32.totalorder %s2269_s24, %s2994_s15 }
 0x1d8   : > { %p2271_p7 = pnand %p2270_p6, %p2408_p4 }
 0x1d9   : > { %p2276_p12 = por %p2275_p11, %p2274_p10 }
 0x1da   : > { %p2272_p9 = pneg %p2271_p7 }
 0x1db   : > { %p2278_p0 = por %p2277_p13, %p2276_p12 }
 0x1dd   : > { %p2279_p1 = pnand %p2278_p0, %p2272_p9 }
 0x1df   : > { %2282 = shalt.err (!%p2279_p1)
}
 0x1e0   : > { %2113 = dma.vmem_to_hbm [thread:$0]  (%p2408_p4), %s2996_s12, 16, %s2994_s15, %s1692_s29  }
 0x1e1 PF: > { %p2119_p2 = scmp.ge.s32.totalorder %s2333_s23, 2  ;;  %s1731_s11 = sand.u32 1, %s2313_s18  }
 0x1e2   : > { %s1732_s13 = scalar_lea.sflag [#allocation3], %s1731_s11 }
 0x1e3   : > { %p2116_p3 = pnand %p2119_p2, %p2415_p8 }
 0x1e5   : > { %2308 = dma.done.wait (!%p2116_p3), %s1732_s13, 16  }
 0x1e6   : > { %2310 = vsyncadd (!%p2116_p3), %s1732_s13, 4294967280  ;;  %s19_s23 = sadd.s32 1, %s2333_s23   ;;  %s3049_s18 = smov %s2317_s19 }
 0x1e7   : > { %p16_p5 = scmp.ge.s32.totalorder %s19_s23, 4   ;;  %s3050_s19 = smov %s2321_s20 }
 0x1e8   : > { %s3051_s20 = smov %s2421_s6  ;;  %s3052_s21 = smov %s2329_s22 }
 0x1e9   : > { %s3053_s22 = smov %s3055_s26  ;;  %18 = sbr.rel (!%p16_p5) target bundleno = 4 (0x4), region = 92 }
 0x1f0   :  { %1736 = vsyncpa [#allocation3], 1 }
 0x1f1   :  { %1738 = vsyncpa [#allocation3 + $0x1], 1 }

// kernel: basic_block_forward.5
= control target key start
LH: loop header
LB: loop body
LE: loop exit
PB: predicated region body
PF: predicated region fallthrough
CT: control target
= control target key end

     0   :  { %s3241_s18 = smov 0   ;;  %s3243_s19 = smov 0   ;;  %s3940_s0 = inlined_call_operand.vmem [shape: bf16[2,78,128], index: 0, kind: input, shape index: {}]   ;;  %s3941_s1 = inlined_call_operand.vmem [shape: bf16[1920,128], index: 1, kind: input, shape index: {}]   ;;  %s3942_s2 = inlined_call_operand.vmem [shape: f32[1,128], index: 2, kind: input, shape index: {}]   ;;  %s3943_s3 = inlined_call_operand.vmem [shape: f32[1,128], index: 3, kind: input, shape index: {}]   ;;  %s3944_s4 = inlined_call_operand.vmem [shape: bf16[2,64,128], index: 4, kind: output, shape index: {0}]   ;;  %s3945_s5 = inlined_call_operand.vmem [shape: f32[2,1,128], index: 5, kind: output, shape index: {1}]  }
   0x1   :  { %s3245_s20 = smov 0  }
   0x2 LB: > { %s28_s21 = sadd.s32 1, %s3205_s19  ;;  %p2507_p0 = scmp.ge.s32.totalorder %s3209_s20, 1  ;;  %s3209_s20 = sphi %s3245_s20, %s16_s20   ;;  %s3205_s19 = sphi %s3243_s19, %s3947_s19   ;;  %s3201_s18 = sphi %s3241_s18, %s3946_s18  }
   0x3   : > { %p30_p1 = scmp.ge.s32.totalorder %s28_s21, 2  ;;  %p231_p2 = scmp.lt.s32.totalorder %s3209_s20, 3 }
   0x5   : > { %s3949_s21 = smov (%p30_p1, %s28_s21), 0  ;;  %p232_p3 = pnand %p2507_p0, %p231_p2 }
   0x6   : > { %v3041_v0 = vld [vmem:[%s3941_s1 + $0xc0] sm:$0xff] (!%p232_p3)   ;;  %v3045_v4 = vld [vmem:[%s3941_s1 + $0xc8] sm:$0xff] (!%p232_p3)   ;;  %v3049_v8 = vld [vmem:[%s3941_s1 + $0xd0] sm:$0xff] (!%p232_p3)   ;;  %p278_p4 = scmp.lt.s32.totalorder (!%p232_p3), %s3201_s18, 1  ;;  %vm346_vm0 = vsmask.f32 (!%p232_p3), 7424 }
   0x7   : > { %235 = sbr.rel (%p232_p3) target bundleno = 400 (0x190), region = 36  ;;  %v3042_v1 = vld [vmem:[%s3941_s1 + $0x40] sm:$0xff] (!%p232_p3)   ;;  %2700 = vmatprep.subr.bf16.mxu0 (!%p232_p3), %v3041_v0  ;;  %v3046_v5 = vld [vmem:[%s3941_s1 + $0x48] sm:$0xff] (!%p232_p3)   ;;  %v3050_v9 = vld [vmem:[%s3941_s1 + $0x50] sm:$0xff] (!%p232_p3)   ;;  %vm475_vm1 = vcmask (!%p232_p3), 1046528   ;;  %vm880_vm2 = vcmask (!%p232_p3), 1045504  }
   0x8   : > { %v3043_v2 = vld [vmem:[%s3941_s1 + $0x80] sm:$0xff] (!%p232_p3)   ;;  %2740 = vmatprep.subr.bf16.mxu1 (!%p232_p3), %v3042_v1  ;;  %v3047_v6 = vld [vmem:[%s3941_s1 + $0x88] sm:$0xff] (!%p232_p3)   ;;  %v3051_v10 = vld [vmem:[%s3941_s1 + $0x90] sm:$0xff] (!%p232_p3)   ;;  %vm1132_vm3 = vcmask (!%p232_p3), 1044480  }
   0x9   : > { %v3044_v3 = vld [vmem:[%s3941_s1] sm:$0xff] (!%p232_p3)   ;;  %2701 = vmatpush3.bf16.msra.mxu0 (!%p232_p3), %v3043_v2  ;;  %v3048_v7 = vld [vmem:[%s3941_s1 + $0x8] sm:$0xff] (!%p232_p3)   ;;  %v3052_v11 = vld [vmem:[%s3941_s1 + $0x10] sm:$0xff] (!%p232_p3)  }
   0xa   : > { %2741 = vmatpush3.bf16.msra.mxu1 (!%p232_p3), %v3044_v3  ;;  %2702 = vmatprep.subr.bf16.mxu0 (!%p232_p3), %v3045_v4  ;;  %v3053_v12 = vld [vmem:[%s3941_s1 + $0xd8] sm:$0xff] (!%p232_p3)   ;;  %v3057_v16 = vld [vmem:[%s3941_s1 + $0xe0] sm:$0xff] (!%p232_p3)   ;;  %v3061_v20 = vld [vmem:[%s3941_s1 + $0xe8] sm:$0xff] (!%p232_p3)  }
   0xb   : > { %2742 = vmatprep.subr.bf16.mxu1 (!%p232_p3), %v3046_v5  ;;  %v3054_v13 = vld [vmem:[%s3941_s1 + $0x58] sm:$0xff] (!%p232_p3)   ;;  %v3058_v17 = vld [vmem:[%s3941_s1 + $0x60] sm:$0xff] (!%p232_p3)   ;;  %v3062_v21 = vld [vmem:[%s3941_s1 + $0x68] sm:$0xff] (!%p232_p3)  }
   0xc   : > { %v3055_v14 = vld [vmem:[%s3941_s1 + $0x98] sm:$0xff] (!%p232_p3)   ;;  %v3059_v18 = vld [vmem:[%s3941_s1 + $0xa0] sm:$0xff] (!%p232_p3)   ;;  %v3063_v22 = vld [vmem:[%s3941_s1 + $0xa8] sm:$0xff] (!%p232_p3)  }
   0xd   : > { %2703 = vmatpush3.bf16.msra.mxu0 (!%p232_p3), %v3047_v6  ;;  %v3056_v15 = vld [vmem:[%s3941_s1 + $0x18] sm:$0xff] (!%p232_p3)   ;;  %v3060_v19 = vld [vmem:[%s3941_s1 + $0x20] sm:$0xff] (!%p232_p3)   ;;  %v3064_v23 = vld [vmem:[%s3941_s1 + $0x28] sm:$0xff] (!%p232_p3)  }
   0xe   : > { %2743 = vmatpush3.bf16.msra.mxu1 %v3048_v7  ;;  %2704 = vmatprep.subr.bf16.mxu0 %v3049_v8  ;;  %s3951_s18 = smov (!%p278_p4, %s3201_s18), 1  ;;  %v3065_v24 = vld [vmem:[%s3941_s1 + $0xf0] sm:$0xff]   ;;  %v3069_v28 = vld [vmem:[%s3941_s1 + $0xf8] sm:$0xff]   ;;  %v3077_v47 = vld [vmem:[%s3941_s1 + $0x140] sm:$0xff]  }
   0xf   : > { %2744 = vmatprep.subr.bf16.mxu1 %v3050_v9  ;;  %v3066_v25 = vld [vmem:[%s3941_s1 + $0x70] sm:$0xff]   ;;  %s3016_s7 = smul.u32 40, %s3951_s18  ;;  %v3070_v29 = vld [vmem:[%s3941_s1 + $0x78] sm:$0xff]   ;;  %v3079_v55 = vld [vmem:[%s3941_s1 + $0x1c0] sm:$0xff]   ;;  %s2668_s26 = sshll.u32 %s3951_s18, 5 }
  0x10   : > { %v3067_v26 = vld [vmem:[%s3941_s1 + $0xb0] sm:$0xff]   ;;  %v3071_v30 = vld [vmem:[%s3941_s1 + $0xb8] sm:$0xff]   ;;  %v3080_v63 = vld [vmem:[%s3941_s1 + $0x180] sm:$0xff]   ;;  %s3911_s29 = scalar_lea.vmem %s3944_s4, %s2668_s26 }
  0x11   : > { %2705 = vmatpush3.bf16.msra.mxu0 %v3051_v10  ;;  %v3068_v27 = vld [vmem:[%s3941_s1 + $0x30] sm:$0xff]   ;;  %s3359_s22 = scalar_lea.vmem %s3940_s0, %s3016_s7  ;;  %v3072_v31 = vld [vmem:[%s3941_s1 + $0x38] sm:$0xff]   ;;  %v3078_v8 = vld [vmem:[%s3941_s1 + $0x100] sm:$0xff]   ;;  %s306_s7 = scalar_lea.vmem %s3945_s5, %s3951_s18 }
  0x12   : > { %2745 = vmatpush3.bf16.msra.mxu1 %v3052_v11  ;;  %2706 = vmatprep.subr.bf16.mxu0 %v3053_v12  ;;  %v3368_v32 = vld [vmem:[%s3359_s22 + $0x4] sm:$0xf]  ;;  %v3371_v33 = vld [vmem:[%s3359_s22 + $0x8] sm:$0xf]  ;;  %v3374_v34 = vld [vmem:[%s3359_s22 + $0xc] sm:$0xf] }
  0x13   : > { %2746 = vmatprep.subr.bf16.mxu1 %v3054_v13  ;;  %v3377_v35 = vld [vmem:[%s3359_s22 + $0x10] sm:$0xf]  ;;  %v3380_v36 = vld [vmem:[%s3359_s22 + $0x14] sm:$0xf]  ;;  %v3384_v37 = vcombine.low %v3371_v33, %v3374_v34  ;;  %v2586_v38 = vcombine.low %v3368_v32, %v3371_v33  ;;  %v419_v40 = vld [vmem:[%s3359_s22] sm:$0xe] }
  0x14   : > { %v3390_v39 = vcombine.low %v3377_v35, %v3380_v36  ;;  %v310_v41 = vld [vmem:[%s3359_s22] sm:$0xf]  ;;  %v2587_v42 = vcombine.low %v3374_v34, %v3377_v35  ;;  %v2516_v45 = vcombine.low %v419_v40, %v3368_v32  ;;  %v3422_v4 = vld [vmem:[%s3359_s22 + $0x18] sm:$0xf]  ;;  %v317_v5 = vld [vmem:[%s3359_s22 + $0x1c] sm:$0xf] }
  0x15   : > { %2707 = vmatpush3.bf16.msra.mxu0 %v3055_v14  ;;  %v355_v43 = vshll.u32 %v3384_v37, 16  ;;  %v359_v44 = vshrl.u32 %v3384_v37, 16  ;;  %v2511_v46 = vcombine.low %v310_v41, %v3368_v32  ;;  %v477_v59 = vrot.slane %v3384_v37, 1  ;;  %v3083_v9 = vld [vmem:[%s3941_s1 + $0x1c8] sm:$0xff]   ;;  %v3090_v40 = vld [vmem:[%s3941_s1 + $0x158] sm:$0xff]   ;;  %v3167_v34 = vld [vmem:[%s3941_s1 + $0x360] sm:$0xff]  }
  0x16   : > { %2747 = vmatpush3.bf16.msra.mxu1 %v3056_v15  ;;  %2708 = vmatprep.subr.bf16.mxu0 %v3057_v16  ;;  %v363_v48 = vshll.u32 %v3390_v39, 16  ;;  %v428_v50 = vshrl.u32 %v2516_v45, 16  ;;  %v430_v51 = vshll.u32 %v2516_v45, 16  ;;  %v476_v62 = vrot.slane %v2516_v45, 1  ;;  %v3081_v14 = vld [vmem:[%s3941_s1 + $0x148] sm:$0xff]  }
  0x17   : > { %2748 = vmatprep.subr.bf16.mxu1 %v3058_v17  ;;  %v3404_v49 = vrot.slane %v355_v43, 1  ;;  %v348_v53 = vshrl.u32 %v2511_v46, 16  ;;  %v350_v54 = vshll.u32 %v2511_v46, 16  ;;  %v367_v2 = vshrl.u32 %v3390_v39, 16  ;;  %v3085_v17 = vld [vmem:[%s3941_s1 + $0x188] sm:$0xff]  }
  0x18   : > { %v365_v52 = vrot.slane %v363_v48, 1  ;;  %v432_v57 = vrot.slane %v430_v51, 1  ;;  %v3434_v10 = vcombine.low %v3422_v4, %v317_v5  ;;  %v478_v11 = vsel %vm475_vm1, %v476_v62, %v477_v59  ;;  %v3091_v48 = vld [vmem:[%s3941_s1 + $0x118] sm:$0xff]   ;;  %v3102_v62 = vld [vmem:[%s3359_s22 + $0x20] ss:$0 sps:$4 sm:$0x11]  }
  0x19   : > { %2709 = vmatpush3.bf16.msra.mxu0 %v3059_v18  ;;  %v361_v56 = vor.u32 %v359_v44, %v3404_v49  ;;  %v352_v58 = vrot.slane %v350_v54, 1  ;;  %v2588_v12 = vcombine.low %v3380_v36, %v3422_v4  ;;  %v3094_v44 = vld [vmem:[%s3941_s1 + $0x198] sm:$0xff]   ;;  %v490_v5 = vrot.slane %v3102_v62, 1  ;;  %v3176_v36 = vld [vmem:[%s3941_s1 + $0x370] sm:$0xff]  }
  0x1a   : > { %2749 = vmatpush3.bf16.msra.mxu1 %v3060_v19  ;;  %2710 = vmatprep.subr.bf16.mxu0 %v3061_v20  ;;  %v433_v61 = vor.u32 %v432_v57, %v428_v50  ;;  %v369_v15 = vor.u32 %v367_v2, %v365_v52  ;;  %v371_v16 = vshll.u32 %v3434_v10, 16  ;;  %v3088_v19 = vld [vmem:[%s3941_s1 + $0x1d0] sm:$0xff]   ;;  %v3082_v20 = vld [vmem:[%s3941_s1 + $0x108] sm:$0xff]   ;;  %v486_v50 = vrot.slane %v3434_v10, 1 }
  0x1b   : > { %2750 = vmatprep.subr.bf16.mxu1 %v3062_v21  ;;  %v3412_v60 = vsel %vm346_vm0, %v361_v56, %v365_v52  ;;  %v353_v1 = vor.u32 %v352_v58, %v348_v53  ;;  %v482_v21 = vrot.slane %v3390_v39, 1  ;;  %v3095_v52 = vld [vmem:[%s3941_s1 + $0x160] sm:$0xff]   ;;  %v3101_v56 = vld [vmem:[%s3941_s1 + $0x1e8] sm:$0xff]  }
  0x1c   : > { %v480_v0 = vrot.slane %v3412_v60, 1  ;;  %v434_v3 = vsel %vm346_vm0, %v433_v61, %v3404_v49  ;;  %v373_v18 = vrot.slane %v371_v16, 1  ;;  %v3096_v61 = vld [vmem:[%s3941_s1 + $0x120] sm:$0xff]   ;;  %v3103_v2 = vld [vmem:[%s3941_s1 + $0x1a8] sm:$0xff]  }
  0x1d   : > { %2711 = vmatpush3.bf16.msra.mxu0 %v3063_v22  ;;  %v479_v6 = vrot.slane %v434_v3, 1  ;;  %v358_v7 = vsel %vm346_vm0, %v353_v1, %v3404_v49  ;;  %v379_v1 = vshll.u32 %v3102_v62, 16  ;;  %v3100_v3 = vld [vmem:[%s3941_s1 + $0x128] sm:$0xff]   ;;  %v824_v16 = vld [vmem:[%s3359_s22] sm:$0xc] }
  0x1e   : > { %2751 = vmatpush3.bf16.msra.mxu1 %v3064_v23  ;;  %2712 = vmatprep.subr.bf16.mxu0 %v3065_v24  ;;  %v3456_v22 = vsel %vm346_vm0, %v369_v15, %v373_v18  ;;  %v3086_v23 = vld [vmem:[%s3941_s1 + $0x150] sm:$0xff]   ;;  %v375_v24 = vshrl.u32 %v3434_v10, 16  ;;  %v3110_v15 = vld [vmem:[%s3941_s1 + $0x1f8] sm:$0xff]  }
  0x1f   : > { %2752 = vmatprep.subr.bf16.mxu1 %v3066_v25  ;;  %791 = vmatprep.mubr.bf16.mxu1 %v358_v7  ;;  %v481_v13 = vsel %vm475_vm1, %v479_v6, %v480_v0  ;;  %v484_v25 = vrot.slane %v3456_v22, 1  ;;  %v381_v6 = vrot.slane %v379_v1, 1  ;;  %v3106_v7 = vld [vmem:[%s3941_s1 + $0x1f0] sm:$0xff]  }
  0x20   : > { %630 = vmatprep.mubr.bf16.mxu0 %v481_v13  ;;  %v3481_v41 = vor.u32 %v375_v24, %v373_v18  ;;  %v3105_v13 = vld [vmem:[%s3941_s1 + $0x130] sm:$0xff]   ;;  %v2550_v18 = vcombine.low %v824_v16, %v3368_v32 }
  0x21   : > { %2713 = vmatpush3.bf16.msra.mxu0 %v3067_v26  ;;  %v3087_v26 = vld [vmem:[%s3941_s1 + $0x110] sm:$0xff]  }
  0x22   : > { %2753 = vmatpush3.bf16.msra.mxu1 %v3068_v27  ;;  %2714 = vmatprep.subr.bf16.mxu0 %v3069_v28  ;;  %v3089_v27 = vld [vmem:[%s3941_s1 + $0x190] sm:$0xff]   ;;  %v3092_v28 = vld [vmem:[%s3941_s1 + $0x1d8] sm:$0xff]   ;;  %v835_v24 = vshll.u32 %v2550_v18, 16 }
  0x23   : > { %2754 = vmatprep.subr.bf16.mxu1 %v3070_v29  ;;  %v3473_v29 = vld [vmem:[%s3359_s22 + $0x20] ss:$0 sps:$4 sm:$0x33]  }
  0x24   : > { %v436_v43 = vshll.u32 %v3473_v29, 16  ;;  %v440_v45 = vshrl.u32 %v3473_v29, 16 }
  0x25   : > { %2715 = vmatpush3.bf16.msra.mxu0 %v3071_v30  ;;  %v485_v30 = vsel %vm475_vm1, %v480_v0, %v484_v25 }
  0x26   : > { %2755 = vmatpush3.bf16.msra.mxu1 %v3072_v31  ;;  %2780 = vmatprep.subr.bf16.mxu0 %v3077_v47  ;;  %v483_v31 = vsel %vm475_vm1, %v477_v59, %v482_v21  ;;  %v3097_v47 = vld [vmem:[%s3941_s1 + $0x1e0] sm:$0xff]   ;;  %v487_v59 = vsel %vm475_vm1, %v482_v21, %v486_v50  ;;  %v3109_v21 = vld [vmem:[%s3941_s1 + $0x138] sm:$0xff]  }
  0x27   : > { %2820 = vmatprep.subr.bf16.mxu1 %v3079_v55  ;;  %v3098_v55 = vld [vmem:[%s3941_s1 + $0x1a0] sm:$0xff]  }
  0x28   : > { %631 = vmatmul.mubr.bf16.vlgmr.msra.gmra.mrb[0].mxu0 %v478_v11  ;;  %v3107_v11 = vld [vmem:[%s3941_s1 + $0x1b0] sm:$0xff]  }
  0x29   : > { %792 = vmatmul.mubr.bf16.vlgmr.msra.gmra.mrb[0].mxu1 %v2511_v46  ;;  %2781 = vmatpush3.bf16.msra.mxu0 %v3078_v8  ;;  %v438_v46 = vrot.slane %v436_v43, 1  ;;  %v3104_v8 = vld [vmem:[%s3941_s1 + $0x170] sm:$0xff]   ;;  %v882_v43 = vrot.slane %v3384_v37, 2 }
  0x2a   : > { %2821 = vmatpush3.bf16.msra.mxu1 %v3080_v63  ;;  %799 = vmatprep.mubr.bf16.mxu1 %v3412_v60  ;;  %v3099_v63 = vld [vmem:[%s3941_s1 + $0x168] sm:$0xff]  }
  0x2b   : > { %2822 = vmatprep.subr.bf16.mxu1 %v3083_v9  ;;  %2782 = vmatprep.subr.bf16.mxu0 %v3081_v14  ;;  %v439_v51 = vsel %vm346_vm0, %v3481_v41, %v438_v46  ;;  %v442_v53 = vor.u32 %v440_v45, %v438_v46  ;;  %v382_v9 = vsel %vm346_vm0, %v3481_v41, %v381_v6  ;;  %v881_v45 = vrot.slane %v2550_v18, 2 }
  0x2c   : > { %638 = vmatprep.mubr.bf16.mxu0 %v485_v30  ;;  %v488_v54 = vrot.slane %v439_v51, 1  ;;  %v491_v14 = vsel %vm475_vm1, %v486_v50, %v490_v5  ;;  %v1139_v6 = vrot.slane %v3390_v39, 3 }
  0x2d   : > { %2783 = vmatpush3.bf16.msra.mxu0 %v3082_v20  ;;  %v492_v57 = vrot.slane %v442_v53, 1  ;;  %v1076_v20 = vld [vmem:[%s3359_s22] sm:$0x8]  ;;  %v889_v53 = vrot.slane %v3456_v22, 2 }
  0x2e   : > { %2823 = vmatpush3.bf16.msra.mxu1 %v3085_v17  ;;  %2784 = vmatprep.subr.bf16.mxu0 %v3086_v23  ;;  %v489_v58 = vsel %vm475_vm1, %v484_v25, %v488_v54  ;;  %v3108_v17 = vld [vmem:[%s3941_s1 + $0x178] sm:$0xff]   ;;  %v833_v23 = vshrl.u32 %v2550_v18, 16  ;;  %v3113_v25 = vld [vmem:[%s3941_s1 + $0x240] sm:$0xff]  }
  0x2f   : > { %2824 = vmatprep.subr.bf16.mxu1 %v3088_v19  ;;  %v493_v0 = vsel %vm475_vm1, %v488_v54, %v492_v57  ;;  %v3112_v19 = vld [vmem:[%s3941_s1 + $0x1b8] sm:$0xff]   ;;  %v1141_v57 = vrot.slane %v3456_v22, 3 }
  0x30   : > { %639 = vmatmul.mubr.bf16.gmra.mrb[4].mxu0 %v483_v31  ;;  %v3116_v31 = vld [vmem:[%s3941_s1 + $0x2c0] sm:$0xff]  }
  0x31   : > { %800 = vmatmul.mubr.bf16.gmra.mrb[4].mxu1 %v3384_v37  ;;  %2785 = vmatpush3.bf16.msra.mxu0 %v3087_v26  ;;  %v2568_v26 = vcombine.low %v1076_v20, %v3368_v32  ;;  %v3159_v32 = vld [vmem:[%s3941_s1 + $0x350] sm:$0xff]  }
  0x32   : > { %2825 = vmatpush3.bf16.msra.mxu1 %v3089_v27  ;;  %807 = vmatprep.mubr.bf16.mxu1 %v3456_v22  ;;  %v837_v27 = vrot.slane %v835_v24, 1  ;;  %v3140_v22 = vld [vmem:[%s3941_s1 + $0x270] sm:$0xff]  }
  0x33   : > { %2826 = vmatprep.subr.bf16.mxu1 %v3092_v28  ;;  %2786 = vmatprep.subr.bf16.mxu0 %v3090_v40  ;;  %v1085_v28 = vshrl.u32 %v2568_v26, 16  ;;  %v1087_v30 = vshll.u32 %v2568_v26, 16  ;;  %v885_v40 = vrot.slane %v3412_v60, 2 }
  0x34   : > { %646 = vmatprep.mubr.bf16.mxu0 %v489_v58 }
  0x35   : > { %2787 = vmatpush3.bf16.msra.mxu0 %v3091_v48  ;;  %v1089_v46 = vrot.slane %v1087_v30, 1  ;;  %v1134_v48 = vrot.slane %v3384_v37, 3  ;;  %v3117_v37 = vld [vmem:[%s3941_s1 + $0x280] sm:$0xff]   ;;  %v890_v1 = vsel %vm880_vm2, %v885_v40, %v889_v53 }
  0x36   : > { %2827 = vmatpush3.bf16.msra.mxu1 %v3094_v44  ;;  %2788 = vmatprep.subr.bf16.mxu0 %v3095_v52  ;;  %v838_v44 = vor.u32 %v837_v27, %v833_v23  ;;  %v1133_v52 = vrot.slane %v2568_v26, 3  ;;  %v3128_v23 = vld [vmem:[%s3941_s1 + $0x2d8] sm:$0xff]  }
  0x37   : > { %2828 = vmatprep.subr.bf16.mxu1 %v3097_v47  ;;  %v1137_v47 = vrot.slane %v3412_v60, 3  ;;  %v1090_v51 = vor.u32 %v1089_v46, %v1085_v28  ;;  %v1140_v18 = vsel %vm1132_vm3, %v1134_v48, %v1139_v6  ;;  %v3131_v28 = vld [vmem:[%s3941_s1 + $0x260] sm:$0xff]  }
  0x38   : > { %647 = vmatmul.mubr.bf16.gmra.mrb[8].mxu0 %v487_v59  ;;  %v839_v50 = vsel %vm346_vm0, %v838_v44, %v3404_v49  ;;  %v1135_v62 = vsel %vm1132_vm3, %v1133_v52, %v1134_v48  ;;  %v3134_v46 = vld [vmem:[%s3941_s1 + $0x2e0] sm:$0xff]  }
  0x39   : > { %808 = vmatmul.mubr.bf16.gmra.mrb[8].mxu1 %v3390_v39  ;;  %2789 = vmatpush3.bf16.msra.mxu0 %v3096_v61  ;;  %v884_v54 = vrot.slane %v839_v50, 2  ;;  %v1091_v60 = vsel %vm346_vm0, %v1090_v51, %v3404_v49  ;;  %v3118_v61 = vld [vmem:[%s3941_s1 + $0x248] sm:$0xff]   ;;  %v1142_v5 = vsel %vm1132_vm3, %v1137_v47, %v1141_v57  ;;  %v3135_v52 = vld [vmem:[%s3941_s1 + $0x2a0] sm:$0xff]  }
  0x3a   : > { %2829 = vmatpush3.bf16.msra.mxu1 %v3098_v55  ;;  %654 = vmatprep.mubr.bf16.mxu0 %v493_v0  ;;  %v3115_v55 = vld [vmem:[%s3941_s1 + $0x200] sm:$0xff]   ;;  %v1136_v59 = vrot.slane %v1091_v60, 3  ;;  %v3119_v49 = vld [vmem:[%s3941_s1 + $0x208] sm:$0xff]  }
  0x3b   : > { %2830 = vmatprep.subr.bf16.mxu1 %v3101_v56  ;;  %2790 = vmatprep.subr.bf16.mxu0 %v3099_v63  ;;  %v883_v56 = vsel %vm880_vm2, %v881_v45, %v882_v43  ;;  %v886_v58 = vsel %vm880_vm2, %v884_v54, %v885_v40  ;;  %v3120_v0 = vld [vmem:[%s3941_s1 + $0x2c8] sm:$0xff]   ;;  %v3133_v45 = vld [vmem:[%s3941_s1 + $0x220] sm:$0xff]  }
  0x3c   : > { %815 = vmatprep.mubr.bf16.mxu1 %v382_v9  ;;  %v1138_v63 = vsel %vm1132_vm3, %v1136_v59, %v1137_v47  ;;  %v3123_v9 = vld [vmem:[%s3941_s1 + $0x210] sm:$0xff]   ;;  %v3138_v60 = vld [vmem:[%s3941_s1 + $0x2e8] sm:$0xff]  }
  0x3d   : > { %2791 = vmatpush3.bf16.msra.mxu0 %v3100_v3  ;;  %v3121_v3 = vld [vmem:[%s3941_s1 + $0x288] sm:$0xff]  }
  0x3e   : > { %2831 = vmatpush3.bf16.msra.mxu1 %v3103_v2  ;;  %2792 = vmatprep.subr.bf16.mxu0 %v3104_v8  ;;  %v887_v2 = vrot.slane %v3390_v39, 2  ;;  %v891_v8 = vrot.slane %v3434_v10, 2  ;;  %v3124_v39 = vld [vmem:[%s3941_s1 + $0x2d0] sm:$0xff]  }
  0x3f   : > { %2832 = vmatprep.subr.bf16.mxu1 %v3106_v7  ;;  %v3122_v7 = vld [vmem:[%s3941_s1 + $0x250] sm:$0xff]  }
  0x40   : > { %655 = vmatmul.mubr.bf16.gmra.mrb[12].mxu0 %v491_v14  ;;  %v888_v14 = vsel %vm880_vm2, %v882_v43, %v887_v2  ;;  %v3130_v43 = vld [vmem:[%s3941_s1 + $0x298] sm:$0xff]   ;;  %v892_v50 = vsel %vm880_vm2, %v887_v2, %v891_v8 }
  0x41   : > { %816 = vmatmul.mubr.bf16.gmra.mrb[12].mxu1 %v3434_v10  ;;  %2793 = vmatpush3.bf16.msra.mxu0 %v3105_v13  ;;  %v3614_v13 = vld [vmem:[%s3359_s22 + $0x20] ss:$0 sps:$4 sm:$0x77]  }
  0x42   : > { %2833 = vmatpush3.bf16.msra.mxu1 %v3107_v11  ;;  %2794 = vmatprep.subr.bf16.mxu0 %v3108_v17  ;;  %v1143_v11 = vrot.slane %v3434_v10, 3  ;;  %v841_v16 = vshll.u32 %v3614_v13, 16  ;;  %v3622_v17 = vld [vmem:[%s3359_s22 + $0x20] sm:$0xf] }
  0x43   : > { %2834 = vmatprep.subr.bf16.mxu1 %v3110_v15  ;;  %1035 = vmatprep.mubr.bf16.mxu0 %v886_v58  ;;  %v3126_v15 = vld [vmem:[%s3941_s1 + $0x258] sm:$0xff]   ;;  %v2569_v20 = vcombine.low %v3622_v17, %v3622_v17  ;;  %v3151_v10 = vld [vmem:[%s3941_s1 + $0x340] sm:$0xff]  }
  0x44   : > { %1287 = vmatprep.mubr.bf16.mxu1 %v1138_v63  ;;  %v843_v24 = vrot.slane %v841_v16, 1  ;;  %v1147_v63 = vrot.slane %v3614_v13, 3 }
  0x45   : > { %2795 = vmatpush3.bf16.msra.mxu0 %v3109_v21  ;;  %v845_v21 = vshrl.u32 %v3614_v13, 16  ;;  %v1093_v26 = vshll.u32 %v2569_v20, 16 }
  0x46   : > { %2835 = vmatpush3.bf16.msra.mxu1 %v3112_v19  ;;  %2860 = vmatprep.subr.bf16.mxu0 %v3113_v25  ;;  %v3125_v19 = vld [vmem:[%s3941_s1 + $0x290] sm:$0xff]   ;;  %v3127_v25 = vld [vmem:[%s3941_s1 + $0x218] sm:$0xff]   ;;  %v844_v27 = vsel %vm346_vm0, %v3481_v41, %v843_v24 }
  0x47   : > { %2900 = vmatprep.subr.bf16.mxu1 %v3116_v31  ;;  %v847_v30 = vor.u32 %v845_v21, %v843_v24  ;;  %v1097_v31 = vshrl.u32 %v2569_v20, 16  ;;  %v893_v40 = vrot.slane %v844_v27, 2  ;;  %v1095_v44 = vrot.slane %v1093_v26, 1 }
  0x48   : > { %1036 = vmatmul.mubr.bf16.vlgmr.msra.gmra.mrb[16].mxu0 %v883_v56  ;;  %v3136_v56 = vld [vmem:[%s3941_s1 + $0x268] sm:$0xff]  }
  0x49   : > { %2861 = vmatpush3.bf16.msra.mxu0 %v3115_v55  ;;  %1288 = vmatmul.mubr.bf16.vlgmr.msra.gmra.mrb[16].mxu1 %v1135_v62  ;;  %v897_v47 = vrot.slane %v847_v30, 2  ;;  %v894_v48 = vsel %vm880_vm2, %v889_v53, %v893_v40  ;;  %v1096_v51 = vsel %vm346_vm0, %v3481_v41, %v1095_v44  ;;  %v1099_v54 = vor.u32 %v1097_v31, %v1095_v44  ;;  %v3137_v41 = vld [vmem:[%s3941_s1 + $0x228] sm:$0xff]   ;;  %v3156_v44 = vld [vmem:[%s3941_s1 + $0x380] sm:$0xff]  }
  0x4a   : > { %2862 = vmatprep.subr.bf16.mxu0 %v3118_v61  ;;  %2901 = vmatpush3.bf16.msra.mxu1 %v3117_v37  ;;  %v1145_v55 = vrot.slane %v1096_v51, 3  ;;  %v1144_v53 = vsel %vm1132_vm3, %v1139_v6, %v1143_v11  ;;  %v3139_v61 = vld [vmem:[%s3941_s1 + $0x2a8] sm:$0xff]   ;;  %v895_v62 = vrot.slane %v3473_v29, 2  ;;  %v3142_v29 = vld [vmem:[%s3941_s1 + $0x2f0] sm:$0xff]  }
  0x4b   : > { %1043 = vmatprep.mubr.bf16.mxu0 %v890_v1  ;;  %2902 = vmatprep.subr.bf16.mxu1 %v3120_v0  ;;  %v1149_v37 = vrot.slane %v1099_v54, 3  ;;  %v898_v59 = vsel %vm880_vm2, %v893_v40, %v897_v47  ;;  %v3144_v0 = vld [vmem:[%s3941_s1 + $0x278] sm:$0xff]   ;;  %v1328_v1 = vld [vmem:[%s3359_s22 + $0x4] sm:$0xf] }
  0x4c   : > { %1295 = vmatprep.mubr.bf16.mxu1 %v1142_v5  ;;  %v1146_v58 = vsel %vm1132_vm3, %v1141_v57, %v1145_v55  ;;  %v3141_v57 = vld [vmem:[%s3941_s1 + $0x230] sm:$0xff]   ;;  %v896_v2 = vsel %vm880_vm2, %v891_v8, %v895_v62  ;;  %v3704_v5 = vld [vmem:[%s3359_s22 + $0x8] sm:$0xf]  ;;  %v3145_v8 = vld [vmem:[%s3941_s1 + $0x238] sm:$0xff]  }
  0x4d   : > { %2863 = vmatpush3.bf16.msra.mxu0 %v3119_v49  ;;  %v1150_v49 = vsel %vm1132_vm3, %v1145_v55, %v1149_v37  ;;  %v2590_v6 = vcombine.low %v1328_v1, %v3704_v5  ;;  %v3760_v54 = vld [vmem:[%s3359_s22 + $0x1c] sm:$0xff]  }
  0x4e   : > { %2864 = vmatprep.subr.bf16.mxu0 %v3122_v7  ;;  %2903 = vmatpush3.bf16.msra.mxu1 %v3121_v3  ;;  %v3143_v3 = vld [vmem:[%s3941_s1 + $0x2b0] sm:$0xff]   ;;  %v1396_v62 = vshrl.u32 %v3760_v54, 16 }
  0x4f   : > { %2904 = vmatprep.subr.bf16.mxu1 %v3124_v39  ;;  %v3708_v7 = vld [vmem:[%s3359_s22 + $0xc] sm:$0xff]   ;;  %v3146_v39 = vld [vmem:[%s3941_s1 + $0x2f8] sm:$0xff]   ;;  %v1369_v13 = vshrl.u32 %v2590_v6, 16 }
  0x50   : > { %1044 = vmatmul.mubr.bf16.gmra.mrb[20].mxu0 %v888_v14  ;;  %v1371_v14 = vshll.u32 %v2590_v6, 16  ;;  %v1380_v16 = vshrl.u32 %v3708_v7, 16  ;;  %v1666_v40 = vrot.slane %v3708_v7, 1 }
  0x51   : > { %2865 = vmatpush3.bf16.msra.mxu0 %v3123_v9  ;;  %1296 = vmatmul.mubr.bf16.gmra.mrb[20].mxu1 %v1140_v18  ;;  %v1148_v9 = vsel %vm1132_vm3, %v1143_v11, %v1147_v63  ;;  %v3724_v11 = vld [vmem:[%s3359_s22 + $0x14] sm:$0xff]   ;;  %v1609_v18 = vld [vmem:[%s3359_s22 + $0x4] sm:$0xe] }
  0x52   : > { %2866 = vmatprep.subr.bf16.mxu0 %v3126_v15  ;;  %2905 = vmatpush3.bf16.msra.mxu1 %v3125_v19  ;;  %v1376_v15 = vshll.u32 %v3708_v7, 16  ;;  %v1373_v19 = vrot.slane %v1371_v14, 1  ;;  %v2611_v21 = vcombine.low %v1609_v18, %v3704_v5  ;;  %v1384_v24 = vshll.u32 %v3724_v11, 16 }
  0x53   : > { %2906 = vmatprep.subr.bf16.mxu1 %v3128_v23  ;;  %1051 = vmatprep.mubr.bf16.mxu0 %v894_v48  ;;  %v3149_v23 = vld [vmem:[%s3941_s1 + $0x2b8] sm:$0xff]   ;;  %v1388_v55 = vshrl.u32 %v3724_v11, 16  ;;  %v1675_v18 = vrot.slane %v3760_v54, 1 }
  0x54   : > { %1303 = vmatprep.mubr.bf16.mxu1 %v1146_v58  ;;  %v3728_v20 = vrot.slane %v1376_v15, 1  ;;  %v1374_v26 = vor.u32 %v1373_v19, %v1369_v13  ;;  %v1620_v30 = vshll.u32 %v2611_v21, 16  ;;  %v1386_v31 = vrot.slane %v1384_v24, 1  ;;  %v3174_v13 = vld [vmem:[%s3359_s22 + $0x24] ss:$0 sps:$4 sm:$0x11]  }
  0x55   : > { %2867 = vmatpush3.bf16.msra.mxu0 %v3127_v25  ;;  %v3154_v25 = vld [vmem:[%s3941_s1 + $0x300] sm:$0xff]   ;;  %v1665_v47 = vrot.slane %v2611_v21, 1 }
  0x56   : > { %2868 = vmatprep.subr.bf16.mxu0 %v3131_v28  ;;  %2907 = vmatpush3.bf16.msra.mxu1 %v3130_v43  ;;  %v1382_v27 = vor.u32 %v1380_v16, %v3728_v20  ;;  %v1618_v28 = vshrl.u32 %v2611_v21, 16  ;;  %v3155_v43 = vld [vmem:[%s3941_s1 + $0x348] sm:$0xff]   ;;  %v1400_v16 = vshll.u32 %v3174_v13, 16  ;;  %v3172_v19 = vld [vmem:[%s3941_s1 + $0x3a0] sm:$0xff]  }
  0x57   : > { %2908 = vmatprep.subr.bf16.mxu1 %v3134_v46  ;;  %v1622_v46 = vrot.slane %v1620_v30, 1 }
  0x58   : > { %1052 = vmatmul.mubr.bf16.gmra.mrb[24].mxu0 %v892_v50  ;;  %v3749_v48 = vsel %vm346_vm0, %v1382_v27, %v1386_v31  ;;  %v1402_v24 = vrot.slane %v1400_v16, 1  ;;  %v3186_v27 = vld [vmem:[%s3359_s22 + $0x1c] sm:$0xf] }
  0x59   : > { %2869 = vmatpush3.bf16.msra.mxu0 %v3133_v45  ;;  %1304 = vmatmul.mubr.bf16.gmra.mrb[24].mxu1 %v1144_v53  ;;  %v1379_v45 = vsel %vm346_vm0, %v1374_v26, %v3728_v20  ;;  %v1623_v50 = vor.u32 %v1622_v46, %v1618_v28  ;;  %v1669_v51 = vrot.slane %v3749_v48, 1  ;;  %v1390_v53 = vor.u32 %v1388_v55, %v1386_v31  ;;  %v3177_v31 = vld [vmem:[%s3941_s1 + $0x3a8] sm:$0xff]  }
  0x5a   : > { %2870 = vmatprep.subr.bf16.mxu0 %v3136_v56  ;;  %2909 = vmatpush3.bf16.msra.mxu1 %v3135_v52  ;;  %v3157_v52 = vld [vmem:[%s3941_s1 + $0x308] sm:$0xff]   ;;  %v2589_v28 = vcombine.low %v3186_v27, %v3622_v17  ;;  %v3179_v17 = vld [vmem:[%s3941_s1 + $0x378] sm:$0xff]  }
  0x5b   : > { %1059 = vmatprep.mubr.bf16.mxu0 %v898_v59  ;;  %2910 = vmatprep.subr.bf16.mxu1 %v3138_v60  ;;  %v1624_v56 = vsel %vm346_vm0, %v1623_v50, %v3728_v20  ;;  %v1667_v60 = vsel %vm475_vm1, %v1665_v47, %v1666_v40  ;;  %v3162_v59 = vld [vmem:[%s3941_s1 + $0x310] sm:$0xff]   ;;  %v3185_v47 = vld [vmem:[%s3359_s22 + $0x24] ss:$0 sps:$4 sm:$0x77]  }
  0x5c   : > { %1311 = vmatprep.mubr.bf16.mxu1 %v1150_v49  ;;  %v1668_v33 = vrot.slane %v1624_v56, 1  ;;  %v1877_v55 = vshll.u32 %v3185_v47, 16  ;;  %v3180_v56 = vld [vmem:[%s3941_s1 + $0x3b0] sm:$0xff]  }
  0x5d   : > { %2871 = vmatpush3.bf16.msra.mxu0 %v3137_v41  ;;  %v1392_v41 = vshll.u32 %v3760_v54, 16 }
  0x5e   : > { %2872 = vmatprep.subr.bf16.mxu0 %v3140_v22  ;;  %2911 = vmatpush3.bf16.msra.mxu1 %v3139_v61  ;;  %v1670_v37 = vsel %vm475_vm1, %v1668_v33, %v1669_v51  ;;  %v3163_v61 = vld [vmem:[%s3941_s1 + $0x358] sm:$0xff]   ;;  %v1671_v22 = vrot.slane %v3724_v11, 1 }
  0x5f   : > { %2912 = vmatprep.subr.bf16.mxu1 %v3142_v29  ;;  %v1394_v58 = vrot.slane %v1392_v41, 1  ;;  %v3793_v29 = vld [vmem:[%s3359_s22 + $0x24] ss:$0 sps:$4 sm:$0x33]  }
  0x60   : > { %1060 = vmatmul.mubr.bf16.gmra.mrb[28].mxu0 %v896_v2  ;;  %v3168_v2 = vld [vmem:[%s3941_s1 + $0x398] sm:$0xff]   ;;  %v1672_v6 = vsel %vm475_vm1, %v1666_v40, %v1671_v22  ;;  %v1676_v26 = vsel %vm475_vm1, %v1671_v22, %v1675_v18  ;;  %v2111_v40 = vld [vmem:[%s3359_s22 + $0x4] sm:$0x8] }
  0x61   : > { %2873 = vmatpush3.bf16.msra.mxu0 %v3141_v57  ;;  %1312 = vmatmul.mubr.bf16.gmra.mrb[28].mxu1 %v1148_v9  ;;  %v3782_v49 = vsel %vm346_vm0, %v1390_v53, %v1394_v58  ;;  %v3164_v57 = vld [vmem:[%s3941_s1 + $0x390] sm:$0xff]   ;;  %v3803_v35 = vor.u32 %v1396_v62, %v1394_v58  ;;  %v2647_v50 = vcombine.low %v2111_v40, %v3704_v5  ;;  %v1920_v53 = vrot.slane %v3749_v48, 2  ;;  %v3183_v22 = vld [vmem:[%s3941_s1 + $0x3b8] sm:$0xff]  }
  0x62   : > { %2874 = vmatprep.subr.bf16.mxu0 %v3144_v0  ;;  %2913 = vmatpush3.bf16.msra.mxu1 %v3143_v3  ;;  %v1673_v63 = vrot.slane %v3782_v49, 1  ;;  %v3165_v0 = vld [vmem:[%s3941_s1 + $0x318] sm:$0xff]   ;;  %v1630_v3 = vshrl.u32 %v3793_v29, 16 }
  0x63   : > { %2914 = vmatprep.subr.bf16.mxu1 %v3146_v39  ;;  %1568 = vmatprep.mubr.bf16.mxu0 %v1379_v45  ;;  %v3171_v39 = vld [vmem:[%s3941_s1 + $0x368] sm:$0xff]   ;;  %v2131_v41 = vrot.slane %v2647_v50, 3 }
  0x64   : > { %1819 = vmatprep.mubr.bf16.mxu1 %v1670_v37  ;;  %v1674_v1 = vsel %vm475_vm1, %v1669_v51, %v1673_v63  ;;  %v1679_v51 = vrot.slane %v3174_v13, 1  ;;  %v1924_v37 = vrot.slane %v3782_v49, 2 }
  0x65   : > { %2875 = vmatpush3.bf16.msra.mxu0 %v3145_v8  ;;  %v3170_v8 = vld [vmem:[%s3941_s1 + $0x320] sm:$0xff]  }
  0x66   : > { %2940 = vmatprep.subr.bf16.mxu0 %v3151_v10  ;;  %2915 = vmatpush3.bf16.msra.mxu1 %v3149_v23  ;;  %v3173_v23 = vld [vmem:[%s3941_s1 + $0x328] sm:$0xff]   ;;  %v1680_v58 = vsel %vm475_vm1, %v1675_v18, %v1679_v51 }
  0x67   : > { %2992 = vmatprep.subr.bf16.mxu1 %v3156_v44 }
  0x68   : > { %1569 = vmatmul.mubr.bf16.vlgmr.msra.gmra.mrb[32].mxu0 %v2586_v38  ;;  %v3160_v38 = vld [vmem:[%s3941_s1 + $0x388] sm:$0xff]  }
  0x69   : > { %2941 = vmatpush3.bf16.msra.mxu0 %v3154_v25  ;;  %1576 = vmatprep.mubr.bf16.mxu0 %v3749_v48  ;;  %v1860_v25 = vld [vmem:[%s3359_s22 + $0x4] sm:$0xc] }
  0x6a   : > { %2942 = vmatprep.subr.bf16.mxu0 %v3155_v43  ;;  %1820 = vmatmul.mubr.bf16.vlgmr.msra.gmra.mrb[32].mxu1 %v1667_v60  ;;  %v2629_v30 = vcombine.low %v1860_v25, %v3704_v5  ;;  %v1917_v5 = vrot.slane %v3708_v7, 2  ;;  %v2132_v60 = vrot.slane %v3708_v7, 3 }
  0x6b   : > { %2993 = vmatpush3.bf16.msra.mxu1 %v3156_v44  ;;  %1827 = vmatprep.mubr.bf16.mxu1 %v1674_v1  ;;  %v3178_v44 = vld [vmem:[%s3941_s1 + $0x330] sm:$0xff]   ;;  %v1922_v1 = vrot.slane %v3724_v11, 2 }
  0x6c   : > { %2994 = vmatprep.subr.bf16.mxu1 %v3160_v38  ;;  %v1869_v45 = vshrl.u32 %v2629_v30, 16  ;;  %v1871_v46 = vshll.u32 %v2629_v30, 16 }
  0x6d   : > { %2943 = vmatpush3.bf16.msra.mxu0 %v3157_v52 }
  0x6e   : > { %2944 = vmatprep.subr.bf16.mxu0 %v3159_v32  ;;  %v1873_v52 = vrot.slane %v1871_v46, 1  ;;  %v3181_v32 = vld [vmem:[%s3941_s1 + $0x338] sm:$0xff]  }
  0x6f   : > { %2995 = vmatpush3.bf16.msra.mxu1 %v3160_v38  ;;  %v1916_v38 = vrot.slane %v2629_v30, 2 }
  0x70   : > { %1577 = vmatmul.mubr.bf16.gmra.mrb[36].mxu0 %v2587_v42  ;;  %v1626_v42 = vshll.u32 %v3793_v29, 16  ;;  %2996 = vmatprep.subr.bf16.mxu1 %v3164_v57  ;;  %v1874_v33 = vor.u32 %v1873_v52, %v1869_v45 }
  0x71   : > { %2945 = vmatpush3.bf16.msra.mxu0 %v3162_v59  ;;  %1584 = vmatprep.mubr.bf16.mxu0 %v3782_v49  ;;  %v1918_v48 = vsel %vm880_vm2, %v1916_v38, %v1917_v5  ;;  %v2133_v49 = vsel %vm1132_vm3, %v2131_v41, %v2132_v60 }
  0x72   : > { %2946 = vmatprep.subr.bf16.mxu0 %v3163_v61  ;;  %v1628_v9 = vrot.slane %v1626_v42, 1  ;;  %1828 = vmatmul.mubr.bf16.gmra.mrb[36].mxu1 %v1672_v6  ;;  %v1875_v59 = vsel %vm346_vm0, %v1874_v33, %v3728_v20  ;;  %v1879_v61 = vrot.slane %v1877_v55, 1  ;;  %v2134_v20 = vrot.slane %v3724_v11, 3 }
  0x73   : > { %2997 = vmatpush3.bf16.msra.mxu1 %v3164_v57  ;;  %v1919_v62 = vrot.slane %v1875_v59, 2  ;;  %v1925_v57 = vsel %vm880_vm2, %v1920_v53, %v1924_v37  ;;  %v1881_v42 = vshrl.u32 %v3185_v47, 16  ;;  %v1923_v6 = vsel %vm880_vm2, %v1917_v5, %v1922_v1 }
  0x74   : > { %v1629_v14 = vsel %vm346_vm0, %v3803_v35, %v1628_v9  ;;  %v1632_v15 = vor.u32 %v1630_v3, %v1628_v9  ;;  %2998 = vmatprep.subr.bf16.mxu1 %v3168_v2 }
  0x75   : > { %2947 = vmatpush3.bf16.msra.mxu0 %v3165_v0  ;;  %v1677_v10 = vrot.slane %v1629_v14, 1  ;;  %v1921_v7 = vsel %vm880_vm2, %v1919_v62, %v1920_v53  ;;  %v2136_v0 = vrot.slane %v3760_v54, 3  ;;  %v1883_v9 = vor.u32 %v1881_v42, %v1879_v61 }
  0x76   : > { %2948 = vmatprep.subr.bf16.mxu0 %v3167_v34  ;;  %v1681_v4 = vrot.slane %v1632_v15, 1 }
  0x77   : > { %v1678_v21 = vsel %vm475_vm1, %v1673_v63, %v1677_v10  ;;  %2999 = vmatpush3.bf16.msra.mxu1 %v3168_v2  ;;  %v1880_v63 = vsel %vm346_vm0, %v3803_v35, %v1879_v61  ;;  %v2135_v2 = vsel %vm1132_vm3, %v2132_v60, %v2134_v20  ;;  %v2137_v3 = vsel %vm1132_vm3, %v2134_v20, %v2136_v0 }
  0x78   : > { %1585 = vmatmul.mubr.bf16.gmra.mrb[40].mxu0 %v2588_v12  ;;  %1835 = vmatprep.mubr.bf16.mxu1 %v1678_v21  ;;  %v1403_v12 = vsel %vm346_vm0, %v3803_v35, %v1402_v24  ;;  %v1682_v43 = vsel %vm475_vm1, %v1677_v10, %v1681_v4  ;;  %v1928_v34 = vrot.slane %v1880_v63, 2  ;;  %v1932_v11 = vrot.slane %v1883_v9, 2 }
  0x79   : > { %2949 = vmatpush3.bf16.msra.mxu0 %v3170_v8  ;;  %1592 = vmatprep.mubr.bf16.mxu0 %v1403_v12  ;;  %v2138_v8 = vrot.slane %v3185_v47, 3  ;;  %v1930_v10 = vrot.slane %v3793_v29, 2 }
  0x7a   : > { %2950 = vmatprep.subr.bf16.mxu0 %v3171_v39  ;;  %3000 = vmatprep.subr.bf16.mxu1 %v3172_v19  ;;  %v1929_v35 = vsel %vm880_vm2, %v1924_v37, %v1928_v34  ;;  %v1926_v39 = vrot.slane %v3760_v54, 2  ;;  %v1933_v15 = vsel %vm880_vm2, %v1928_v34, %v1932_v11 }
  0x7b   : > { %1836 = vmatmul.mubr.bf16.gmra.mrb[40].mxu1 %v1676_v26  ;;  %v2139_v13 = vsel %vm1132_vm3, %v2136_v0, %v2138_v8 }
  0x7c   : > { %3001 = vmatpush3.bf16.msra.mxu1 %v3172_v19  ;;  %1843 = vmatprep.mubr.bf16.mxu1 %v1682_v43  ;;  %v1927_v14 = vsel %vm880_vm2, %v1922_v1, %v1926_v39  ;;  %v1931_v16 = vsel %vm880_vm2, %v1926_v39, %v1930_v10 }
  0x7d   : > { %2951 = vmatpush3.bf16.msra.mxu0 %v3173_v23  ;;  %3002 = vmatprep.subr.bf16.mxu1 %v3177_v31 }
  0x7e   : > { %2952 = vmatprep.subr.bf16.mxu0 %v3176_v36 }
  0x80   : > { %1593 = vmatmul.mubr.bf16.gmra.mrb[44].mxu0 %v2589_v28  ;;  %3003 = vmatpush3.bf16.msra.mxu1 %v3177_v31 }
  0x81   : > { %2953 = vmatpush3.bf16.msra.mxu0 %v3178_v44  ;;  %3004 = vmatprep.subr.bf16.mxu1 %v3180_v56 }
  0x82   : > { %2954 = vmatprep.subr.bf16.mxu0 %v3179_v17  ;;  %2070 = vmatprep.mubr.bf16.mxu0 %v1921_v7 }
  0x83   : > { %1844 = vmatmul.mubr.bf16.gmra.mrb[44].mxu1 %v1680_v58 }
  0x84   : > { %3005 = vmatpush3.bf16.msra.mxu1 %v3180_v56  ;;  %3008 = vmatprep.mubr.bf16.mxu1 %v2133_v49 }
  0x85   : > { %2955 = vmatpush3.bf16.msra.mxu0 %v3181_v32  ;;  %3006 = vmatprep.subr.bf16.mxu1 %v3183_v22 }
  0x88   : > { %2071 = vmatmul.mubr.bf16.vlgmr.msra.gmra.mrb[48].mxu0 %v1918_v48  ;;  %3007 = vmatpush3.bf16.msra.mxu1 %v3183_v22 }
  0x89   : > { %2078 = vmatprep.mubr.bf16.mxu0 %v1925_v57 }
  0x8b   : > { %3009 = vmatmul.mubr.bf16.vlgmr.msra.gmra.mrb[48].mxu1 %v2135_v2 }
  0x8c   : > { %3012 = vmatprep.mubr.bf16.mxu1 %v2137_v3 }
  0x90   : > { %2079 = vmatmul.mubr.bf16.gmra.mrb[52].mxu0 %v1923_v6 }
  0x91   : > { %2086 = vmatprep.mubr.bf16.mxu0 %v1929_v35 }
  0x93   : > { %3013 = vmatmul.mubr.bf16.gmra.mrb[52].mxu1 %v2139_v13 }
  0x98   : > { %2087 = vmatmul.mubr.bf16.gmra.mrb[56].mxu0 %v1927_v14 }
  0x99   : > { %2094 = vmatprep.mubr.bf16.mxu0 %v1933_v15 }
  0xa0   : > { %2095 = vmatmul.mubr.bf16.gmra.mrb[60].mxu0 %v1931_v16 }
  0xfb   : > { %v2716_v21 = vpop.f32.mrb[0].mxu0 }
  0xfc   : > { %v2756_v18 = vpop.f32.mrb[0].mxu1  ;;  %v2717_v24 = vpop.f32.mrb[1].mxu0 }
  0xfd   : > { %v2757_v19 = vpop.f32.mrb[1].mxu1  ;;  %v2718_v4 = vadd.f32 %v2717_v24, %v2716_v21  ;;  %v2719_v12 = vpop.f32.mrb[2].mxu0 }
  0xfe   : > { %v2758_v23 = vadd.f32 %v2757_v19, %v2756_v18  ;;  %v2759_v54 = vpop.f32.mrb[2].mxu1  ;;  %v2720_v26 = vpop.f32.mrb[3].mxu0 }
  0xff   : > { %v2760_v36 = vpop.f32.mrb[3].mxu1  ;;  %v2721_v28 = vadd.f32 %v2720_v26, %v2719_v12 }
 0x100   : > { %v2761_v25 = vadd.f32 %v2760_v36, %v2759_v54  ;;  %v794_v27 = vadd.f32 %v2758_v23, %v2718_v4 }
 0x102   : > { %v797_v30 = vadd.f32 %v2761_v25, %v2721_v28 }
 0x103   : > { %v2722_v29 = vpop.f32.mrb[4].mxu0 }
 0x104   : > { %v2762_v31 = vpop.f32.mrb[4].mxu1  ;;  %v2723_v45 = vpop.f32.mrb[5].mxu0 }
 0x105   : > { %v2763_v40 = vpop.f32.mrb[5].mxu1  ;;  %v2724_v47 = vadd.f32 %v2723_v45, %v2722_v29  ;;  %v2725_v17 = vpop.f32.mrb[6].mxu0 }
 0x106   : > { %v2764_v43 = vadd.f32 %v2763_v40, %v2762_v31  ;;  %v2765_v44 = vpop.f32.mrb[6].mxu1  ;;  %v2726_v51 = vpop.f32.mrb[7].mxu0 }
 0x107   : > { %v2766_v46 = vpop.f32.mrb[7].mxu1  ;;  %v2727_v55 = vadd.f32 %v2726_v51, %v2725_v17 }
 0x108   : > { %v2767_v50 = vadd.f32 %v2766_v46, %v2765_v44  ;;  %v802_v52 = vadd.f32 %v2764_v43, %v2724_v47 }
 0x10a   : > { %v805_v56 = vadd.f32 %v2767_v50, %v2727_v55 }
 0x10b   : > { %v2728_v38 = vpop.f32.mrb[8].mxu0 }
 0x10c   : > { %v2768_v32 = vpop.f32.mrb[8].mxu1  ;;  %v2729_v41 = vpop.f32.mrb[9].mxu0 }
 0x10d   : > { %v2769_v33 = vpop.f32.mrb[9].mxu1  ;;  %v2730_v37 = vadd.f32 %v2729_v41, %v2728_v38  ;;  %v2731_v58 = vpop.f32.mrb[10].mxu0 }
 0x10e   : > { %v2770_v5 = vadd.f32 %v2769_v33, %v2768_v32  ;;  %v2771_v53 = vpop.f32.mrb[10].mxu1  ;;  %v2732_v61 = vpop.f32.mrb[11].mxu0 }
 0x10f   : > { %v2772_v60 = vpop.f32.mrb[11].mxu1  ;;  %v2733_v22 = vadd.f32 %v2732_v61, %v2731_v58 }
 0x110   : > { %v2773_v59 = vadd.f32 %v2772_v60, %v2771_v53  ;;  %v810_v62 = vadd.f32 %v2770_v5, %v2730_v37 }
 0x112   : > { %v813_v48 = vadd.f32 %v2773_v59, %v2733_v22 }
 0x113   : > { %v2734_v57 = vpop.f32.mrb[12].mxu0 }
 0x114   : > { %v2774_v7 = vpop.f32.mrb[12].mxu1  ;;  %v2735_v0 = vpop.f32.mrb[13].mxu0 }
 0x115   : > { %v2775_v49 = vpop.f32.mrb[13].mxu1  ;;  %v2736_v34 = vadd.f32 %v2735_v0, %v2734_v57  ;;  %v2737_v42 = vpop.f32.mrb[14].mxu0 }
 0x116   : > { %v2776_v20 = vadd.f32 %v2775_v49, %v2774_v7  ;;  %v2777_v63 = vpop.f32.mrb[14].mxu1  ;;  %v2738_v3 = vpop.f32.mrb[15].mxu0 }
 0x117   : > { %v2778_v1 = vpop.f32.mrb[15].mxu1  ;;  %v2739_v35 = vadd.f32 %v2738_v3, %v2737_v42 }
 0x118   : > { %v2779_v2 = vadd.f32 %v2778_v1, %v2777_v63  ;;  %v818_v6 = vadd.f32 %v2776_v20, %v2736_v34 }
 0x11a   : > { %v821_v9 = vadd.f32 %v2779_v2, %v2739_v35 }
 0x11b   : > { %v2796_v8 = vpop.f32.mrb[16].mxu0 }
 0x11c   : > { %v2797_v39 = vpop.f32.mrb[17].mxu0  ;;  %v2836_v14 = vpop.f32.mrb[16].mxu1 }
 0x11d   : > { %v2798_v11 = vadd.f32 %v2797_v39, %v2796_v8  ;;  %v2799_v13 = vpop.f32.mrb[18].mxu0  ;;  %v2837_v10 = vpop.f32.mrb[17].mxu1 }
 0x11e   : > { %v2800_v15 = vpop.f32.mrb[19].mxu0  ;;  %v2838_v19 = vadd.f32 %v2837_v10, %v2836_v14  ;;  %v2839_v21 = vpop.f32.mrb[18].mxu1 }
 0x11f   : > { %v1068_v16 = vadd.f32 %v2798_v11, %v794_v27  ;;  %v2801_v18 = vadd.f32 %v2800_v15, %v2799_v13  ;;  %v2840_v23 = vpop.f32.mrb[19].mxu1 }
 0x120   : > { %v2841_v36 = vadd.f32 %v2840_v23, %v2839_v21 }
 0x121   : > { %v1069_v54 = vadd.f32 %v2801_v18, %v797_v30  ;;  %v1320_v24 = vadd.f32 %v2838_v19, %v1068_v16 }
 0x123   : > { %v1321_v4 = vadd.f32 %v2841_v36, %v1069_v54  ;;  %v2802_v12 = vpop.f32.mrb[20].mxu0 }
 0x124   : > { %v2803_v25 = vpop.f32.mrb[21].mxu0  ;;  %v2842_v31 = vpop.f32.mrb[20].mxu1 }
 0x125   : > { %v2804_v26 = vadd.f32 %v2803_v25, %v2802_v12  ;;  %v2805_v28 = vpop.f32.mrb[22].mxu0  ;;  %v2843_v29 = vpop.f32.mrb[21].mxu1 }
 0x126   : > { %v2806_v40 = vpop.f32.mrb[23].mxu0  ;;  %v2844_v45 = vadd.f32 %v2843_v29, %v2842_v31  ;;  %v2845_v46 = vpop.f32.mrb[22].mxu1 }
 0x127   : > { %v1070_v43 = vadd.f32 %v2804_v26, %v802_v52  ;;  %v2807_v44 = vadd.f32 %v2806_v40, %v2805_v28  ;;  %v2846_v27 = vpop.f32.mrb[23].mxu1 }
 0x128   : > { %v2847_v50 = vadd.f32 %v2846_v27, %v2845_v46 }
 0x129   : > { %v1071_v47 = vadd.f32 %v2807_v44, %v805_v56  ;;  %v1322_v17 = vadd.f32 %v2844_v45, %v1070_v43 }
 0x12b   : > { %v1323_v51 = vadd.f32 %v2847_v50, %v1071_v47  ;;  %v2808_v30 = vpop.f32.mrb[24].mxu0 }
 0x12c   : > { %v2809_v55 = vpop.f32.mrb[25].mxu0  ;;  %v2848_v38 = vpop.f32.mrb[24].mxu1 }
 0x12d   : > { %v2810_v32 = vadd.f32 %v2809_v55, %v2808_v30  ;;  %v2811_v33 = vpop.f32.mrb[26].mxu0  ;;  %v2849_v53 = vpop.f32.mrb[25].mxu1 }
 0x12e   : > { %v2812_v5 = vpop.f32.mrb[27].mxu0  ;;  %v2850_v37 = vadd.f32 %v2849_v53, %v2848_v38  ;;  %v2851_v58 = vpop.f32.mrb[26].mxu1 }
 0x12f   : > { %v1072_v41 = vadd.f32 %v2810_v32, %v810_v62  ;;  %v2813_v60 = vadd.f32 %v2812_v5, %v2811_v33  ;;  %v2852_v52 = vpop.f32.mrb[27].mxu1 }
 0x130   : > { %v2853_v22 = vadd.f32 %v2852_v52, %v2851_v58 }
 0x131   : > { %v1073_v59 = vadd.f32 %v2813_v60, %v813_v48  ;;  %v1324_v61 = vadd.f32 %v2850_v37, %v1072_v41 }
 0x133   : > { %v1325_v7 = vadd.f32 %v2853_v22, %v1073_v59  ;;  %v2814_v56 = vpop.f32.mrb[28].mxu0 }
 0x134   : > { %v2815_v49 = vpop.f32.mrb[29].mxu0  ;;  %v2854_v63 = vpop.f32.mrb[28].mxu1 }
 0x135   : > { %v2816_v57 = vadd.f32 %v2815_v49, %v2814_v56  ;;  %v2817_v20 = vpop.f32.mrb[30].mxu0  ;;  %v2855_v1 = vpop.f32.mrb[29].mxu1 }
 0x136   : > { %v2818_v0 = vpop.f32.mrb[31].mxu0  ;;  %v2856_v2 = vadd.f32 %v2855_v1, %v2854_v63  ;;  %v2857_v3 = vpop.f32.mrb[30].mxu1 }
 0x137   : > { %v1074_v34 = vadd.f32 %v2816_v57, %v818_v6  ;;  %v2819_v42 = vadd.f32 %v2818_v0, %v2817_v20  ;;  %v2858_v62 = vpop.f32.mrb[31].mxu1 }
 0x138   : > { %v2859_v39 = vadd.f32 %v2858_v62, %v2857_v3 }
 0x139   : > { %v1075_v35 = vadd.f32 %v2819_v42, %v821_v9  ;;  %v1326_v8 = vadd.f32 %v2856_v2, %v1074_v34 }
 0x13b   : > { %v1327_v11 = vadd.f32 %v2859_v39, %v1075_v35  ;;  %v2876_v48 = vpop.f32.mrb[32].mxu0 }
 0x13c   : > { %v2877_v13 = vpop.f32.mrb[33].mxu0 }
 0x13d   : > { %v2878_v14 = vadd.f32 %v2877_v13, %v2876_v48  ;;  %v2879_v15 = vpop.f32.mrb[34].mxu0  ;;  %v2916_v21 = vpop.f32.mrb[32].mxu1 }
 0x13e   : > { %v2880_v10 = vpop.f32.mrb[35].mxu0  ;;  %v2917_v23 = vpop.f32.mrb[33].mxu1 }
 0x13f   : > { %v1601_v16 = vadd.f32 %v2878_v14, %v1320_v24  ;;  %v2881_v18 = vadd.f32 %v2880_v10, %v2879_v15  ;;  %v2918_v6 = vadd.f32 %v2917_v23, %v2916_v21  ;;  %v2919_v36 = vpop.f32.mrb[34].mxu1  ;;  %v3900_v23 = vld [vmem:[%s3942_s2] ss:$0 sm:$0xff] }
 0x140   : > { %v2920_v25 = vpop.f32.mrb[35].mxu1 }
 0x141   : > { %v1602_v19 = vadd.f32 %v2881_v18, %v1321_v4  ;;  %v1852_v28 = vadd.f32 %v2918_v6, %v1601_v16  ;;  %v2921_v31 = vadd.f32 %v2920_v25, %v2919_v36 }
 0x143   : > { %v2882_v54 = vpop.f32.mrb[36].mxu0  ;;  %v1853_v44 = vadd.f32 %v2921_v31, %v1602_v19 }
 0x144   : > { %v2883_v12 = vpop.f32.mrb[37].mxu0 }
 0x145   : > { %v2884_v26 = vadd.f32 %v2883_v12, %v2882_v54  ;;  %v2885_v9 = vpop.f32.mrb[38].mxu0  ;;  %v2922_v46 = vpop.f32.mrb[36].mxu1 }
 0x146   : > { %v2886_v40 = vpop.f32.mrb[39].mxu0  ;;  %v2923_v24 = vpop.f32.mrb[37].mxu1 }
 0x147   : > { %v1603_v29 = vadd.f32 %v2884_v26, %v1322_v17  ;;  %v2887_v43 = vadd.f32 %v2886_v40, %v2885_v9  ;;  %v2924_v4 = vadd.f32 %v2923_v24, %v2922_v46  ;;  %v2925_v47 = vpop.f32.mrb[38].mxu1 }
 0x148   : > { %v2926_v30 = vpop.f32.mrb[39].mxu1 }
 0x149   : > { %v1604_v45 = vadd.f32 %v2887_v43, %v1323_v51  ;;  %v1854_v33 = vadd.f32 %v2924_v4, %v1603_v29  ;;  %v2927_v38 = vadd.f32 %v2926_v30, %v2925_v47 }
 0x14b   : > { %v2888_v27 = vpop.f32.mrb[40].mxu0  ;;  %v1855_v60 = vadd.f32 %v2927_v38, %v1604_v45 }
 0x14c   : > { %v2889_v50 = vpop.f32.mrb[41].mxu0 }
 0x14d   : > { %v2890_v55 = vadd.f32 %v2889_v50, %v2888_v27  ;;  %v2891_v32 = vpop.f32.mrb[42].mxu0 }
 0x14e   : > { %v2892_v5 = vpop.f32.mrb[43].mxu0  ;;  %v2928_v17 = vpop.f32.mrb[40].mxu1 }
 0x14f   : > { %v1605_v53 = vadd.f32 %v2890_v55, %v1324_v61  ;;  %v2893_v41 = vadd.f32 %v2892_v5, %v2891_v32  ;;  %v2929_v58 = vpop.f32.mrb[41].mxu1 }
 0x150   : > { %v2930_v51 = vadd.f32 %v2929_v58, %v2928_v17  ;;  %v2931_v59 = vpop.f32.mrb[42].mxu1 }
 0x151   : > { %v1606_v37 = vadd.f32 %v2893_v41, %v1325_v7  ;;  %v2932_v56 = vpop.f32.mrb[43].mxu1 }
 0x152   : > { %v3889_v20 = vadd.f32 %v2930_v51, %v1605_v53  ;;  %v2933_v63 = vadd.f32 %v2932_v56, %v2931_v59 }
 0x153   : > { %v2894_v52 = vpop.f32.mrb[44].mxu0 }
 0x154   : > { %v2895_v22 = vpop.f32.mrb[45].mxu0  ;;  %v3891_v42 = vadd.f32 %v2933_v63, %v1606_v37 }
 0x155   : > { %v2896_v49 = vadd.f32 %v2895_v22, %v2894_v52  ;;  %v2897_v57 = vpop.f32.mrb[46].mxu0 }
 0x156   : > { %v2898_v0 = vpop.f32.mrb[47].mxu0  ;;  %v2934_v2 = vpop.f32.mrb[44].mxu1 }
 0x157   : > { %v1607_v1 = vadd.f32 %v2896_v49, %v1326_v8  ;;  %v2899_v34 = vadd.f32 %v2898_v0, %v2897_v57  ;;  %v2935_v7 = vpop.f32.mrb[45].mxu1 }
 0x158   : > { %v2936_v3 = vadd.f32 %v2935_v7, %v2934_v2  ;;  %v2937_v62 = vpop.f32.mrb[46].mxu1 }
 0x159   : > { %v1608_v61 = vadd.f32 %v2899_v34, %v1327_v11  ;;  %v2938_v39 = vpop.f32.mrb[47].mxu1 }
 0x15a   : > { %v3893_v13 = vadd.f32 %v2936_v3, %v1607_v1  ;;  %v2939_v14 = vadd.f32 %v2938_v39, %v2937_v62 }
 0x15b   : > { %v2956_v35 = vpop.f32.mrb[48].mxu0 }
 0x15c   : > { %v2957_v48 = vpop.f32.mrb[49].mxu0  ;;  %v3895_v18 = vadd.f32 %v2939_v14, %v1608_v61 }
 0x15d   : > { %v2958_v15 = vadd.f32 %v2957_v48, %v2956_v35  ;;  %v2959_v10 = vpop.f32.mrb[50].mxu0 }
 0x15e   : > { %v2960_v16 = vpop.f32.mrb[51].mxu0  ;;  %v3010_v21 = vpop.f32.mrb[48].mxu1 }
 0x15f   : > { %v2961_v8 = vadd.f32 %v2960_v16, %v2959_v10  ;;  %v2103_v19 = vadd.f32 %v2958_v15, %v1852_v28  ;;  %v2226_v54 = vpop.f32.mrb[49].mxu1  ;;  %v2657_v28 = vld [vmem:[%s3943_s3] ss:$0 sm:$0xff] }
 0x160   : > { %v3011_v36 = vpop.f32.mrb[50].mxu1 }
 0x161   : > { %v2104_v11 = vadd.f32 %v2961_v8, %v1853_v44  ;;  %v2257_v6 = vadd.f32 %v2226_v54, %v2103_v19  ;;  %v2229_v25 = vpop.f32.mrb[51].mxu1 }
 0x163   : > { %v2962_v12 = vpop.f32.mrb[52].mxu0  ;;  %v2271_v9 = vmul.f32 %v3900_v23, %v2257_v6  ;;  %v2258_v31 = vadd.f32 %v2229_v25, %v2104_v11 }
 0x164   : > { %v2963_v26 = vpop.f32.mrb[53].mxu0 }
 0x165   : > { %v2964_v40 = vadd.f32 %v2963_v26, %v2962_v12  ;;  %v2965_v29 = vpop.f32.mrb[54].mxu0  ;;  %v2272_v44 = vmul.f32 %v3900_v23, %v2258_v31  ;;  %v2285_v24 = vadd.f32 %v2657_v28, %v2271_v9 }
 0x166   : > { %v2966_v43 = vpop.f32.mrb[55].mxu0  ;;  %v3014_v50 = vpop.f32.mrb[52].mxu1 }
 0x167   : > { %v2105_v45 = vadd.f32 %v2964_v40, %v1854_v33  ;;  %v2967_v46 = vadd.f32 %v2966_v43, %v2965_v29  ;;  %v2286_v27 = vadd.f32 %v2657_v28, %v2272_v44  ;;  %v2242_v30 = vpop.f32.mrb[53].mxu1 }
 0x168   : > { %v3015_v33 = vpop.f32.mrb[54].mxu1 }
 0x169   : > { %v2259_v4 = vadd.f32 %v3010_v21, %v2105_v45  ;;  %v2106_v47 = vadd.f32 %v2967_v46, %v1855_v60  ;;  %v2680_v55 = vpack.c.bf16 %v2286_v27, %v2285_v24  ;;  %v2333_v32 = vadd.f32 %v2286_v27, %v2285_v24  ;;  %v2245_v37 = vpop.f32.mrb[55].mxu1 }
 0x16b   : > { %v2273_v38 = vmul.f32 %v3900_v23, %v2259_v4  ;;  %v2260_v5 = vadd.f32 %v3011_v36, %v2106_v47  ;;  %v2968_v53 = vpop.f32.mrb[56].mxu0  ;;  %2681 = vst [vmem:[%s3911_s29] sm:$0xff] %v2680_v55  }
 0x16c   : > { %v2969_v41 = vpop.f32.mrb[57].mxu0 }
 0x16d   : > { %v2287_v60 = vadd.f32 %v2657_v28, %v2273_v38  ;;  %v2274_v17 = vmul.f32 %v3900_v23, %v2260_v5  ;;  %v2970_v58 = vadd.f32 %v2969_v41, %v2968_v53  ;;  %v2971_v52 = vpop.f32.mrb[58].mxu0 }
 0x16e   : > { %v2972_v51 = vpop.f32.mrb[59].mxu0 }
 0x16f   : > { %v2288_v59 = vadd.f32 %v2657_v28, %v2274_v17  ;;  %v2973_v22 = vadd.f32 %v2972_v51, %v2971_v52  ;;  %v2107_v56 = vadd.f32 %v2970_v58, %v3889_v20  ;;  %v2334_v49 = vadd.f32 %v2333_v32, %v2287_v60 }
 0x171   : > { %v2685_v57 = vpack.c.bf16 %v2288_v59, %v2287_v60  ;;  %v2261_v63 = vadd.f32 %v2242_v30, %v2107_v56  ;;  %v2335_v0 = vadd.f32 %v2334_v49, %v2288_v59  ;;  %v2108_v1 = vadd.f32 %v2973_v22, %v3891_v42 }
 0x173   : > { %2697 = vst [vmem:[%s3911_s29 + $0x8] sm:$0xff] %v2685_v57   ;;  %v2275_v34 = vmul.f32 %v3900_v23, %v2261_v63  ;;  %v2262_v61 = vadd.f32 %v2245_v37, %v2108_v1  ;;  %v2974_v2 = vpop.f32.mrb[60].mxu0 }
 0x174   : > { %v2975_v7 = vpop.f32.mrb[61].mxu0 }
 0x175   : > { %v2289_v3 = vadd.f32 %v2657_v28, %v2275_v34  ;;  %v2276_v62 = vmul.f32 %v3900_v23, %v2262_v61  ;;  %v2976_v35 = vadd.f32 %v2975_v7, %v2974_v2  ;;  %v2977_v39 = vpop.f32.mrb[62].mxu0 }
 0x176   : > { %v2978_v48 = vpop.f32.mrb[63].mxu0 }
 0x177   : > { %v2336_v20 = vadd.f32 %v2335_v0, %v2289_v3  ;;  %v2290_v14 = vadd.f32 %v2657_v28, %v2276_v62  ;;  %v2109_v15 = vadd.f32 %v2976_v35, %v3893_v13  ;;  %v2979_v10 = vadd.f32 %v2978_v48, %v2977_v39 }
 0x179   : > { %v2690_v42 = vpack.c.bf16 %v2290_v14, %v2289_v3  ;;  %v2337_v16 = vadd.f32 %v2336_v20, %v2290_v14  ;;  %v2263_v8 = vadd.f32 %v3014_v50, %v2109_v15  ;;  %v2110_v19 = vadd.f32 %v2979_v10, %v3895_v18 }
 0x17b   : > { %2698 = vst [vmem:[%s3911_s29 + $0x10] sm:$0xff] %v2690_v42   ;;  %v2277_v21 = vmul.f32 %v3900_v23, %v2263_v8  ;;  %v2264_v11 = vadd.f32 %v3015_v33, %v2110_v19 }
 0x17d   : > { %v2291_v54 = vadd.f32 %v2657_v28, %v2277_v21  ;;  %v2278_v6 = vmul.f32 %v3900_v23, %v2264_v11 }
 0x17f   : > { %v2338_v36 = vadd.f32 %v2337_v16, %v2291_v54  ;;  %v2292_v12 = vadd.f32 %v2657_v28, %v2278_v6 }
 0x181   : > { %v2695_v25 = vpack.c.bf16 %v2292_v12, %v2291_v54  ;;  %v2339_v26 = vadd.f32 %v2338_v36, %v2292_v12 }
 0x183   : > { %2699 = vst [vmem:[%s3911_s29 + $0x18] sm:$0xff] %v2695_v25   ;;  %v2340_v13 = vrot.slane %v2339_v26, 4 }
 0x185   : > { %v2341_v9 = vadd.f32 %v2340_v13, %v2339_v26 }
 0x187   : > { %v2342_v31 = vrot.slane %v2341_v9, 2 }
 0x189   : > { %v2343_v40 = vadd.f32 %v2342_v31, %v2341_v9 }
 0x18b   : > { %v2344_v29 = vrot.slane %v2343_v40, 1 }
 0x18d   : > { %v2345_v18 = vadd.f32 %v2344_v29, %v2343_v40 }
 0x18f   : > { %2347 = vst [vmem:[%s306_s7] sm:$0x1] %v2345_v18 }
 0x190 PF: > { %s16_s20 = sadd.s32 1, %s3209_s20   ;;  %s3946_s18 = smov %s3205_s19 }
 0x191   : > { %p13_p5 = scmp.ge.s32.totalorder %s16_s20, 4   ;;  %s3947_s19 = smov %s3949_s21 }
 0x193   :  { %15 = sbr.rel (!%p13_p5) target bundleno = 2 (0x2), region = 87 }

</bundles_post_ra>
